<compile_context>
chip_gen: v6e
topology: v6e:2x2x1
jax: 0.10.0
libtpu: 0.0.40
codegen_flags: <defaults>
</compile_context>

<pallas_src>
import math

import jax
import jax.numpy as jnp
from jax.experimental import pallas as pl
from jax.experimental.pallas import tpu as pltpu

# ----------------------------- model sizes ---------------------------------
B = 2
SPEECH_H = 16          # params.speech_h  (speech frames)
SPEECH_W = 24          # params.speech_w  (raw speech feature width)
EMBED_DIM = 32         # params.embed_dim == params.hidden_size
NUM_HEADS = 4          # params.num_heads
HEAD_DIM = EMBED_DIM // NUM_HEADS
MAX_SEQ = 8            # params.max_sequence_length
N_CLASSES = 5          # params.n_classes
VOCAB = 128            # synthetic vocabulary for the BERT stand-in (lane aligned)

EPS_BN = 1e-5
EPS_LN = 1e-5

# ------------------------- packed-slab row layout ---------------------------
# One [SLAB_ROWS, 32] f32 slab holds every weight matrix with a 32-wide output
# plus all 32-wide bias / LayerNorm / HAN vectors.  All block offsets are
# multiples of 8 (sublane-tile aligned).
_W_BLOCKS = (
    ("spe_w", SPEECH_W),
    ("tok_emb", VOCAB),
    ("mha1_wq", EMBED_DIM), ("mha1_wk", EMBED_DIM),
    ("mha1_wv", EMBED_DIM), ("mha1_wo", EMBED_DIM),
    ("mha2_wq", EMBED_DIM), ("mha2_wk", EMBED_DIM),
    ("mha2_wv", EMBED_DIM), ("mha2_wo", EMBED_DIM),
    ("cmb2_w", 2 * EMBED_DIM),
    ("han_w", EMBED_DIM),
    ("fc1_w", EMBED_DIM),
    ("fc2_w", EMBED_DIM),            # output lanes padded 5 -> 32
)
_V_ROWS = (
    "spe_b",
    "mha1_bq", "mha1_bk", "mha1_bv", "mha1_bo",
    "mha2_bq", "mha2_bk", "mha2_bv", "mha2_bo",
    "ln_g", "ln_b", "cmb2_b", "han_b", "han_ctx", "fc1_b", "fc2_b",
)

SLAB_OFF = {}
_off = 0
for _name, _rows in _W_BLOCKS:
    SLAB_OFF[_name] = _off
    _off += _rows
for _i, _name in enumerate(_V_ROWS):
    SLAB_OFF[_name] = _off + _i
SLAB_ROWS = -(-(_off + len(_V_ROWS)) // 8) * 8        # pad total rows to a multiple of 8

CMB1_ROWS = -(-(4 * EMBED_DIM + 1) // 8) * 8          # 128 weight rows + 1 bias row, padded


# ----------------------------- fused kernel --------------------------------

def fused_forward_kernel(speech_ref, ids_ref, slab_ref, cmb1_ref, bn_ref, out_ref):
    f32 = jnp.float32
    D = EMBED_DIM
    inv_sqrt_hd = 1.0 / math.sqrt(HEAD_DIM)

    def wblk(name, rows=D):                     # [rows, 32] static slab view
        o = SLAB_OFF[name]
        return slab_ref[o:o + rows, :]

    def vrow(name):                             # [1, 32] static slab view
        o = SLAB_OFF[name]
        return slab_ref[o:o + 1, :]

    def softmax_last(s):                        # softmax over the lane (last) axis
        s = s - jnp.max(s, axis=-1, keepdims=True)
        p = jnp.exp(s)
        return p * pl.reciprocal(jnp.sum(p, axis=-1, keepdims=True), approx=True)

    ln_g, ln_b = vrow("ln_g"), vrow("ln_b")

    def layer_norm(x):                          # x: [M, D]
        mu = jnp.mean(x, axis=-1, keepdims=True)
        var = jnp.mean(jnp.square(x - mu), axis=-1, keepdims=True)
        return (x - mu) * jax.lax.rsqrt(var + EPS_LN) * ln_g + ln_b

    def mha(x2d, pre):                          # x2d: [B*SPEECH_H, D]
        # Separate Q/K/V projections: no lane-slicing of a fused [., 3D] result.
        q = jnp.dot(x2d, wblk(pre + "_wq"), preferred_element_type=f32) + vrow(pre + "_bq")
        k = jnp.dot(x2d, wblk(pre + "_wk"), preferred_element_type=f32) + vrow(pre + "_bk")
        v = jnp.dot(x2d, wblk(pre + "_wv"), preferred_element_type=f32) + vrow(pre + "_bv")
        q3 = q.reshape(B, SPEECH_H, D)
        k3 = k.reshape(B, SPEECH_H, D)
        v3 = v.reshape(B, SPEECH_H, D)
        wo_off = SLAB_OFF[pre + "_wo"]
        acc = None
        for h in range(NUM_HEADS):              # unrolled; per-head data stays in vregs
            sl = slice(h * HEAD_DIM, (h + 1) * HEAD_DIM)
            s = jnp.einsum('bqd,bkd->bqk', q3[..., sl], k3[..., sl],
                           preferred_element_type=f32) * inv_sqrt_hd
            p = softmax_last(s)
            o_h = jnp.einsum('bqk,bkd->bqd', p, v3[..., sl],
                             preferred_element_type=f32).reshape(B * SPEECH_H, HEAD_DIM)
            # concat([o_0..o_3]) @ Wo == sum_h o_h @ Wo[h*hd:(h+1)*hd]  (no lane concat)
            wo_blk = slab_ref[wo_off + h * HEAD_DIM: wo_off + (h + 1) * HEAD_DIM, :]
            c = jnp.dot(o_h, wo_blk, preferred_element_type=f32)
            acc = c if acc is None else acc + c
        return acc + vrow(pre + "_bo")

    # Eval-mode BatchNorm1d affine columns (per frame / token row).
    bnsp_s = bn_ref[0]                          # [B*SPEECH_H, 1]
    bnsp_t = bn_ref[1]
    bntx_s = bn_ref[2][0:B * MAX_SEQ, :]        # [B*MAX_SEQ, 1]
    bntx_t = bn_ref[3][0:B * MAX_SEQ, :]

    # ---- 1) speech embedding: Linear + ReLU, then eval BatchNorm1d affine ----
    se = jnp.dot(speech_ref[...], wblk("spe_w", SPEECH_W),
                 preferred_element_type=f32) + vrow("spe_b")
    se = jnp.maximum(se, 0.0)
    se = se * bnsp_s + bnsp_t                                   # [B*SH, D]

    # ---- 2) speech self-attention + residual LayerNorm -----------------------
    speech_enc = layer_norm(se + mha(se, "mha1"))               # [B*SH, D]
    speech_enc3 = speech_enc.reshape(B, SPEECH_H, D)

    # ---- 3) text encoder ------------------------------------------------------
    # TODO(synk): pretrained BERT/RoBERTa encoder replaced by a token-embedding
    # lookup (one-hot matmul on the MXU); attention_mask is unused by this stand-in.
    ids = ids_ref[...]                                          # [B*MS, 1] i32
    iota = jax.lax.broadcasted_iota(jnp.int32, (B * MAX_SEQ, VOCAB), 1)
    onehot = jnp.where(ids == iota, 1.0, 0.0).astype(f32)
    temb = jnp.dot(onehot, wblk("tok_emb", VOCAB), preferred_element_type=f32)
    text_enc = temb + (temb * bntx_s + bntx_t)                  # x + BN(x), as in the spec
    text_enc3 = text_enc.reshape(B, MAX_SEQ, D)

    # ---- 4) local inference (speech branch; text branch is dead downstream) --
    att = jnp.einsum('bqd,bkd->bqk', speech_enc3, text_enc3,
                     preferred_element_type=f32)                # [B, SH, MS]
    w1 = softmax_last(att)
    a_align = jnp.einsum('bqk,bkd->bqd', w1, text_enc3,
                         preferred_element_type=f32).reshape(B * SPEECH_H, D)

    # ---- 5) combined MLP: concat([x, a, x-a, x*a]) @ W1 as four row-block dots
    x1 = speech_enc
    h1 = (jnp.dot(x1, cmb1_ref[0:D, :], preferred_element_type=f32)
          + jnp.dot(a_align, cmb1_ref[D:2 * D, :], preferred_element_type=f32)
          + jnp.dot(x1 - a_align, cmb1_ref[2 * D:3 * D, :], preferred_element_type=f32)
          + jnp.dot(x1 * a_align, cmb1_ref[3 * D:4 * D, :], preferred_element_type=f32)
          + cmb1_ref[4 * D:4 * D + 1, :])
    h1 = jnp.maximum(h1, 0.0)                                   # [B*SH, 2D]
    sc = jnp.maximum(jnp.dot(h1, wblk("cmb2_w", 2 * D), preferred_element_type=f32)
                     + vrow("cmb2_b"), 0.0)                     # [B*SH, D]

    # ---- 6) (shared) BN + composition self-attention + residual (shared) LN --
    scb = sc * bnsp_s + bnsp_t
    comp = layer_norm(scb + mha(scb, "mha2"))                   # [B*SH, D]

    # ---- 7) HAN attention pooling over speech positions -----------------------
    # TODO(synk): HanAttention internals not given in the spec; standard
    # alpha = softmax_t(<tanh(x W + b), u>), out = sum_t alpha_t x_t assumed.
    u = jnp.tanh(jnp.dot(comp, wblk("han_w"), preferred_element_type=f32)
                 + vrow("han_b"))
    sco = jnp.sum(u * vrow("han_ctx"), axis=-1, keepdims=True)  # [B*SH, 1]
    pooled_rows = []
    for b in range(B):                                          # B == 2: tiny unrolled loop
        rs = slice(b * SPEECH_H, (b + 1) * SPEECH_H)
        sb = sco[rs, :]
        sb = sb - jnp.max(sb, axis=0, keepdims=True)
        e = jnp.exp(sb)
        alpha = e * pl.reciprocal(jnp.sum(e, axis=0, keepdims=True), approx=True)
        pooled_rows.append(jnp.sum(alpha * comp[rs, :], axis=0, keepdims=True))
    pooled = jnp.concatenate(pooled_rows, axis=0)               # [B, D]

    # ---- 8) classifier head ----------------------------------------------------
    hf = jnp.maximum(jnp.dot(pooled, wblk("fc1_w"), preferred_element_type=f32)
                     + vrow("fc1_b"), 0.0)
    prob = jnp.dot(hf, wblk("fc2_w"), preferred_element_type=f32) + vrow("fc2_b")
    out_ref[...] = prob[:, :N_CLASSES].astype(out_ref.dtype)


# ----------------------------- parameters -----------------------------------

def _dense(key, fan_in, fan_out):
    k1, k2 = jax.random.split(key)
    lim = 1.0 / math.sqrt(fan_in)
    w = jax.random.uniform(k1, (fan_in, fan_out), jnp.float32, -lim, lim)
    b = jax.random.uniform(k2, (fan_out,), jnp.float32, -lim, lim)
    return w, b


def _bn(key, C):
    k1, k2, k3, k4 = jax.random.split(key, 4)
    gamma = 1.0 + 0.1 * jax.random.normal(k1, (C,), jnp.float32)
    beta = 0.1 * jax.random.normal(k2, (C,), jnp.float32)
    mean = 0.1 * jax.random.normal(k3, (C,), jnp.float32)
    var = 1.0 + 0.1 * jax.random.uniform(k4, (C,), jnp.float32)
    return gamma, beta, mean, var


def init_params(key):
    keys = jax.random.split(key, 16)
    it = iter(keys)
    nk = lambda: next(it)
    D = EMBED_DIM
    p = {}
    p["spe_w"], p["spe_b"] = _dense(nk(), SPEECH_W, D)            # speech_embedding
    p["bn_speech"] = _bn(nk(), SPEECH_H)                          # speechs_batchnorm
    p["bn_text"] = _bn(nk(), MAX_SEQ)                             # text_batchnorm
    p["mha1_in_w"], p["mha1_in_b"] = _dense(nk(), D, 3 * D)       # speech MHA
    p["mha1_out_w"], p["mha1_out_b"] = _dense(nk(), D, D)
    p["mha2_in_w"], p["mha2_in_b"] = _dense(nk(), D, 3 * D)       # composition speech MHA
    p["mha2_out_w"], p["mha2_out_b"] = _dense(nk(), D, D)
    p["ln_g"] = jnp.ones((D,), jnp.float32)                       # shared layer_norm
    p["ln_b"] = jnp.zeros((D,), jnp.float32)
    p["cmb1_w"], p["cmb1_b"] = _dense(nk(), 4 * D, 2 * D)         # combined_linear
    p["cmb2_w"], p["cmb2_b"] = _dense(nk(), 2 * D, D)
    p["han_w"], p["han_b"] = _dense(nk(), D, D)                   # HanAttention
    p["han_ctx"] = jax.random.normal(nk(), (D,), jnp.float32) / math.sqrt(D)
    p["tok_emb"] = 0.02 * jax.random.normal(nk(), (VOCAB, D), jnp.float32)
    p["fc1_w"], p["fc1_b"] = _dense(nk(), D, D)                   # fc head
    p["fc2_w"], p["fc2_b"] = _dense(nk(), D, N_CLASSES)
    return p


def pack_params(p):
    """One-time packing of all weights into a few DMA-friendly slabs."""
    D = EMBED_DIM
    f32 = jnp.float32

    w = {
        "spe_w": p["spe_w"],
        "tok_emb": p["tok_emb"],
        "mha1_wq": p["mha1_in_w"][:, 0:D],
        "mha1_wk": p["mha1_in_w"][:, D:2 * D],
        "mha1_wv": p["mha1_in_w"][:, 2 * D:3 * D],
        "mha1_wo": p["mha1_out_w"],
        "mha2_wq": p["mha2_in_w"][:, 0:D],
        "mha2_wk": p["mha2_in_w"][:, D:2 * D],
        "mha2_wv": p["mha2_in_w"][:, 2 * D:3 * D],
        "mha2_wo": p["mha2_out_w"],
        "cmb2_w": p["cmb2_w"],
        "han_w": p["han_w"],
        "fc1_w": p["fc1_w"],
        "fc2_w": jnp.pad(p["fc2_w"], ((0, 0), (0, D - N_CLASSES))),
    }
    vecs = {
        "spe_b": p["spe_b"],
        "mha1_bq": p["mha1_in_b"][0:D],
        "mha1_bk": p["mha1_in_b"][D:2 * D],
        "mha1_bv": p["mha1_in_b"][2 * D:3 * D],
        "mha1_bo": p["mha1_out_b"],
        "mha2_bq": p["mha2_in_b"][0:D],
        "mha2_bk": p["mha2_in_b"][D:2 * D],
        "mha2_bv": p["mha2_in_b"][2 * D:3 * D],
        "mha2_bo": p["mha2_out_b"],
        "ln_g": p["ln_g"],
        "ln_b": p["ln_b"],
        "cmb2_b": p["cmb2_b"],
        "han_b": p["han_b"],
        "han_ctx": p["han_ctx"],
        "fc1_b": p["fc1_b"],
        "fc2_b": jnp.pad(p["fc2_b"], (0, D - N_CLASSES)),
    }
    blocks = [w[name].astype(f32) for name, _ in _W_BLOCKS]
    blocks += [vecs[name].astype(f32)[None, :] for name in _V_ROWS]
    slab = jnp.concatenate(blocks, axis=0)
    if slab.shape[0] < SLAB_ROWS:
        slab = jnp.pad(slab, ((0, SLAB_ROWS - slab.shape[0]), (0, 0)))
    assert slab.shape == (SLAB_ROWS, D), slab.shape

    cmb1 = jnp.concatenate([p["cmb1_w"], p["cmb1_b"][None, :]], axis=0).astype(f32)
    cmb1 = jnp.pad(cmb1, ((0, CMB1_ROWS - cmb1.shape[0]), (0, 0)))

    def bn_cols(bn):
        gamma, beta, mean, var = bn
        scale = gamma / jnp.sqrt(var + EPS_BN)
        shift = beta - mean * scale
        s = jnp.tile(scale, (B,))[:, None]        # per-row [B*C, 1]
        t = jnp.tile(shift, (B,))[:, None]
        return s.astype(f32), t.astype(f32)

    sp_s, sp_t = bn_cols(p["bn_speech"])                  # [B*SH, 1]
    tx_s, tx_t = bn_cols(p["bn_text"])                    # [B*MS, 1]
    pad = B * SPEECH_H - B * MAX_SEQ
    tx_s = jnp.pad(tx_s, ((0, pad), (0, 0)))
    tx_t = jnp.pad(tx_t, ((0, pad), (0, 0)))
    bn = jnp.stack([sp_s, sp_t, tx_s, tx_t], axis=0)      # [4, B*SH, 1]

    return {"slab": slab, "cmb1": cmb1, "bn": bn}


# ----------------------------- forward pass ---------------------------------

def forward(packed, speechs, input_ids, attention_mask):
    # TODO(synk): attention_mask is unused — the BERT stand-in is a plain
    # token-embedding lookup, so there is no padding-aware text attention.
    del attention_mask
    speech2d = speechs.reshape(B * SPEECH_H, SPEECH_W)
    ids_col = input_ids.reshape(B * MAX_SEQ, 1).astype(jnp.int32)
    # Single grid-less launch; total VMEM footprint ~110 KB.
    return pl.pallas_call(
        fused_forward_kernel,
        out_shape=jax.ShapeDtypeStruct((B, N_CLASSES), jnp.float32),
        compiler_params=pltpu.CompilerParams(vmem_limit_bytes=32 * 1024 * 1024),
    )(speech2d, ids_col, packed["slab"], packed["cmb1"], packed["bn"])


# ----------------------------- main -----------------------------------------

if __name__ == "__main__":
    key = jax.random.PRNGKey(0)
    k_param, k_speech, k_ids = jax.random.split(key, 3)

    params = init_params(k_param)
    packed = pack_params(params)          # one-time slab packing (outside hot path)

    speechs = jax.random.normal(k_speech, (B, SPEECH_H, SPEECH_W), jnp.float32)
    input_ids = jax.random.randint(k_ids, (B, MAX_SEQ), 0, VOCAB, dtype=jnp.int32)
    attention_mask = jnp.ones((B, MAX_SEQ), jnp.int32)

    fwd = jax.jit(forward)
    prob = jax.block_until_ready(fwd(packed, speechs, input_ids, attention_mask))

    assert prob.shape == (B, N_CLASSES), prob.shape
    assert bool(jnp.all(jnp.isfinite(prob)))
    print("KERNEL_OK")
</pallas_src>

<mosaic_0001>
module attributes {stable_mosaic.version = 11 : i64} {
  func.func @fused_forward_kernel(%arg0: memref<32x24xf32, #tpu.memory_space<vmem>>, %arg1: memref<16x1xi32, #tpu.memory_space<vmem>>, %arg2: memref<584x32xf32, #tpu.memory_space<vmem>>, %arg3: memref<136x64xf32, #tpu.memory_space<vmem>>, %arg4: memref<4x32x1xf32, #tpu.memory_space<vmem>>, %arg5: memref<2x5xf32, #tpu.memory_space<vmem>>) attributes {dimension_semantics = [], scalar_prefetch = 0 : i64, scratch_operands = 0 : i64, tpu.core_type = #tpu.core_type<tc>} {
    %c577 = arith.constant 577 : index
    %c0 = arith.constant 0 : index
    %0 = vector.load %arg2[%c577, %c0] : memref<584x32xf32, #tpu.memory_space<vmem>>, vector<1x32xf32>
    %c578 = arith.constant 578 : index
    %c0_0 = arith.constant 0 : index
    %1 = vector.load %arg2[%c578, %c0_0] : memref<584x32xf32, #tpu.memory_space<vmem>>, vector<1x32xf32>
    %c0_1 = arith.constant 0 : index
    %c0_2 = arith.constant 0 : index
    %c0_3 = arith.constant 0 : index
    %2 = vector.load %arg4[%c0_1, %c0_2, %c0_3] : memref<4x32x1xf32, #tpu.memory_space<vmem>>, vector<1x32x1xf32>
    %3 = vector.shape_cast %2 : vector<1x32x1xf32> to vector<32x1xf32>
    %c1 = arith.constant 1 : index
    %c0_4 = arith.constant 0 : index
    %c0_5 = arith.constant 0 : index
    %4 = vector.load %arg4[%c1, %c0_4, %c0_5] : memref<4x32x1xf32, #tpu.memory_space<vmem>>, vector<1x32x1xf32>
    %5 = vector.shape_cast %4 : vector<1x32x1xf32> to vector<32x1xf32>
    %c2 = arith.constant 2 : index
    %c0_6 = arith.constant 0 : index
    %c0_7 = arith.constant 0 : index
    %6 = vector.load %arg4[%c2, %c0_6, %c0_7] : memref<4x32x1xf32, #tpu.memory_space<vmem>>, vector<1x32x1xf32>
    %7 = vector.shape_cast %6 : vector<1x32x1xf32> to vector<32x1xf32>
    %8 = vector.extract_strided_slice %7 {offsets = [0, 0], sizes = [16, 1], strides = [1, 1]} : vector<32x1xf32> to vector<16x1xf32>
    %c3 = arith.constant 3 : index
    %c0_8 = arith.constant 0 : index
    %c0_9 = arith.constant 0 : index
    %9 = vector.load %arg4[%c3, %c0_8, %c0_9] : memref<4x32x1xf32, #tpu.memory_space<vmem>>, vector<1x32x1xf32>
    %10 = vector.shape_cast %9 : vector<1x32x1xf32> to vector<32x1xf32>
    %11 = vector.extract_strided_slice %10 {offsets = [0, 0], sizes = [16, 1], strides = [1, 1]} : vector<32x1xf32> to vector<16x1xf32>
    %c0_10 = arith.constant 0 : index
    %c0_11 = arith.constant 0 : index
    %12 = vector.load %arg0[%c0_10, %c0_11] : memref<32x24xf32, #tpu.memory_space<vmem>>, vector<32x24xf32>
    %c0_12 = arith.constant 0 : index
    %c0_13 = arith.constant 0 : index
    %13 = vector.load %arg2[%c0_12, %c0_13] : memref<584x32xf32, #tpu.memory_space<vmem>>, vector<24x32xf32>
    %cst = arith.constant dense<0.000000e+00> : vector<32x32xf32>
    %14 = tpu.matmul %12, %13, %cst {dimension_numbers = #tpu.dot_dimension_numbers<[1], [0], [0], [1], [0, 0, 1, 1], [], []>} : vector<32x24xf32>, vector<24x32xf32>, vector<32x32xf32> -> vector<32x32xf32>
    %c568 = arith.constant 568 : index
    %c0_14 = arith.constant 0 : index
    %15 = vector.load %arg2[%c568, %c0_14] : memref<584x32xf32, #tpu.memory_space<vmem>>, vector<1x32xf32>
    %16 = vector.broadcast %15 : vector<1x32xf32> to vector<32x32xf32>
    %17 = arith.addf %14, %16 : vector<32x32xf32>
    %cst_15 = arith.constant 0.000000e+00 : f32
    %18 = vector.broadcast %cst_15 : f32 to vector<32x32xf32>
    %19 = arith.maximumf %17, %18 : vector<32x32xf32>
    %20 = vector.broadcast %3 : vector<32x1xf32> to vector<32x32xf32>
    %21 = arith.mulf %19, %20 : vector<32x32xf32>
    %22 = vector.broadcast %5 : vector<32x1xf32> to vector<32x32xf32>
    %23 = arith.addf %21, %22 : vector<32x32xf32>
    %c152 = arith.constant 152 : index
    %c0_16 = arith.constant 0 : index
    %24 = vector.load %arg2[%c152, %c0_16] : memref<584x32xf32, #tpu.memory_space<vmem>>, vector<32x32xf32>
    %cst_17 = arith.constant dense<0.000000e+00> : vector<32x32xf32>
    %25 = tpu.matmul %23, %24, %cst_17 {dimension_numbers = #tpu.dot_dimension_numbers<[1], [0], [0], [1], [0, 0, 1, 1], [], []>} : vector<32x32xf32>, vector<32x32xf32>, vector<32x32xf32> -> vector<32x32xf32>
    %c569 = arith.constant 569 : index
    %c0_18 = arith.constant 0 : index
    %26 = vector.load %arg2[%c569, %c0_18] : memref<584x32xf32, #tpu.memory_space<vmem>>, vector<1x32xf32>
    %27 = vector.broadcast %26 : vector<1x32xf32> to vector<32x32xf32>
    %28 = arith.addf %25, %27 : vector<32x32xf32>
    %c184 = arith.constant 184 : index
    %c0_19 = arith.constant 0 : index
    %29 = vector.load %arg2[%c184, %c0_19] : memref<584x32xf32, #tpu.memory_space<vmem>>, vector<32x32xf32>
    %cst_20 = arith.constant dense<0.000000e+00> : vector<32x32xf32>
    %30 = tpu.matmul %23, %29, %cst_20 {dimension_numbers = #tpu.dot_dimension_numbers<[1], [0], [0], [1], [0, 0, 1, 1], [], []>} : vector<32x32xf32>, vector<32x32xf32>, vector<32x32xf32> -> vector<32x32xf32>
    %c570 = arith.constant 570 : index
    %c0_21 = arith.constant 0 : index
    %31 = vector.load %arg2[%c570, %c0_21] : memref<584x32xf32, #tpu.memory_space<vmem>>, vector<1x32xf32>
    %32 = vector.broadcast %31 : vector<1x32xf32> to vector<32x32xf32>
    %33 = arith.addf %30, %32 : vector<32x32xf32>
    %c216 = arith.constant 216 : index
    %c0_22 = arith.constant 0 : index
    %34 = vector.load %arg2[%c216, %c0_22] : memref<584x32xf32, #tpu.memory_space<vmem>>, vector<32x32xf32>
    %cst_23 = arith.constant dense<0.000000e+00> : vector<32x32xf32>
    %35 = tpu.matmul %23, %34, %cst_23 {dimension_numbers = #tpu.dot_dimension_numbers<[1], [0], [0], [1], [0, 0, 1, 1], [], []>} : vector<32x32xf32>, vector<32x32xf32>, vector<32x32xf32> -> vector<32x32xf32>
    %c571 = arith.constant 571 : index
    %c0_24 = arith.constant 0 : index
    %36 = vector.load %arg2[%c571, %c0_24] : memref<584x32xf32, #tpu.memory_space<vmem>>, vector<1x32xf32>
    %37 = vector.broadcast %36 : vector<1x32xf32> to vector<32x32xf32>
    %38 = arith.addf %35, %37 : vector<32x32xf32>
    %39 = vector.shape_cast %28 : vector<32x32xf32> to vector<2x16x32xf32>
    %40 = vector.shape_cast %33 : vector<32x32xf32> to vector<2x16x32xf32>
    %41 = vector.shape_cast %38 : vector<32x32xf32> to vector<2x16x32xf32>
    %42 = vector.extract_strided_slice %39 {offsets = [0, 0, 0], sizes = [2, 16, 8], strides = [1, 1, 1]} : vector<2x16x32xf32> to vector<2x16x8xf32>
    %43 = vector.extract_strided_slice %40 {offsets = [0, 0, 0], sizes = [2, 16, 8], strides = [1, 1, 1]} : vector<2x16x32xf32> to vector<2x16x8xf32>
    "tpu.trace_start"() <{level = 10 : i32, message = "bqd,bkd->bqk"}> : () -> ()
    %cst_25 = arith.constant dense<0.000000e+00> : vector<2x16x16xf32>
    %44 = tpu.matmul %42, %43, %cst_25 {dimension_numbers = #tpu.dot_dimension_numbers<[2], [2], [1], [1], [0, 0, 0, 1, 1, 1], [0], [0]>} : vector<2x16x8xf32>, vector<2x16x8xf32>, vector<2x16x16xf32> -> vector<2x16x16xf32>
    "tpu.trace_stop"() : () -> ()
    %cst_26 = arith.constant 0.353553385 : f32
    %45 = vector.broadcast %cst_26 : f32 to vector<2x16x16xf32>
    %46 = arith.mulf %44, %45 : vector<2x16x16xf32>
    %cst_27 = arith.constant dense<0xFF800000> : vector<2x16xf32>
    %47 = vector.multi_reduction <maximumf>, %46, %cst_27 [2] : vector<2x16x16xf32> to vector<2x16xf32>
    %48 = vector.shape_cast %47 : vector<2x16xf32> to vector<2x16x1xf32>
    %49 = vector.broadcast %48 : vector<2x16x1xf32> to vector<2x16x16xf32>
    %50 = arith.subf %46, %49 : vector<2x16x16xf32>
    %51 = math.exp %50 : vector<2x16x16xf32>
    %cst_28 = arith.constant dense<0.000000e+00> : vector<2x16xf32>
    %52 = vector.multi_reduction <add>, %51, %cst_28 [2] : vector<2x16x16xf32> to vector<2x16xf32>
    %53 = vector.shape_cast %52 : vector<2x16xf32> to vector<2x16x1xf32>
    %54 = tpu.reciprocal %53 {approx = true} : vector<2x16x1xf32> -> vector<2x16x1xf32>
    %55 = vector.broadcast %54 : vector<2x16x1xf32> to vector<2x16x16xf32>
    %56 = arith.mulf %51, %55 : vector<2x16x16xf32>
    %57 = vector.extract_strided_slice %41 {offsets = [0, 0, 0], sizes = [2, 16, 8], strides = [1, 1, 1]} : vector<2x16x32xf32> to vector<2x16x8xf32>
    "tpu.trace_start"() <{level = 10 : i32, message = "bqk,bkd->bqd"}> : () -> ()
    %cst_29 = arith.constant dense<0.000000e+00> : vector<2x16x8xf32>
    %58 = tpu.matmul %56, %57, %cst_29 {dimension_numbers = #tpu.dot_dimension_numbers<[2], [1], [1], [2], [0, 0, 0, 1, 1, 2], [0], [0]>} : vector<2x16x16xf32>, vector<2x16x8xf32>, vector<2x16x8xf32> -> vector<2x16x8xf32>
    "tpu.trace_stop"() : () -> ()
    %59 = vector.shape_cast %58 : vector<2x16x8xf32> to vector<32x8xf32>
    %c248 = arith.constant 248 : index
    %c0_30 = arith.constant 0 : index
    %60 = vector.load %arg2[%c248, %c0_30] : memref<584x32xf32, #tpu.memory_space<vmem>>, vector<8x32xf32>
    %cst_31 = arith.constant dense<0.000000e+00> : vector<32x32xf32>
    %61 = tpu.matmul %59, %60, %cst_31 {dimension_numbers = #tpu.dot_dimension_numbers<[1], [0], [0], [1], [0, 0, 1, 1], [], []>} : vector<32x8xf32>, vector<8x32xf32>, vector<32x32xf32> -> vector<32x32xf32>
    %62 = vector.extract_strided_slice %39 {offsets = [0, 0, 8], sizes = [2, 16, 8], strides = [1, 1, 1]} : vector<2x16x32xf32> to vector<2x16x8xf32>
    %63 = vector.extract_strided_slice %40 {offsets = [0, 0, 8], sizes = [2, 16, 8], strides = [1, 1, 1]} : vector<2x16x32xf32> to vector<2x16x8xf32>
    "tpu.trace_start"() <{level = 10 : i32, message = "bqd,bkd->bqk"}> : () -> ()
    %cst_32 = arith.constant dense<0.000000e+00> : vector<2x16x16xf32>
    %64 = tpu.matmul %62, %63, %cst_32 {dimension_numbers = #tpu.dot_dimension_numbers<[2], [2], [1], [1], [0, 0, 0, 1, 1, 1], [0], [0]>} : vector<2x16x8xf32>, vector<2x16x8xf32>, vector<2x16x16xf32> -> vector<2x16x16xf32>
    "tpu.trace_stop"() : () -> ()
    %cst_33 = arith.constant 0.353553385 : f32
    %65 = vector.broadcast %cst_33 : f32 to vector<2x16x16xf32>
    %66 = arith.mulf %64, %65 : vector<2x16x16xf32>
    %cst_34 = arith.constant dense<0xFF800000> : vector<2x16xf32>
    %67 = vector.multi_reduction <maximumf>, %66, %cst_34 [2] : vector<2x16x16xf32> to vector<2x16xf32>
    %68 = vector.shape_cast %67 : vector<2x16xf32> to vector<2x16x1xf32>
    %69 = vector.broadcast %68 : vector<2x16x1xf32> to vector<2x16x16xf32>
    %70 = arith.subf %66, %69 : vector<2x16x16xf32>
    %71 = math.exp %70 : vector<2x16x16xf32>
    %cst_35 = arith.constant dense<0.000000e+00> : vector<2x16xf32>
    %72 = vector.multi_reduction <add>, %71, %cst_35 [2] : vector<2x16x16xf32> to vector<2x16xf32>
    %73 = vector.shape_cast %72 : vector<2x16xf32> to vector<2x16x1xf32>
    %74 = tpu.reciprocal %73 {approx = true} : vector<2x16x1xf32> -> vector<2x16x1xf32>
    %75 = vector.broadcast %74 : vector<2x16x1xf32> to vector<2x16x16xf32>
    %76 = arith.mulf %71, %75 : vector<2x16x16xf32>
    %77 = vector.extract_strided_slice %41 {offsets = [0, 0, 8], sizes = [2, 16, 8], strides = [1, 1, 1]} : vector<2x16x32xf32> to vector<2x16x8xf32>
    "tpu.trace_start"() <{level = 10 : i32, message = "bqk,bkd->bqd"}> : () -> ()
    %cst_36 = arith.constant dense<0.000000e+00> : vector<2x16x8xf32>
    %78 = tpu.matmul %76, %77, %cst_36 {dimension_numbers = #tpu.dot_dimension_numbers<[2], [1], [1], [2], [0, 0, 0, 1, 1, 2], [0], [0]>} : vector<2x16x16xf32>, vector<2x16x8xf32>, vector<2x16x8xf32> -> vector<2x16x8xf32>
    "tpu.trace_stop"() : () -> ()
    %79 = vector.shape_cast %78 : vector<2x16x8xf32> to vector<32x8xf32>
    %c256 = arith.constant 256 : index
    %c0_37 = arith.constant 0 : index
    %80 = vector.load %arg2[%c256, %c0_37] : memref<584x32xf32, #tpu.memory_space<vmem>>, vector<8x32xf32>
    %cst_38 = arith.constant dense<0.000000e+00> : vector<32x32xf32>
    %81 = tpu.matmul %79, %80, %cst_38 {dimension_numbers = #tpu.dot_dimension_numbers<[1], [0], [0], [1], [0, 0, 1, 1], [], []>} : vector<32x8xf32>, vector<8x32xf32>, vector<32x32xf32> -> vector<32x32xf32>
    %82 = arith.addf %61, %81 : vector<32x32xf32>
    %83 = vector.extract_strided_slice %39 {offsets = [0, 0, 16], sizes = [2, 16, 8], strides = [1, 1, 1]} : vector<2x16x32xf32> to vector<2x16x8xf32>
    %84 = vector.extract_strided_slice %40 {offsets = [0, 0, 16], sizes = [2, 16, 8], strides = [1, 1, 1]} : vector<2x16x32xf32> to vector<2x16x8xf32>
    "tpu.trace_start"() <{level = 10 : i32, message = "bqd,bkd->bqk"}> : () -> ()
    %cst_39 = arith.constant dense<0.000000e+00> : vector<2x16x16xf32>
    %85 = tpu.matmul %83, %84, %cst_39 {dimension_numbers = #tpu.dot_dimension_numbers<[2], [2], [1], [1], [0, 0, 0, 1, 1, 1], [0], [0]>} : vector<2x16x8xf32>, vector<2x16x8xf32>, vector<2x16x16xf32> -> vector<2x16x16xf32>
    "tpu.trace_stop"() : () -> ()
    %cst_40 = arith.constant 0.353553385 : f32
    %86 = vector.broadcast %cst_40 : f32 to vector<2x16x16xf32>
    %87 = arith.mulf %85, %86 : vector<2x16x16xf32>
    %cst_41 = arith.constant dense<0xFF800000> : vector<2x16xf32>
    %88 = vector.multi_reduction <maximumf>, %87, %cst_41 [2] : vector<2x16x16xf32> to vector<2x16xf32>
    %89 = vector.shape_cast %88 : vector<2x16xf32> to vector<2x16x1xf32>
    %90 = vector.broadcast %89 : vector<2x16x1xf32> to vector<2x16x16xf32>
    %91 = arith.subf %87, %90 : vector<2x16x16xf32>
    %92 = math.exp %91 : vector<2x16x16xf32>
    %cst_42 = arith.constant dense<0.000000e+00> : vector<2x16xf32>
    %93 = vector.multi_reduction <add>, %92, %cst_42 [2] : vector<2x16x16xf32> to vector<2x16xf32>
    %94 = vector.shape_cast %93 : vector<2x16xf32> to vector<2x16x1xf32>
    %95 = tpu.reciprocal %94 {approx = true} : vector<2x16x1xf32> -> vector<2x16x1xf32>
    %96 = vector.broadcast %95 : vector<2x16x1xf32> to vector<2x16x16xf32>
    %97 = arith.mulf %92, %96 : vector<2x16x16xf32>
    %98 = vector.extract_strided_slice %41 {offsets = [0, 0, 16], sizes = [2, 16, 8], strides = [1, 1, 1]} : vector<2x16x32xf32> to vector<2x16x8xf32>
    "tpu.trace_start"() <{level = 10 : i32, message = "bqk,bkd->bqd"}> : () -> ()
    %cst_43 = arith.constant dense<0.000000e+00> : vector<2x16x8xf32>
    %99 = tpu.matmul %97, %98, %cst_43 {dimension_numbers = #tpu.dot_dimension_numbers<[2], [1], [1], [2], [0, 0, 0, 1, 1, 2], [0], [0]>} : vector<2x16x16xf32>, vector<2x16x8xf32>, vector<2x16x8xf32> -> vector<2x16x8xf32>
    "tpu.trace_stop"() : () -> ()
    %100 = vector.shape_cast %99 : vector<2x16x8xf32> to vector<32x8xf32>
    %c264 = arith.constant 264 : index
    %c0_44 = arith.constant 0 : index
    %101 = vector.load %arg2[%c264, %c0_44] : memref<584x32xf32, #tpu.memory_space<vmem>>, vector<8x32xf32>
    %cst_45 = arith.constant dense<0.000000e+00> : vector<32x32xf32>
    %102 = tpu.matmul %100, %101, %cst_45 {dimension_numbers = #tpu.dot_dimension_numbers<[1], [0], [0], [1], [0, 0, 1, 1], [], []>} : vector<32x8xf32>, vector<8x32xf32>, vector<32x32xf32> -> vector<32x32xf32>
    %103 = arith.addf %82, %102 : vector<32x32xf32>
    %104 = vector.extract_strided_slice %39 {offsets = [0, 0, 24], sizes = [2, 16, 8], strides = [1, 1, 1]} : vector<2x16x32xf32> to vector<2x16x8xf32>
    %105 = vector.extract_strided_slice %40 {offsets = [0, 0, 24], sizes = [2, 16, 8], strides = [1, 1, 1]} : vector<2x16x32xf32> to vector<2x16x8xf32>
    "tpu.trace_start"() <{level = 10 : i32, message = "bqd,bkd->bqk"}> : () -> ()
    %cst_46 = arith.constant dense<0.000000e+00> : vector<2x16x16xf32>
    %106 = tpu.matmul %104, %105, %cst_46 {dimension_numbers = #tpu.dot_dimension_numbers<[2], [2], [1], [1], [0, 0, 0, 1, 1, 1], [0], [0]>} : vector<2x16x8xf32>, vector<2x16x8xf32>, vector<2x16x16xf32> -> vector<2x16x16xf32>
    "tpu.trace_stop"() : () -> ()
    %cst_47 = arith.constant 0.353553385 : f32
    %107 = vector.broadcast %cst_47 : f32 to vector<2x16x16xf32>
    %108 = arith.mulf %106, %107 : vector<2x16x16xf32>
    %cst_48 = arith.constant dense<0xFF800000> : vector<2x16xf32>
    %109 = vector.multi_reduction <maximumf>, %108, %cst_48 [2] : vector<2x16x16xf32> to vector<2x16xf32>
    %110 = vector.shape_cast %109 : vector<2x16xf32> to vector<2x16x1xf32>
    %111 = vector.broadcast %110 : vector<2x16x1xf32> to vector<2x16x16xf32>
    %112 = arith.subf %108, %111 : vector<2x16x16xf32>
    %113 = math.exp %112 : vector<2x16x16xf32>
    %cst_49 = arith.constant dense<0.000000e+00> : vector<2x16xf32>
    %114 = vector.multi_reduction <add>, %113, %cst_49 [2] : vector<2x16x16xf32> to vector<2x16xf32>
    %115 = vector.shape_cast %114 : vector<2x16xf32> to vector<2x16x1xf32>
    %116 = tpu.reciprocal %115 {approx = true} : vector<2x16x1xf32> -> vector<2x16x1xf32>
    %117 = vector.broadcast %116 : vector<2x16x1xf32> to vector<2x16x16xf32>
    %118 = arith.mulf %113, %117 : vector<2x16x16xf32>
    %119 = vector.extract_strided_slice %41 {offsets = [0, 0, 24], sizes = [2, 16, 8], strides = [1, 1, 1]} : vector<2x16x32xf32> to vector<2x16x8xf32>
    "tpu.trace_start"() <{level = 10 : i32, message = "bqk,bkd->bqd"}> : () -> ()
    %cst_50 = arith.constant dense<0.000000e+00> : vector<2x16x8xf32>
    %120 = tpu.matmul %118, %119, %cst_50 {dimension_numbers = #tpu.dot_dimension_numbers<[2], [1], [1], [2], [0, 0, 0, 1, 1, 2], [0], [0]>} : vector<2x16x16xf32>, vector<2x16x8xf32>, vector<2x16x8xf32> -> vector<2x16x8xf32>
    "tpu.trace_stop"() : () -> ()
    %121 = vector.shape_cast %120 : vector<2x16x8xf32> to vector<32x8xf32>
    %c272 = arith.constant 272 : index
    %c0_51 = arith.constant 0 : index
    %122 = vector.load %arg2[%c272, %c0_51] : memref<584x32xf32, #tpu.memory_space<vmem>>, vector<8x32xf32>
    %cst_52 = arith.constant dense<0.000000e+00> : vector<32x32xf32>
    %123 = tpu.matmul %121, %122, %cst_52 {dimension_numbers = #tpu.dot_dimension_numbers<[1], [0], [0], [1], [0, 0, 1, 1], [], []>} : vector<32x8xf32>, vector<8x32xf32>, vector<32x32xf32> -> vector<32x32xf32>
    %124 = arith.addf %103, %123 : vector<32x32xf32>
    %c572 = arith.constant 572 : index
    %c0_53 = arith.constant 0 : index
    %125 = vector.load %arg2[%c572, %c0_53] : memref<584x32xf32, #tpu.memory_space<vmem>>, vector<1x32xf32>
    %126 = vector.broadcast %125 : vector<1x32xf32> to vector<32x32xf32>
    %127 = arith.addf %124, %126 : vector<32x32xf32>
    %128 = arith.addf %23, %127 : vector<32x32xf32>
    %cst_54 = arith.constant dense<0.000000e+00> : vector<32xf32>
    %129 = vector.multi_reduction <add>, %128, %cst_54 [1] : vector<32x32xf32> to vector<32xf32>
    %130 = vector.shape_cast %129 : vector<32xf32> to vector<32x1xf32>
    %cst_55 = arith.constant 3.200000e+01 : f32
    %131 = vector.broadcast %cst_55 : f32 to vector<32x1xf32>
    %132 = arith.divf %130, %131 : vector<32x1xf32>
    %133 = vector.broadcast %132 : vector<32x1xf32> to vector<32x32xf32>
    %134 = arith.subf %128, %133 : vector<32x32xf32>
    %135 = arith.mulf %134, %134 : vector<32x32xf32>
    %cst_56 = arith.constant dense<0.000000e+00> : vector<32xf32>
    %136 = vector.multi_reduction <add>, %135, %cst_56 [1] : vector<32x32xf32> to vector<32xf32>
    %137 = vector.shape_cast %136 : vector<32xf32> to vector<32x1xf32>
    %cst_57 = arith.constant 3.200000e+01 : f32
    %138 = vector.broadcast %cst_57 : f32 to vector<32x1xf32>
    %139 = arith.divf %137, %138 : vector<32x1xf32>
    %140 = vector.broadcast %132 : vector<32x1xf32> to vector<32x32xf32>
    %141 = arith.subf %128, %140 : vector<32x32xf32>
    %cst_58 = arith.constant 9.99999974E-6 : f32
    %142 = vector.broadcast %cst_58 : f32 to vector<32x1xf32>
    %143 = arith.addf %139, %142 : vector<32x1xf32>
    %144 = math.rsqrt %143 : vector<32x1xf32>
    %145 = vector.broadcast %144 : vector<32x1xf32> to vector<32x32xf32>
    %146 = arith.mulf %141, %145 : vector<32x32xf32>
    %147 = vector.broadcast %0 : vector<1x32xf32> to vector<32x32xf32>
    %148 = arith.mulf %146, %147 : vector<32x32xf32>
    %149 = vector.broadcast %1 : vector<1x32xf32> to vector<32x32xf32>
    %150 = arith.addf %148, %149 : vector<32x32xf32>
    %151 = vector.shape_cast %150 : vector<32x32xf32> to vector<2x16x32xf32>
    %c0_59 = arith.constant 0 : index
    %c0_60 = arith.constant 0 : index
    %152 = vector.load %arg1[%c0_59, %c0_60] : memref<16x1xi32, #tpu.memory_space<vmem>>, vector<16x1xi32>
    %153 = tpu.iota {dimensions = array<i32: 1>} : vector<16x128xi32>
    %154 = vector.broadcast %152 : vector<16x1xi32> to vector<16x128xi32>
    %155 = arith.cmpi eq, %154, %153 : vector<16x128xi32>
    %cst_61 = arith.constant 1.000000e+00 : f32
    %cst_62 = arith.constant 0.000000e+00 : f32
    %156 = vector.broadcast %cst_61 : f32 to vector<16x128xf32>
    %157 = vector.broadcast %cst_62 : f32 to vector<16x128xf32>
    %158 = arith.select %155, %156, %157 : vector<16x128xi1>, vector<16x128xf32>
    %c24 = arith.constant 24 : index
    %c0_63 = arith.constant 0 : index
    %159 = vector.load %arg2[%c24, %c0_63] : memref<584x32xf32, #tpu.memory_space<vmem>>, vector<128x32xf32>
    %cst_64 = arith.constant dense<0.000000e+00> : vector<16x32xf32>
    %160 = tpu.matmul %158, %159, %cst_64 {dimension_numbers = #tpu.dot_dimension_numbers<[1], [0], [0], [1], [0, 0, 1, 1], [], []>} : vector<16x128xf32>, vector<128x32xf32>, vector<16x32xf32> -> vector<16x32xf32>
    %161 = vector.broadcast %8 : vector<16x1xf32> to vector<16x32xf32>
    %162 = arith.mulf %160, %161 : vector<16x32xf32>
    %163 = vector.broadcast %11 : vector<16x1xf32> to vector<16x32xf32>
    %164 = arith.addf %162, %163 : vector<16x32xf32>
    %165 = arith.addf %160, %164 : vector<16x32xf32>
    %166 = vector.shape_cast %165 : vector<16x32xf32> to vector<2x8x32xf32>
    "tpu.trace_start"() <{level = 10 : i32, message = "bqd,bkd->bqk"}> : () -> ()
    %cst_65 = arith.constant dense<0.000000e+00> : vector<2x16x8xf32>
    %167 = tpu.matmul %151, %166, %cst_65 {dimension_numbers = #tpu.dot_dimension_numbers<[2], [2], [1], [1], [0, 0, 0, 1, 1, 1], [0], [0]>} : vector<2x16x32xf32>, vector<2x8x32xf32>, vector<2x16x8xf32> -> vector<2x16x8xf32>
    "tpu.trace_stop"() : () -> ()
    %cst_66 = arith.constant dense<0xFF800000> : vector<2x16xf32>
    %168 = vector.multi_reduction <maximumf>, %167, %cst_66 [2] : vector<2x16x8xf32> to vector<2x16xf32>
    %169 = vector.shape_cast %168 : vector<2x16xf32> to vector<2x16x1xf32>
    %170 = vector.broadcast %169 : vector<2x16x1xf32> to vector<2x16x8xf32>
    %171 = arith.subf %167, %170 : vector<2x16x8xf32>
    %172 = math.exp %171 : vector<2x16x8xf32>
    %cst_67 = arith.constant dense<0.000000e+00> : vector<2x16xf32>
    %173 = vector.multi_reduction <add>, %172, %cst_67 [2] : vector<2x16x8xf32> to vector<2x16xf32>
    %174 = vector.shape_cast %173 : vector<2x16xf32> to vector<2x16x1xf32>
    %175 = tpu.reciprocal %174 {approx = true} : vector<2x16x1xf32> -> vector<2x16x1xf32>
    %176 = vector.broadcast %175 : vector<2x16x1xf32> to vector<2x16x8xf32>
    %177 = arith.mulf %172, %176 : vector<2x16x8xf32>
    "tpu.trace_start"() <{level = 10 : i32, message = "bqk,bkd->bqd"}> : () -> ()
    %cst_68 = arith.constant dense<0.000000e+00> : vector<2x16x32xf32>
    %178 = tpu.matmul %177, %166, %cst_68 {dimension_numbers = #tpu.dot_dimension_numbers<[2], [1], [1], [2], [0, 0, 0, 1, 1, 2], [0], [0]>} : vector<2x16x8xf32>, vector<2x8x32xf32>, vector<2x16x32xf32> -> vector<2x16x32xf32>
    "tpu.trace_stop"() : () -> ()
    %179 = vector.shape_cast %178 : vector<2x16x32xf32> to vector<32x32xf32>
    %c0_69 = arith.constant 0 : index
    %c0_70 = arith.constant 0 : index
    %180 = vector.load %arg3[%c0_69, %c0_70] : memref<136x64xf32, #tpu.memory_space<vmem>>, vector<32x64xf32>
    %cst_71 = arith.constant dense<0.000000e+00> : vector<32x64xf32>
    %181 = tpu.matmul %150, %180, %cst_71 {dimension_numbers = #tpu.dot_dimension_numbers<[1], [0], [0], [1], [0, 0, 1, 1], [], []>} : vector<32x32xf32>, vector<32x64xf32>, vector<32x64xf32> -> vector<32x64xf32>
    %c32 = arith.constant 32 : index
    %c0_72 = arith.constant 0 : index
    %182 = vector.load %arg3[%c32, %c0_72] : memref<136x64xf32, #tpu.memory_space<vmem>>, vector<32x64xf32>
    %cst_73 = arith.constant dense<0.000000e+00> : vector<32x64xf32>
    %183 = tpu.matmul %179, %182, %cst_73 {dimension_numbers = #tpu.dot_dimension_numbers<[1], [0], [0], [1], [0, 0, 1, 1], [], []>} : vector<32x32xf32>, vector<32x64xf32>, vector<32x64xf32> -> vector<32x64xf32>
    %184 = arith.addf %181, %183 : vector<32x64xf32>
    %185 = arith.subf %150, %179 : vector<32x32xf32>
    %c64 = arith.constant 64 : index
    %c0_74 = arith.constant 0 : index
    %186 = vector.load %arg3[%c64, %c0_74] : memref<136x64xf32, #tpu.memory_space<vmem>>, vector<32x64xf32>
    %cst_75 = arith.constant dense<0.000000e+00> : vector<32x64xf32>
    %187 = tpu.matmul %185, %186, %cst_75 {dimension_numbers = #tpu.dot_dimension_numbers<[1], [0], [0], [1], [0, 0, 1, 1], [], []>} : vector<32x32xf32>, vector<32x64xf32>, vector<32x64xf32> -> vector<32x64xf32>
    %188 = arith.addf %184, %187 : vector<32x64xf32>
    %189 = arith.mulf %150, %179 : vector<32x32xf32>
    %c96 = arith.constant 96 : index
    %c0_76 = arith.constant 0 : index
    %190 = vector.load %arg3[%c96, %c0_76] : memref<136x64xf32, #tpu.memory_space<vmem>>, vector<32x64xf32>
    %cst_77 = arith.constant dense<0.000000e+00> : vector<32x64xf32>
    %191 = tpu.matmul %189, %190, %cst_77 {dimension_numbers = #tpu.dot_dimension_numbers<[1], [0], [0], [1], [0, 0, 1, 1], [], []>} : vector<32x32xf32>, vector<32x64xf32>, vector<32x64xf32> -> vector<32x64xf32>
    %192 = arith.addf %188, %191 : vector<32x64xf32>
    %c128 = arith.constant 128 : index
    %c0_78 = arith.constant 0 : index
    %193 = vector.load %arg3[%c128, %c0_78] : memref<136x64xf32, #tpu.memory_space<vmem>>, vector<1x64xf32>
    %194 = vector.broadcast %193 : vector<1x64xf32> to vector<32x64xf32>
    %195 = arith.addf %192, %194 : vector<32x64xf32>
    %cst_79 = arith.constant 0.000000e+00 : f32
    %196 = vector.broadcast %cst_79 : f32 to vector<32x64xf32>
    %197 = arith.maximumf %195, %196 : vector<32x64xf32>
    %c408 = arith.constant 408 : index
    %c0_80 = arith.constant 0 : index
    %198 = vector.load %arg2[%c408, %c0_80] : memref<584x32xf32, #tpu.memory_space<vmem>>, vector<64x32xf32>
    %cst_81 = arith.constant dense<0.000000e+00> : vector<32x32xf32>
    %199 = tpu.matmul %197, %198, %cst_81 {dimension_numbers = #tpu.dot_dimension_numbers<[1], [0], [0], [1], [0, 0, 1, 1], [], []>} : vector<32x64xf32>, vector<64x32xf32>, vector<32x32xf32> -> vector<32x32xf32>
    %c579 = arith.constant 579 : index
    %c0_82 = arith.constant 0 : index
    %200 = vector.load %arg2[%c579, %c0_82] : memref<584x32xf32, #tpu.memory_space<vmem>>, vector<1x32xf32>
    %201 = vector.broadcast %200 : vector<1x32xf32> to vector<32x32xf32>
    %202 = arith.addf %199, %201 : vector<32x32xf32>
    %cst_83 = arith.constant 0.000000e+00 : f32
    %203 = vector.broadcast %cst_83 : f32 to vector<32x32xf32>
    %204 = arith.maximumf %202, %203 : vector<32x32xf32>
    %205 = vector.broadcast %3 : vector<32x1xf32> to vector<32x32xf32>
    %206 = arith.mulf %204, %205 : vector<32x32xf32>
    %207 = vector.broadcast %5 : vector<32x1xf32> to vector<32x32xf32>
    %208 = arith.addf %206, %207 : vector<32x32xf32>
    %c280 = arith.constant 280 : index
    %c0_84 = arith.constant 0 : index
    %209 = vector.load %arg2[%c280, %c0_84] : memref<584x32xf32, #tpu.memory_space<vmem>>, vector<32x32xf32>
    %cst_85 = arith.constant dense<0.000000e+00> : vector<32x32xf32>
    %210 = tpu.matmul %208, %209, %cst_85 {dimension_numbers = #tpu.dot_dimension_numbers<[1], [0], [0], [1], [0, 0, 1, 1], [], []>} : vector<32x32xf32>, vector<32x32xf32>, vector<32x32xf32> -> vector<32x32xf32>
    %c573 = arith.constant 573 : index
    %c0_86 = arith.constant 0 : index
    %211 = vector.load %arg2[%c573, %c0_86] : memref<584x32xf32, #tpu.memory_space<vmem>>, vector<1x32xf32>
    %212 = vector.broadcast %211 : vector<1x32xf32> to vector<32x32xf32>
    %213 = arith.addf %210, %212 : vector<32x32xf32>
    %c312 = arith.constant 312 : index
    %c0_87 = arith.constant 0 : index
    %214 = vector.load %arg2[%c312, %c0_87] : memref<584x32xf32, #tpu.memory_space<vmem>>, vector<32x32xf32>
    %cst_88 = arith.constant dense<0.000000e+00> : vector<32x32xf32>
    %215 = tpu.matmul %208, %214, %cst_88 {dimension_numbers = #tpu.dot_dimension_numbers<[1], [0], [0], [1], [0, 0, 1, 1], [], []>} : vector<32x32xf32>, vector<32x32xf32>, vector<32x32xf32> -> vector<32x32xf32>
    %c574 = arith.constant 574 : index
    %c0_89 = arith.constant 0 : index
    %216 = vector.load %arg2[%c574, %c0_89] : memref<584x32xf32, #tpu.memory_space<vmem>>, vector<1x32xf32>
    %217 = vector.broadcast %216 : vector<1x32xf32> to vector<32x32xf32>
    %218 = arith.addf %215, %217 : vector<32x32xf32>
    %c344 = arith.constant 344 : index
    %c0_90 = arith.constant 0 : index
    %219 = vector.load %arg2[%c344, %c0_90] : memref<584x32xf32, #tpu.memory_space<vmem>>, vector<32x32xf32>
    %cst_91 = arith.constant dense<0.000000e+00> : vector<32x32xf32>
    %220 = tpu.matmul %208, %219, %cst_91 {dimension_numbers = #tpu.dot_dimension_numbers<[1], [0], [0], [1], [0, 0, 1, 1], [], []>} : vector<32x32xf32>, vector<32x32xf32>, vector<32x32xf32> -> vector<32x32xf32>
    %c575 = arith.constant 575 : index
    %c0_92 = arith.constant 0 : index
    %221 = vector.load %arg2[%c575, %c0_92] : memref<584x32xf32, #tpu.memory_space<vmem>>, vector<1x32xf32>
    %222 = vector.broadcast %221 : vector<1x32xf32> to vector<32x32xf32>
    %223 = arith.addf %220, %222 : vector<32x32xf32>
    %224 = vector.shape_cast %213 : vector<32x32xf32> to vector<2x16x32xf32>
    %225 = vector.shape_cast %218 : vector<32x32xf32> to vector<2x16x32xf32>
    %226 = vector.shape_cast %223 : vector<32x32xf32> to vector<2x16x32xf32>
    %227 = vector.extract_strided_slice %224 {offsets = [0, 0, 0], sizes = [2, 16, 8], strides = [1, 1, 1]} : vector<2x16x32xf32> to vector<2x16x8xf32>
    %228 = vector.extract_strided_slice %225 {offsets = [0, 0, 0], sizes = [2, 16, 8], strides = [1, 1, 1]} : vector<2x16x32xf32> to vector<2x16x8xf32>
    "tpu.trace_start"() <{level = 10 : i32, message = "bqd,bkd->bqk"}> : () -> ()
    %cst_93 = arith.constant dense<0.000000e+00> : vector<2x16x16xf32>
    %229 = tpu.matmul %227, %228, %cst_93 {dimension_numbers = #tpu.dot_dimension_numbers<[2], [2], [1], [1], [0, 0, 0, 1, 1, 1], [0], [0]>} : vector<2x16x8xf32>, vector<2x16x8xf32>, vector<2x16x16xf32> -> vector<2x16x16xf32>
    "tpu.trace_stop"() : () -> ()
    %cst_94 = arith.constant 0.353553385 : f32
    %230 = vector.broadcast %cst_94 : f32 to vector<2x16x16xf32>
    %231 = arith.mulf %229, %230 : vector<2x16x16xf32>
    %cst_95 = arith.constant dense<0xFF800000> : vector<2x16xf32>
    %232 = vector.multi_reduction <maximumf>, %231, %cst_95 [2] : vector<2x16x16xf32> to vector<2x16xf32>
    %233 = vector.shape_cast %232 : vector<2x16xf32> to vector<2x16x1xf32>
    %234 = vector.broadcast %233 : vector<2x16x1xf32> to vector<2x16x16xf32>
    %235 = arith.subf %231, %234 : vector<2x16x16xf32>
    %236 = math.exp %235 : vector<2x16x16xf32>
    %cst_96 = arith.constant dense<0.000000e+00> : vector<2x16xf32>
    %237 = vector.multi_reduction <add>, %236, %cst_96 [2] : vector<2x16x16xf32> to vector<2x16xf32>
    %238 = vector.shape_cast %237 : vector<2x16xf32> to vector<2x16x1xf32>
    %239 = tpu.reciprocal %238 {approx = true} : vector<2x16x1xf32> -> vector<2x16x1xf32>
    %240 = vector.broadcast %239 : vector<2x16x1xf32> to vector<2x16x16xf32>
    %241 = arith.mulf %236, %240 : vector<2x16x16xf32>
    %242 = vector.extract_strided_slice %226 {offsets = [0, 0, 0], sizes = [2, 16, 8], strides = [1, 1, 1]} : vector<2x16x32xf32> to vector<2x16x8xf32>
    "tpu.trace_start"() <{level = 10 : i32, message = "bqk,bkd->bqd"}> : () -> ()
    %cst_97 = arith.constant dense<0.000000e+00> : vector<2x16x8xf32>
    %243 = tpu.matmul %241, %242, %cst_97 {dimension_numbers = #tpu.dot_dimension_numbers<[2], [1], [1], [2], [0, 0, 0, 1, 1, 2], [0], [0]>} : vector<2x16x16xf32>, vector<2x16x8xf32>, vector<2x16x8xf32> -> vector<2x16x8xf32>
    "tpu.trace_stop"() : () -> ()
    %244 = vector.shape_cast %243 : vector<2x16x8xf32> to vector<32x8xf32>
    %c376 = arith.constant 376 : index
    %c0_98 = arith.constant 0 : index
    %245 = vector.load %arg2[%c376, %c0_98] : memref<584x32xf32, #tpu.memory_space<vmem>>, vector<8x32xf32>
    %cst_99 = arith.constant dense<0.000000e+00> : vector<32x32xf32>
    %246 = tpu.matmul %244, %245, %cst_99 {dimension_numbers = #tpu.dot_dimension_numbers<[1], [0], [0], [1], [0, 0, 1, 1], [], []>} : vector<32x8xf32>, vector<8x32xf32>, vector<32x32xf32> -> vector<32x32xf32>
    %247 = vector.extract_strided_slice %224 {offsets = [0, 0, 8], sizes = [2, 16, 8], strides = [1, 1, 1]} : vector<2x16x32xf32> to vector<2x16x8xf32>
    %248 = vector.extract_strided_slice %225 {offsets = [0, 0, 8], sizes = [2, 16, 8], strides = [1, 1, 1]} : vector<2x16x32xf32> to vector<2x16x8xf32>
    "tpu.trace_start"() <{level = 10 : i32, message = "bqd,bkd->bqk"}> : () -> ()
    %cst_100 = arith.constant dense<0.000000e+00> : vector<2x16x16xf32>
    %249 = tpu.matmul %247, %248, %cst_100 {dimension_numbers = #tpu.dot_dimension_numbers<[2], [2], [1], [1], [0, 0, 0, 1, 1, 1], [0], [0]>} : vector<2x16x8xf32>, vector<2x16x8xf32>, vector<2x16x16xf32> -> vector<2x16x16xf32>
    "tpu.trace_stop"() : () -> ()
    %cst_101 = arith.constant 0.353553385 : f32
    %250 = vector.broadcast %cst_101 : f32 to vector<2x16x16xf32>
    %251 = arith.mulf %249, %250 : vector<2x16x16xf32>
    %cst_102 = arith.constant dense<0xFF800000> : vector<2x16xf32>
    %252 = vector.multi_reduction <maximumf>, %251, %cst_102 [2] : vector<2x16x16xf32> to vector<2x16xf32>
    %253 = vector.shape_cast %252 : vector<2x16xf32> to vector<2x16x1xf32>
    %254 = vector.broadcast %253 : vector<2x16x1xf32> to vector<2x16x16xf32>
    %255 = arith.subf %251, %254 : vector<2x16x16xf32>
    %256 = math.exp %255 : vector<2x16x16xf32>
    %cst_103 = arith.constant dense<0.000000e+00> : vector<2x16xf32>
    %257 = vector.multi_reduction <add>, %256, %cst_103 [2] : vector<2x16x16xf32> to vector<2x16xf32>
    %258 = vector.shape_cast %257 : vector<2x16xf32> to vector<2x16x1xf32>
    %259 = tpu.reciprocal %258 {approx = true} : vector<2x16x1xf32> -> vector<2x16x1xf32>
    %260 = vector.broadcast %259 : vector<2x16x1xf32> to vector<2x16x16xf32>
    %261 = arith.mulf %256, %260 : vector<2x16x16xf32>
    %262 = vector.extract_strided_slice %226 {offsets = [0, 0, 8], sizes = [2, 16, 8], strides = [1, 1, 1]} : vector<2x16x32xf32> to vector<2x16x8xf32>
    "tpu.trace_start"() <{level = 10 : i32, message = "bqk,bkd->bqd"}> : () -> ()
    %cst_104 = arith.constant dense<0.000000e+00> : vector<2x16x8xf32>
    %263 = tpu.matmul %261, %262, %cst_104 {dimension_numbers = #tpu.dot_dimension_numbers<[2], [1], [1], [2], [0, 0, 0, 1, 1, 2], [0], [0]>} : vector<2x16x16xf32>, vector<2x16x8xf32>, vector<2x16x8xf32> -> vector<2x16x8xf32>
    "tpu.trace_stop"() : () -> ()
    %264 = vector.shape_cast %263 : vector<2x16x8xf32> to vector<32x8xf32>
    %c384 = arith.constant 384 : index
    %c0_105 = arith.constant 0 : index
    %265 = vector.load %arg2[%c384, %c0_105] : memref<584x32xf32, #tpu.memory_space<vmem>>, vector<8x32xf32>
    %cst_106 = arith.constant dense<0.000000e+00> : vector<32x32xf32>
    %266 = tpu.matmul %264, %265, %cst_106 {dimension_numbers = #tpu.dot_dimension_numbers<[1], [0], [0], [1], [0, 0, 1, 1], [], []>} : vector<32x8xf32>, vector<8x32xf32>, vector<32x32xf32> -> vector<32x32xf32>
    %267 = arith.addf %246, %266 : vector<32x32xf32>
    %268 = vector.extract_strided_slice %224 {offsets = [0, 0, 16], sizes = [2, 16, 8], strides = [1, 1, 1]} : vector<2x16x32xf32> to vector<2x16x8xf32>
    %269 = vector.extract_strided_slice %225 {offsets = [0, 0, 16], sizes = [2, 16, 8], strides = [1, 1, 1]} : vector<2x16x32xf32> to vector<2x16x8xf32>
    "tpu.trace_start"() <{level = 10 : i32, message = "bqd,bkd->bqk"}> : () -> ()
    %cst_107 = arith.constant dense<0.000000e+00> : vector<2x16x16xf32>
    %270 = tpu.matmul %268, %269, %cst_107 {dimension_numbers = #tpu.dot_dimension_numbers<[2], [2], [1], [1], [0, 0, 0, 1, 1, 1], [0], [0]>} : vector<2x16x8xf32>, vector<2x16x8xf32>, vector<2x16x16xf32> -> vector<2x16x16xf32>
    "tpu.trace_stop"() : () -> ()
    %cst_108 = arith.constant 0.353553385 : f32
    %271 = vector.broadcast %cst_108 : f32 to vector<2x16x16xf32>
    %272 = arith.mulf %270, %271 : vector<2x16x16xf32>
    %cst_109 = arith.constant dense<0xFF800000> : vector<2x16xf32>
    %273 = vector.multi_reduction <maximumf>, %272, %cst_109 [2] : vector<2x16x16xf32> to vector<2x16xf32>
    %274 = vector.shape_cast %273 : vector<2x16xf32> to vector<2x16x1xf32>
    %275 = vector.broadcast %274 : vector<2x16x1xf32> to vector<2x16x16xf32>
    %276 = arith.subf %272, %275 : vector<2x16x16xf32>
    %277 = math.exp %276 : vector<2x16x16xf32>
    %cst_110 = arith.constant dense<0.000000e+00> : vector<2x16xf32>
    %278 = vector.multi_reduction <add>, %277, %cst_110 [2] : vector<2x16x16xf32> to vector<2x16xf32>
    %279 = vector.shape_cast %278 : vector<2x16xf32> to vector<2x16x1xf32>
    %280 = tpu.reciprocal %279 {approx = true} : vector<2x16x1xf32> -> vector<2x16x1xf32>
    %281 = vector.broadcast %280 : vector<2x16x1xf32> to vector<2x16x16xf32>
    %282 = arith.mulf %277, %281 : vector<2x16x16xf32>
    %283 = vector.extract_strided_slice %226 {offsets = [0, 0, 16], sizes = [2, 16, 8], strides = [1, 1, 1]} : vector<2x16x32xf32> to vector<2x16x8xf32>
    "tpu.trace_start"() <{level = 10 : i32, message = "bqk,bkd->bqd"}> : () -> ()
    %cst_111 = arith.constant dense<0.000000e+00> : vector<2x16x8xf32>
    %284 = tpu.matmul %282, %283, %cst_111 {dimension_numbers = #tpu.dot_dimension_numbers<[2], [1], [1], [2], [0, 0, 0, 1, 1, 2], [0], [0]>} : vector<2x16x16xf32>, vector<2x16x8xf32>, vector<2x16x8xf32> -> vector<2x16x8xf32>
    "tpu.trace_stop"() : () -> ()
    %285 = vector.shape_cast %284 : vector<2x16x8xf32> to vector<32x8xf32>
    %c392 = arith.constant 392 : index
    %c0_112 = arith.constant 0 : index
    %286 = vector.load %arg2[%c392, %c0_112] : memref<584x32xf32, #tpu.memory_space<vmem>>, vector<8x32xf32>
    %cst_113 = arith.constant dense<0.000000e+00> : vector<32x32xf32>
    %287 = tpu.matmul %285, %286, %cst_113 {dimension_numbers = #tpu.dot_dimension_numbers<[1], [0], [0], [1], [0, 0, 1, 1], [], []>} : vector<32x8xf32>, vector<8x32xf32>, vector<32x32xf32> -> vector<32x32xf32>
    %288 = arith.addf %267, %287 : vector<32x32xf32>
    %289 = vector.extract_strided_slice %224 {offsets = [0, 0, 24], sizes = [2, 16, 8], strides = [1, 1, 1]} : vector<2x16x32xf32> to vector<2x16x8xf32>
    %290 = vector.extract_strided_slice %225 {offsets = [0, 0, 24], sizes = [2, 16, 8], strides = [1, 1, 1]} : vector<2x16x32xf32> to vector<2x16x8xf32>
    "tpu.trace_start"() <{level = 10 : i32, message = "bqd,bkd->bqk"}> : () -> ()
    %cst_114 = arith.constant dense<0.000000e+00> : vector<2x16x16xf32>
    %291 = tpu.matmul %289, %290, %cst_114 {dimension_numbers = #tpu.dot_dimension_numbers<[2], [2], [1], [1], [0, 0, 0, 1, 1, 1], [0], [0]>} : vector<2x16x8xf32>, vector<2x16x8xf32>, vector<2x16x16xf32> -> vector<2x16x16xf32>
    "tpu.trace_stop"() : () -> ()
    %cst_115 = arith.constant 0.353553385 : f32
    %292 = vector.broadcast %cst_115 : f32 to vector<2x16x16xf32>
    %293 = arith.mulf %291, %292 : vector<2x16x16xf32>
    %cst_116 = arith.constant dense<0xFF800000> : vector<2x16xf32>
    %294 = vector.multi_reduction <maximumf>, %293, %cst_116 [2] : vector<2x16x16xf32> to vector<2x16xf32>
    %295 = vector.shape_cast %294 : vector<2x16xf32> to vector<2x16x1xf32>
    %296 = vector.broadcast %295 : vector<2x16x1xf32> to vector<2x16x16xf32>
    %297 = arith.subf %293, %296 : vector<2x16x16xf32>
    %298 = math.exp %297 : vector<2x16x16xf32>
    %cst_117 = arith.constant dense<0.000000e+00> : vector<2x16xf32>
    %299 = vector.multi_reduction <add>, %298, %cst_117 [2] : vector<2x16x16xf32> to vector<2x16xf32>
    %300 = vector.shape_cast %299 : vector<2x16xf32> to vector<2x16x1xf32>
    %301 = tpu.reciprocal %300 {approx = true} : vector<2x16x1xf32> -> vector<2x16x1xf32>
    %302 = vector.broadcast %301 : vector<2x16x1xf32> to vector<2x16x16xf32>
    %303 = arith.mulf %298, %302 : vector<2x16x16xf32>
    %304 = vector.extract_strided_slice %226 {offsets = [0, 0, 24], sizes = [2, 16, 8], strides = [1, 1, 1]} : vector<2x16x32xf32> to vector<2x16x8xf32>
    "tpu.trace_start"() <{level = 10 : i32, message = "bqk,bkd->bqd"}> : () -> ()
    %cst_118 = arith.constant dense<0.000000e+00> : vector<2x16x8xf32>
    %305 = tpu.matmul %303, %304, %cst_118 {dimension_numbers = #tpu.dot_dimension_numbers<[2], [1], [1], [2], [0, 0, 0, 1, 1, 2], [0], [0]>} : vector<2x16x16xf32>, vector<2x16x8xf32>, vector<2x16x8xf32> -> vector<2x16x8xf32>
    "tpu.trace_stop"() : () -> ()
    %306 = vector.shape_cast %305 : vector<2x16x8xf32> to vector<32x8xf32>
    %c400 = arith.constant 400 : index
    %c0_119 = arith.constant 0 : index
    %307 = vector.load %arg2[%c400, %c0_119] : memref<584x32xf32, #tpu.memory_space<vmem>>, vector<8x32xf32>
    %cst_120 = arith.constant dense<0.000000e+00> : vector<32x32xf32>
    %308 = tpu.matmul %306, %307, %cst_120 {dimension_numbers = #tpu.dot_dimension_numbers<[1], [0], [0], [1], [0, 0, 1, 1], [], []>} : vector<32x8xf32>, vector<8x32xf32>, vector<32x32xf32> -> vector<32x32xf32>
    %309 = arith.addf %288, %308 : vector<32x32xf32>
    %c576 = arith.constant 576 : index
    %c0_121 = arith.constant 0 : index
    %310 = vector.load %arg2[%c576, %c0_121] : memref<584x32xf32, #tpu.memory_space<vmem>>, vector<1x32xf32>
    %311 = vector.broadcast %310 : vector<1x32xf32> to vector<32x32xf32>
    %312 = arith.addf %309, %311 : vector<32x32xf32>
    %313 = arith.addf %208, %312 : vector<32x32xf32>
    %cst_122 = arith.constant dense<0.000000e+00> : vector<32xf32>
    %314 = vector.multi_reduction <add>, %313, %cst_122 [1] : vector<32x32xf32> to vector<32xf32>
    %315 = vector.shape_cast %314 : vector<32xf32> to vector<32x1xf32>
    %cst_123 = arith.constant 3.200000e+01 : f32
    %316 = vector.broadcast %cst_123 : f32 to vector<32x1xf32>
    %317 = arith.divf %315, %316 : vector<32x1xf32>
    %318 = vector.broadcast %317 : vector<32x1xf32> to vector<32x32xf32>
    %319 = arith.subf %313, %318 : vector<32x32xf32>
    %320 = arith.mulf %319, %319 : vector<32x32xf32>
    %cst_124 = arith.constant dense<0.000000e+00> : vector<32xf32>
    %321 = vector.multi_reduction <add>, %320, %cst_124 [1] : vector<32x32xf32> to vector<32xf32>
    %322 = vector.shape_cast %321 : vector<32xf32> to vector<32x1xf32>
    %cst_125 = arith.constant 3.200000e+01 : f32
    %323 = vector.broadcast %cst_125 : f32 to vector<32x1xf32>
    %324 = arith.divf %322, %323 : vector<32x1xf32>
    %325 = vector.broadcast %317 : vector<32x1xf32> to vector<32x32xf32>
    %326 = arith.subf %313, %325 : vector<32x32xf32>
    %cst_126 = arith.constant 9.99999974E-6 : f32
    %327 = vector.broadcast %cst_126 : f32 to vector<32x1xf32>
    %328 = arith.addf %324, %327 : vector<32x1xf32>
    %329 = math.rsqrt %328 : vector<32x1xf32>
    %330 = vector.broadcast %329 : vector<32x1xf32> to vector<32x32xf32>
    %331 = arith.mulf %326, %330 : vector<32x32xf32>
    %332 = vector.broadcast %0 : vector<1x32xf32> to vector<32x32xf32>
    %333 = arith.mulf %331, %332 : vector<32x32xf32>
    %334 = vector.broadcast %1 : vector<1x32xf32> to vector<32x32xf32>
    %335 = arith.addf %333, %334 : vector<32x32xf32>
    %c472 = arith.constant 472 : index
    %c0_127 = arith.constant 0 : index
    %336 = vector.load %arg2[%c472, %c0_127] : memref<584x32xf32, #tpu.memory_space<vmem>>, vector<32x32xf32>
    %cst_128 = arith.constant dense<0.000000e+00> : vector<32x32xf32>
    %337 = tpu.matmul %335, %336, %cst_128 {dimension_numbers = #tpu.dot_dimension_numbers<[1], [0], [0], [1], [0, 0, 1, 1], [], []>} : vector<32x32xf32>, vector<32x32xf32>, vector<32x32xf32> -> vector<32x32xf32>
    %c580 = arith.constant 580 : index
    %c0_129 = arith.constant 0 : index
    %338 = vector.load %arg2[%c580, %c0_129] : memref<584x32xf32, #tpu.memory_space<vmem>>, vector<1x32xf32>
    %339 = vector.broadcast %338 : vector<1x32xf32> to vector<32x32xf32>
    %340 = arith.addf %337, %339 : vector<32x32xf32>
    %341 = math.tanh %340 : vector<32x32xf32>
    %c581 = arith.constant 581 : index
    %c0_130 = arith.constant 0 : index
    %342 = vector.load %arg2[%c581, %c0_130] : memref<584x32xf32, #tpu.memory_space<vmem>>, vector<1x32xf32>
    %343 = vector.broadcast %342 : vector<1x32xf32> to vector<32x32xf32>
    %344 = arith.mulf %341, %343 : vector<32x32xf32>
    %cst_131 = arith.constant dense<0.000000e+00> : vector<32xf32>
    %345 = vector.multi_reduction <add>, %344, %cst_131 [1] : vector<32x32xf32> to vector<32xf32>
    %346 = vector.shape_cast %345 : vector<32xf32> to vector<32x1xf32>
    %347 = vector.extract_strided_slice %346 {offsets = [0, 0], sizes = [16, 1], strides = [1, 1]} : vector<32x1xf32> to vector<16x1xf32>
    %cst_132 = arith.constant dense<0xFF800000> : vector<1xf32>
    %348 = vector.multi_reduction <maximumf>, %347, %cst_132 [0] : vector<16x1xf32> to vector<1xf32>
    %349 = vector.shape_cast %348 : vector<1xf32> to vector<1x1xf32>
    %350 = vector.broadcast %349 : vector<1x1xf32> to vector<16x1xf32>
    %351 = arith.subf %347, %350 : vector<16x1xf32>
    %352 = math.exp %351 : vector<16x1xf32>
    %cst_133 = arith.constant dense<0.000000e+00> : vector<1xf32>
    %353 = vector.multi_reduction <add>, %352, %cst_133 [0] : vector<16x1xf32> to vector<1xf32>
    %354 = vector.shape_cast %353 : vector<1xf32> to vector<1x1xf32>
    %355 = tpu.reciprocal %354 {approx = true} : vector<1x1xf32> -> vector<1x1xf32>
    %356 = vector.broadcast %355 : vector<1x1xf32> to vector<16x1xf32>
    %357 = arith.mulf %352, %356 : vector<16x1xf32>
    %358 = vector.extract_strided_slice %335 {offsets = [0, 0], sizes = [16, 32], strides = [1, 1]} : vector<32x32xf32> to vector<16x32xf32>
    %359 = vector.broadcast %357 : vector<16x1xf32> to vector<16x32xf32>
    %360 = arith.mulf %359, %358 : vector<16x32xf32>
    %cst_134 = arith.constant dense<0.000000e+00> : vector<32xf32>
    %361 = vector.multi_reduction <add>, %360, %cst_134 [0] : vector<16x32xf32> to vector<32xf32>
    %362 = vector.shape_cast %361 : vector<32xf32> to vector<1x32xf32>
    %363 = vector.extract_strided_slice %346 {offsets = [16, 0], sizes = [16, 1], strides = [1, 1]} : vector<32x1xf32> to vector<16x1xf32>
    %cst_135 = arith.constant dense<0xFF800000> : vector<1xf32>
    %364 = vector.multi_reduction <maximumf>, %363, %cst_135 [0] : vector<16x1xf32> to vector<1xf32>
    %365 = vector.shape_cast %364 : vector<1xf32> to vector<1x1xf32>
    %366 = vector.broadcast %365 : vector<1x1xf32> to vector<16x1xf32>
    %367 = arith.subf %363, %366 : vector<16x1xf32>
    %368 = math.exp %367 : vector<16x1xf32>
    %cst_136 = arith.constant dense<0.000000e+00> : vector<1xf32>
    %369 = vector.multi_reduction <add>, %368, %cst_136 [0] : vector<16x1xf32> to vector<1xf32>
    %370 = vector.shape_cast %369 : vector<1xf32> to vector<1x1xf32>
    %371 = tpu.reciprocal %370 {approx = true} : vector<1x1xf32> -> vector<1x1xf32>
    %372 = vector.broadcast %371 : vector<1x1xf32> to vector<16x1xf32>
    %373 = arith.mulf %368, %372 : vector<16x1xf32>
    %374 = vector.extract_strided_slice %335 {offsets = [16, 0], sizes = [16, 32], strides = [1, 1]} : vector<32x32xf32> to vector<16x32xf32>
    %375 = vector.broadcast %373 : vector<16x1xf32> to vector<16x32xf32>
    %376 = arith.mulf %375, %374 : vector<16x32xf32>
    %cst_137 = arith.constant dense<0.000000e+00> : vector<32xf32>
    %377 = vector.multi_reduction <add>, %376, %cst_137 [0] : vector<16x32xf32> to vector<32xf32>
    %378 = vector.shape_cast %377 : vector<32xf32> to vector<1x32xf32>
    %379 = tpu.concatenate %362, %378 in 0 : vector<1x32xf32>, vector<1x32xf32> -> vector<2x32xf32>
    %c504 = arith.constant 504 : index
    %c0_138 = arith.constant 0 : index
    %380 = vector.load %arg2[%c504, %c0_138] : memref<584x32xf32, #tpu.memory_space<vmem>>, vector<32x32xf32>
    %cst_139 = arith.constant dense<0.000000e+00> : vector<2x32xf32>
    %381 = tpu.matmul %379, %380, %cst_139 {dimension_numbers = #tpu.dot_dimension_numbers<[1], [0], [0], [1], [0, 0, 1, 1], [], []>} : vector<2x32xf32>, vector<32x32xf32>, vector<2x32xf32> -> vector<2x32xf32>
    %c582 = arith.constant 582 : index
    %c0_140 = arith.constant 0 : index
    %382 = vector.load %arg2[%c582, %c0_140] : memref<584x32xf32, #tpu.memory_space<vmem>>, vector<1x32xf32>
    %383 = vector.broadcast %382 : vector<1x32xf32> to vector<2x32xf32>
    %384 = arith.addf %381, %383 : vector<2x32xf32>
    %cst_141 = arith.constant 0.000000e+00 : f32
    %385 = vector.broadcast %cst_141 : f32 to vector<2x32xf32>
    %386 = arith.maximumf %384, %385 : vector<2x32xf32>
    %c536 = arith.constant 536 : index
    %c0_142 = arith.constant 0 : index
    %387 = vector.load %arg2[%c536, %c0_142] : memref<584x32xf32, #tpu.memory_space<vmem>>, vector<32x32xf32>
    %cst_143 = arith.constant dense<0.000000e+00> : vector<2x32xf32>
    %388 = tpu.matmul %386, %387, %cst_143 {dimension_numbers = #tpu.dot_dimension_numbers<[1], [0], [0], [1], [0, 0, 1, 1], [], []>} : vector<2x32xf32>, vector<32x32xf32>, vector<2x32xf32> -> vector<2x32xf32>
    %c583 = arith.constant 583 : index
    %c0_144 = arith.constant 0 : index
    %389 = vector.load %arg2[%c583, %c0_144] : memref<584x32xf32, #tpu.memory_space<vmem>>, vector<1x32xf32>
    %390 = vector.broadcast %389 : vector<1x32xf32> to vector<2x32xf32>
    %391 = arith.addf %388, %390 : vector<2x32xf32>
    %392 = vector.extract_strided_slice %391 {offsets = [0, 0], sizes = [2, 5], strides = [1, 1]} : vector<2x32xf32> to vector<2x5xf32>
    %c0_145 = arith.constant 0 : index
    %c0_146 = arith.constant 0 : index
    %393 = vector.load %arg5[%c0_145, %c0_146] : memref<2x5xf32, #tpu.memory_space<vmem>>, vector<2x5xf32>
    tpu.vector_store %arg5[%c0_145, %c0_146], %392 {strides = array<i32>} : memref<2x5xf32, #tpu.memory_space<vmem>>, vector<2x5xf32>,
    return
  }
}

</mosaic_0001>

<bundles_post_ra>
// kernel: forward.1
= control target key start
LH: loop header
LB: loop body
LE: loop exit
PB: predicated region body
PF: predicated region fallthrough
CT: control target
= control target key end

     0   :  { %vm50_vm0 = vcmask 195584   ;;  %v7678_v3 = vmov 0   ;;  %s8899_s0 = inlined_call_operand.vmem [shape: f32[32,24], index: 0, kind: input, shape index: {}]   ;;  %s8900_s1 = inlined_call_operand.vmem [shape: s32[16,1], index: 1, kind: input, shape index: {}]   ;;  %s8901_s2 = inlined_call_operand.vmem [shape: f32[584,32], index: 2, kind: input, shape index: {}]   ;;  %s8902_s3 = inlined_call_operand.vmem [shape: f32[136,64], index: 3, kind: input, shape index: {}]   ;;  %s8903_s4 = inlined_call_operand.vmem [shape: f32[4,32,1], index: 4, kind: input, shape index: {}]   ;;  %s8904_s5 = inlined_call_operand.hbm [shape: f32[2,5], index: 5, kind: output, shape index: {}]  }
   0x1   :  { %v44_v0 = vld [vmem:[%s8901_s2 + $0x10] sm:$0xff]  ;;  %v43_v1 = vld [vmem:[%s8901_s2 + $0x8] sm:$0xff]  ;;  %v38_v2 = vld [vmem:[%s8899_s0] sm:$0xff]  ;;  %7472 = vset.pattern.permute.xlu0 %v7678_v3  ;;  %7473 = vset.pattern.permute.xlu1 %v7678_v3 }
   0x2   :  { %6911 = vmatprep.subr.mxu0 %v44_v0  ;;  %v42_v4 = vld [vmem:[%s8901_s2] sm:$0xff]  ;;  %6917 = vmatprep.mubr.msk.f32.mxu0 %vm50_vm0, %v38_v2  ;;  %v39_v7 = vld [vmem:[%s8899_s0 + $0x8] sm:$0xff]  ;;  %v40_v9 = vld [vmem:[%s8899_s0 + $0x10] sm:$0xff] }
   0x3   :  { %6912 = vmatpush3.msra.mxu0 %v44_v0  ;;  %v23_v5 = vld [vmem:[%s8903_s4] sm:$0xff]  ;;  %v24_v8 = vld [vmem:[%s8903_s4 + $0x8] sm:$0xff] }
   0x4   :  { %v6377_v6 = vld [vmem:[%s8903_s4 + $0x20] sm:$0xff]  ;;  %6913 = vmatprep.subr.mxu0 %v43_v1  ;;  %154 = vperm.xlu0 %7472, %v23_v5  }
   0x5   :  { %6914 = vmatpush3.msra.mxu0 %v43_v1  ;;  %178 = vperm.xlu1 %7473, %v6377_v6  }
   0x6   :  { %6915 = vmatprep.subr.mxu0 %v42_v4 }
   0x7   :  { %10 = vsyncpa [#allocation3], 0  ;;  %6916 = vmatpush3.msra.mxu0 %v42_v4  ;;  %v6378_v10 = vld [vmem:[%s8903_s4 + $0x28] sm:$0xff]  ;;  %v41_v11 = vld [vmem:[%s8899_s0 + $0x18] sm:$0xff]  ;;  %vm209_vm1 = vcmask 261120   ;;  %vm495_vm2 = vcmask 64512  }
   0x8   :  { %6918 = vmatmul.mubr.msk.f32.vlgmr.msra.gmra.mxu0 %vm50_vm0, %v39_v7  ;;  %159 = vperm.xlu0 %7472, %v24_v8   ;;  %v25_v12 = vld [vmem:[%s8903_s4 + $0x10] sm:$0xff]  ;;  %v26_v13 = vld [vmem:[%s8903_s4 + $0x18] sm:$0xff]  ;;  %v202_v18 = vld [vmem:[%s8901_s2 + $0xa8] sm:$0xff]  ;;  %vm674_vm3 = vcmask 130048   ;;  %s7679_s28 = smov 120   ;;  %s7680_s29 = smov 112  }
   0x9   :  { %6920 = vmatprep.mubr.msk.f32.mxu0 %vm50_vm0, %v40_v9  ;;  %183 = vperm.xlu1 %7473, %v6378_v10   ;;  %v6379_v14 = vld [vmem:[%s8903_s4 + $0x30] sm:$0xff]  ;;  %v6380_v15 = vld [vmem:[%s8903_s4 + $0x38] sm:$0xff]  ;;  %v309_v19 = vld [vmem:[%s8901_s2 + $0xc8] sm:$0xff]  ;;  %s7681_s9 = smov 104   ;;  %vm3518_vm6 = vcmask 523264   ;;  %vm7684_vm7 = vmmov 0  }
   0xa   :  { %v203_v16 = vld [vmem:[%s8901_s2 + $0xb0] sm:$0xff]  ;;  %v201_v20 = vld [vmem:[%s8901_s2 + $0xa0] sm:$0xff]  ;;  %v200_v22 = vld [vmem:[%s8901_s2 + $0x98] sm:$0xff]  ;;  %vm6194_vm8 = vcmask 1040384   ;;  %s7685_s10 = smov [#allocation2]   ;;  %vm6361_vm9 = vcmask 33792  }
   0xb   :  { %v310_v17 = vld [vmem:[%s8901_s2 + $0xd0] sm:$0xff]  ;;  %6923 = vmatprep.subr.mxu1 %v203_v16  ;;  %v308_v21 = vld [vmem:[%s8901_s2 + $0xc0] sm:$0xff]  ;;  %v307_v23 = vld [vmem:[%s8901_s2 + $0xb8] sm:$0xff]  ;;  %s6369_s11 = sshll.u32 %s7685_s10, 4  ;;  %s6370_s11 = int_to_ptr.vmem [resolvable:$true] %s6369_s11 }
   0xc   :  { %6921 = vmatmul.mubr.msk.f32.gmra.mxu0 %vm50_vm0, %v41_v11  ;;  %164 = vperm.xlu0 %7472, %v25_v12   ;;  %v404_v24 = vld [vmem:[%s8901_s2 + $0xf0] sm:$0xff]  ;;  %v6385_v27 = vld [vmem:[%s8901_s2 + $0x238] ss:$0 sm:$0xff]  ;;  %v403_v50 = vld [vmem:[%s8901_s2 + $0xe8] sm:$0xff]  ;;  %s7656_s12 = scalar_lea.vmem %s6370_s11, 32  ;;  %p7661_p1 = scmp.lt.s32.totalorder %s6370_s11, %s6370_s11 }
   0xd   :  { %169 = vperm.xlu1 %7473, %v26_v13   ;;  %6937 = vmatprep.subr.mxu0 %v310_v17  ;;  %v402_v55 = vld [vmem:[%s8901_s2 + $0xe0] sm:$0xff]  ;;  %v401_v56 = vld [vmem:[%s8901_s2 + $0xd8] sm:$0xff]  ;;  %p7657_p0 = scmp.ne.s32.totalorder %s6370_s11, %s7656_s12  ;;  %p7662_p2 = scmp.lt.s32.totalorder %s7656_s12, %s7656_s12 }
   0xe   :  { %6924 = vmatpush3.msra.mxu1 %v203_v16  ;;  %6938 = vmatpush3.msra.mxu0 %v310_v17  ;;  %v6395_v57 = vld [vmem:[%s8901_s2 + $0x23a] ss:$0 sm:$0xff]  ;;  %v6390_v61 = vld [vmem:[%s8901_s2 + $0x239] ss:$0 sm:$0xff]  ;;  %v7889_v8 = vld [vmem:[%s8901_s2 + $0x23b] ss:$0 sm:$0xff] }
   0xf   :  { %6925 = vmatprep.subr.mxu1 %v202_v18  ;;  %6939 = vmatprep.subr.mxu0 %v309_v19  ;;  %p7663_p3 = por %p7662_p2, %p7661_p1 }
  0x10   :  { %188 = vperm.xlu0 %7472, %v6379_v14   ;;  %6926 = vmatpush3.msra.mxu1 %v202_v18 }
  0x11   :  { %193 = vperm.xlu1 %7473, %v6380_v15   ;;  %6940 = vmatpush3.msra.mxu0 %v309_v19  ;;  %p7664_p4 = pnand %p7663_p3, %p7657_p0 }
  0x12   :  { %6927 = vmatprep.subr.mxu1 %v201_v20  ;;  %6941 = vmatprep.subr.mxu0 %v308_v21 }
  0x13   :  { %6928 = vmatpush3.msra.mxu1 %v201_v20  ;;  %6942 = vmatpush3.msra.mxu0 %v308_v21 }
  0x14   :  { %6929 = vmatprep.subr.mxu1 %v200_v22  ;;  %6943 = vmatprep.subr.mxu0 %v307_v23 }
  0x15   :  { %6930 = vmatpush3.msra.mxu1 %v200_v22  ;;  %6944 = vmatpush3.msra.mxu0 %v307_v23 }
  0x16   :  { %6951 = vmatprep.subr.mxu1 %v404_v24 }
  0x7f   :  { %v7792_v25 = vpop.permute.xlu0 %154 }
  0x80   :  { %v7794_v26 = vpop.permute.xlu1 %178 }
  0x83   :  { %v7799_v28 = vpop.permute.xlu0 %159 }
  0x84   :  { %v7801_v30 = vpop.permute.xlu1 %183 }
  0x87   :  { %v7803_v38 = vpop.permute.xlu0 %164 }
  0x88   :  { %v7806_v41 = vpop.permute.xlu1 %169 }
  0x8b   :  { %v7824_v51 = vpop.permute.xlu0 %188 }
  0x8c   :  { %v7830_v52 = vpop.permute.xlu1 %193 }
  0xc8   :  { %v6919_v29 = vpop.f32.mrf.mxu0 }
  0xc9   :  { %v135_v31 = vadd.f32 %v6919_v29, %v6385_v27 }
  0xca   :  { %v129_v32 = vpop.f32.mrf.mxu0 }
  0xcb   :  { %v149_v33 = vmax.f32 %v135_v31, 0.0  ;;  %v130_v34 = vadd.f32 %v6385_v27, %v129_v32 }
  0xcc   :  { %v6922_v35 = vpop.f32.mrf.mxu0 }
  0xcd   :  { %v148_v36 = vmax.f32 %v130_v34, 0.0  ;;  %v145_v37 = vadd.f32 %v6922_v35, %v6385_v27  ;;  %v173_v39 = vmul.f32 %v7799_v28, %v149_v33 }
  0xce   :  { %v139_v40 = vpop.f32.mrf.mxu0 }
  0xcf   :  { %v172_v42 = vmul.f32 %v7792_v25, %v148_v36  ;;  %v151_v43 = vmax.f32 %v145_v37, 0.0  ;;  %v140_v44 = vadd.f32 %v6385_v27, %v139_v40  ;;  %v7813_v47 = vadd.f32 %v7801_v30, %v173_v39 }
  0xd1   :  { %v7810_v45 = vadd.f32 %v7794_v26, %v172_v42  ;;  %v150_v46 = vmax.f32 %v140_v44, 0.0  ;;  %v175_v48 = vmul.f32 %v7806_v41, %v151_v43 }
  0xd3   :  { %v174_v49 = vmul.f32 %v7803_v38, %v150_v46  ;;  %6931 = vmatprep.mubr.msk.f32.mxu1 %vm209_vm1, %v7810_v45  ;;  %6945 = vmatprep.mubr.msk.f32.mxu0 %vm209_vm1, %v7810_v45  ;;  %v7836_v54 = vadd.f32 %v7830_v52, %v175_v48 }
  0xd4   :  { %6932 = vmatmul.mubr.msk.f32.vlgmr.msra.gmra.mxu1 %vm209_vm1, %v7813_v47  ;;  %6946 = vmatmul.mubr.msk.f32.vlgmr.msra.gmra.mxu0 %vm209_vm1, %v7813_v47 }
  0xd5   :  { %v7833_v53 = vadd.f32 %v7824_v51, %v174_v49  ;;  %6952 = vmatpush3.msra.mxu1 %v404_v24 }
  0xd6   :  { %6953 = vmatprep.subr.mxu1 %v403_v50 }
  0xd7   :  { %6934 = vmatprep.mubr.msk.f32.mxu1 %vm209_vm1, %v7833_v53  ;;  %6948 = vmatprep.mubr.msk.f32.mxu0 %vm209_vm1, %v7833_v53 }
  0xd8   :  { %6954 = vmatpush3.msra.mxu1 %v403_v50  ;;  %6949 = vmatmul.mubr.msk.f32.gmra.mxu0 %vm209_vm1, %v7836_v54 }
  0xd9   :  { %6935 = vmatmul.mubr.msk.f32.gmra.mxu1 %vm209_vm1, %v7836_v54  ;;  %6955 = vmatprep.subr.mxu1 %v402_v55 }
  0xda   :  { %6956 = vmatpush3.msra.mxu1 %v402_v55  ;;  %6959 = vmatprep.mubr.msk.f32.mxu1 %vm209_vm1, %v7810_v45 }
  0xdb   :  { %6957 = vmatprep.subr.mxu1 %v401_v56 }
  0xdc   :  { %6958 = vmatpush3.msra.mxu1 %v401_v56 }
  0xdd   :  { %6960 = vmatmul.mubr.msk.f32.vlgmr.msra.gmra.mxu1 %vm209_vm1, %v7813_v47 }
  0xde   :  { %6962 = vmatprep.mubr.msk.f32.mxu1 %vm209_vm1, %v7833_v53 }
  0xe1   :  { %6963 = vmatmul.mubr.msk.f32.gmra.mxu1 %vm209_vm1, %v7836_v54 }
 0x194   :  { %v6933_v58 = vpop.f32.mrf.mxu1  ;;  %v6947_v59 = vpop.f32.mrf.mxu0 }
 0x195   :  { %v7863_v60 = vadd.f32 %v6947_v59, %v6395_v57  ;;  %v7897_v10 = vadd.f32 %v6933_v58, %v6390_v61 }
 0x196   :  { %v288_v62 = vpop.f32.mrf.mxu1  ;;  %v382_v63 = vpop.f32.mrf.mxu0 }
 0x197   :  { %v7868_v0 = vadd.f32 %v6390_v61, %v288_v62  ;;  %v7870_v1 = vadd.f32 %v6395_v57, %v382_v63  ;;  %6965 = vmatprep.subr.msk.mxu0 %vm495_vm2, %v7863_v60 }
 0x198   :  { %v6950_v2 = vpop.f32.mrf.mxu0  ;;  %6966 = vmatpush3.xpose.msk.msra.mxu0 %vm495_vm2, %v7863_v60 }
 0x199   :  { %v6936_v3 = vpop.f32.mrf.mxu1  ;;  %v7876_v4 = vadd.f32 %v6950_v2, %v6395_v57  ;;  %6967 = vmatprep.subr.msk.mxu0 %vm495_vm2, %v7870_v1  ;;  %6969 = vmatprep.mubr.msk.f32.mxu0 %vm495_vm2, %v7868_v0 }
 0x19a   :  { %v392_v5 = vpop.f32.mrf.mxu0  ;;  %v7914_v15 = vadd.f32 %v6936_v3, %v6390_v61 }
 0x19b   :  { %v298_v6 = vpop.f32.mrf.mxu1  ;;  %v7882_v7 = vadd.f32 %v6395_v57, %v392_v5  ;;  %6972 = vmatprep.subr.msk.mxu1 %vm495_vm2, %v7876_v4 }
 0x19c   :  { %v7891_v9 = vadd.f32 %v6390_v61, %v298_v6  ;;  %6968 = vmatpush3.xpose.msk.msra.mxu0 %vm495_vm2, %v7870_v1  ;;  %6973 = vmatpush3.xpose.msk.msra.mxu1 %vm495_vm2, %v7876_v4 }
 0x19d   :  { %v6961_v11 = vpop.f32.mrf.mxu1  ;;  %6974 = vmatprep.subr.msk.mxu1 %vm495_vm2, %v7882_v7 }
 0x19e   :  { %v7902_v12 = vadd.f32 %v6961_v11, %v7889_v8  ;;  %6976 = vmatprep.mubr.msk.f32.mxu1 %vm495_vm2, %v7891_v9 }
 0x19f   :  { %v476_v13 = vpop.f32.mrf.mxu1  ;;  %6970 = vmatmul.mubr.msk.f32.vlgmr.msra.gmra.mxu0 %vm495_vm2, %v7897_v10 }
 0x1a0   :  { %v7909_v14 = vadd.f32 %v7889_v8, %v476_v13  ;;  %6979 = vmatprep.subr.mxu0 %v7902_v12  ;;  %6975 = vmatpush3.xpose.msk.msra.mxu1 %vm495_vm2, %v7882_v7 }
 0x1a1   :  { %v6964_v16 = vpop.f32.mrf.mxu1  ;;  %6980 = vmatpush3.msra.mxu0 %v7902_v12 }
 0x1a2   :  { %v7918_v17 = vadd.f32 %v6964_v16, %v7889_v8  ;;  %6981 = vmatprep.subr.mxu0 %v7909_v14 }
 0x1a3   :  { %6982 = vmatpush3.msra.mxu0 %v7909_v14  ;;  %6977 = vmatmul.mubr.msk.f32.vlgmr.msra.gmra.mxu1 %vm495_vm2, %v7914_v15  ;;  %v7925_v20 = vpop.f32.mrf.mxu1 }
 0x1a4   :  { %6986 = vmatprep.subr.mxu0 %v7918_v17 }
 0x25f   :  { %v6971_v18 = vpop.f32.mrf.mxu0 }
 0x260   :  { %v671_v19 = vmul.f32 0.35355338, %v6971_v18 }
 0x261   :  { %v574_v21 = vpop.f32.mrf.mxu0 }
 0x262   :  { %v670_v22 = vmul.f32 0.35355338, %v574_v21  ;;  %v678_v23 = vsel %vm674_vm3, %v671_v19, -inf }
 0x263   :  { %679 = vmax.xlane.f32.xlu1 %v678_v23  ;;  %v6978_v24 = vpop.f32.mrf.mxu1  ;;  %v7956_v23 = vadd.f32 %v7889_v8, %v7925_v20 }
 0x264   :  { %v675_v27 = vsel %vm674_vm3, %v670_v22, -inf  ;;  %v673_v32 = vmul.f32 0.35355338, %v6978_v24 }
 0x265   :  { %676 = vmax.xlane.f32.xlu0 %v675_v27  ;;  %v661_v29 = vpop.f32.mrf.mxu1 }
 0x266   :  { %v672_v31 = vmul.f32 0.35355338, %v661_v29  ;;  %v684_v34 = vsel %vm674_vm3, %v673_v32, -inf }
 0x268   :  { %v681_v33 = vsel %vm674_vm3, %v672_v31, -inf }
 0x269   :  { %682 = vmax.xlane.f32.xlu0 %v681_v33 }
 0x26d   :  { %685 = vmax.xlane.f32.xlu0 %v684_v34 }
 0x274   :  { %888 = vrot.lane.b32.xlu1 %v7863_v60, %s7679_s28 }
 0x2ec   :  { %v680_v35 = vpop.xlane.xlu1 %679 }
 0x2ed   :  { %v688_v36 = vsub.f32 %v671_v19, %v680_v35 }
 0x2ee   :  { %v677_v37 = vpop.xlane.xlu0 %676 }
 0x2ef   :  { %v693_v39 = vmul.f32 1.442695, %v688_v36  ;;  %v687_v40 = vsub.f32 %v670_v22, %v677_v37 }
 0x2f0   :  { %v889_v2 = vpop.permute.xlu1 %888 }
 0x2f1   :  { %7474 = vpow2.f32 %v693_v39  ;;  %v691_v42 = vmul.f32 1.442695, %v687_v40 }
 0x2f2   :  { %v683_v43 = vpop.xlane.xlu0 %682 }
 0x2f3   :  { %7476 = vpow2.f32 %v691_v42  ;;  %v689_v59 = vsub.f32 %v672_v31, %v683_v43 }
 0x2f5   :  { %v695_v61 = vmul.f32 1.442695, %v689_v59 }
 0x2f6   :  { %v686_v44 = vpop.xlane.xlu0 %685 }
 0x2f7   :  { %v690_v46 = vsub.f32 %v673_v32, %v686_v44 }
 0x2f9   :  { %v697_v48 = vmul.f32 1.442695, %v690_v46 }
 0x2fb   :  { %7478 = vpow2.f32 %v697_v48 }
 0x2fc   :  { %7480 = vpow2.f32 %v695_v61 }
 0x2fe   :  { %v7475_v49 = vpop.eup %7474 }
 0x2ff   :  { %v702_v50 = vsel %vm674_vm3, %v7475_v49, 0.0 }
 0x300   :  { %v7477_v55 = vpop.eup %7476  ;;  %703 = vadd.xlane.f32.xlu0 %v702_v50 }
 0x301   :  { %v699_v56 = vsel %vm674_vm3, %v7477_v55, 0.0 }
 0x302   :  { %700 = vadd.xlane.f32.xlu1 %v699_v56 }
 0x308   :  { %v7479_v57 = vpop.eup %7478 }
 0x309   :  { %v708_v58 = vsel %vm674_vm3, %v7479_v57, 0.0  ;;  %v7481_v62 = vpop.eup %7480 }
 0x30a   :  { %709 = vadd.xlane.f32.xlu0 %v708_v58  ;;  %v705_v63 = vsel %vm674_vm3, %v7481_v62, 0.0 }
 0x313   :  { %979 = vrot.lane.b32.xlu1 %v7876_v4, %s7679_s28 }
 0x317   :  { %882 = vrot.lane.b32.xlu1 %v7868_v0, %s7679_s28 }
 0x320   :  { %886 = vrot.lane.b32.xlu0 %v7870_v1, %s7679_s28 }
 0x324   :  { %884 = vrot.lane.b32.xlu0 %v7897_v10, %s7679_s28 }
 0x328   :  { %973 = vrot.lane.b32.xlu0 %v7891_v9, %s7679_s28 }
 0x33b   :  { %706 = vadd.xlane.f32.xlu1 %v705_v63 }
 0x34c   :  { %977 = vrot.lane.b32.xlu1 %v7882_v7, %s7679_s28 }
 0x350   :  { %975 = vrot.lane.b32.xlu1 %v7914_v15, %s7679_s28 }
 0x389   :  { %v704_v3 = vpop.xlane.xlu0 %703 }
 0x38a   :  { %7482 = vrcp.f32 %v704_v3 }
 0x38b   :  { %v701_v5 = vpop.xlane.xlu1 %700 }
 0x38c   :  { %7484 = vrcp.f32 %v701_v5 }
 0x38f   :  { %v980_v6 = vpop.permute.xlu1 %979 }
 0x390   :  { %7000 = vmatprep.subr.msk.mxu1 %vm495_vm2, %v980_v6 }
 0x391   :  { %7001 = vmatpush3.xpose.msk.msra.mxu1 %vm495_vm2, %v980_v6 }
 0x393   :  { %v710_v11 = vpop.xlane.xlu0 %709  ;;  %v883_v27 = vpop.permute.xlu1 %882 }
 0x394   :  { %7486 = vrcp.f32 %v710_v11 }
 0x397   :  { %v887_v13 = vpop.permute.xlu0 %886  ;;  %v7483_v16 = vpop.eup %7482 }
 0x398   :  { %v716_v22 = vmul.f32 %v7483_v16, %v7475_v49 }
 0x399   :  { %v7485_v18 = vpop.eup %7484 }
 0x39a   :  { %v715_v19 = vmul.f32 %v7485_v18, %v7477_v55 }
 0x39b   :  { %v885_v21 = vpop.permute.xlu0 %884 }
 0x39c   :  { %6983 = vmatprep.mubr.msk.f32.mxu0 %vm674_vm3, %v715_v19 }
 0x39d   :  { %6984 = vmatmul.mubr.msk.f32.vlgmr.msra.gmra.mxu0 %vm674_vm3, %v716_v22 }
 0x39e   :  { %6987 = vmatpush3.msra.mxu0 %v7918_v17 }
 0x39f   :  { %6988 = vmatprep.subr.mxu0 %v7956_v23  ;;  %v974_v24 = vpop.permute.xlu0 %973 }
 0x3a0   :  { %6989 = vmatpush3.msra.mxu0 %v7956_v23  ;;  %7004 = vmatprep.mubr.msk.f32.mxu1 %vm495_vm2, %v974_v24 }
 0x3a1   :  { %6993 = vmatprep.subr.msk.mxu0 %vm495_vm2, %v889_v2  ;;  %v7487_v20 = vpop.eup %7486 }
 0x3a2   :  { %v718_v34 = vmul.f32 %v7487_v20, %v7479_v57 }
 0x3c4   :  { %v707_v29 = vpop.xlane.xlu1 %706 }
 0x3c5   :  { %7488 = vrcp.f32 %v707_v29 }
 0x3c8   :  { %v978_v31 = vpop.permute.xlu1 %977 }
 0x3c9   :  { %7002 = vmatprep.subr.msk.mxu1 %vm495_vm2, %v978_v31 }
 0x3ca   :  { %7003 = vmatpush3.xpose.msk.msra.mxu1 %vm495_vm2, %v978_v31 }
 0x3cc   :  { %v976_v8 = vpop.permute.xlu1 %975 }
 0x3cd   :  { %7005 = vmatmul.mubr.msk.f32.vlgmr.msra.gmra.mxu1 %vm495_vm2, %v976_v8 }
 0x3d2   :  { %v7489_v32 = vpop.eup %7488 }
 0x3d3   :  { %v717_v33 = vmul.f32 %v7489_v32, %v7481_v62 }
 0x3d5   :  { %6990 = vmatprep.mubr.msk.f32.mxu0 %vm674_vm3, %v717_v33 }
 0x3d6   :  { %6991 = vmatmul.mubr.msk.f32.vlgmr.msra.gmra.mxu0 %vm674_vm3, %v718_v34 }
 0x3d7   :  { %6994 = vmatpush3.xpose.msk.msra.mxu0 %vm495_vm2, %v889_v2  ;;  %6997 = vmatprep.mubr.msk.f32.mxu0 %vm495_vm2, %v883_v27 }
 0x3d8   :  { %6995 = vmatprep.subr.msk.mxu0 %vm495_vm2, %v887_v13 }
 0x3db   :  { %6996 = vmatpush3.xpose.msk.msra.mxu0 %vm495_vm2, %v887_v13 }
 0x3de   :  { %6998 = vmatmul.mubr.msk.f32.vlgmr.msra.gmra.mxu0 %vm495_vm2, %v885_v21 }
 0x45d   :  { %v7974_v35 = vpop.f32.mrf.mxu0 }
 0x45f   :  { %v7976_v36 = vpop.f32.mrf.mxu0 }
 0x48d   :  { %v7006_v39 = vpop.f32.mrf.mxu1 }
 0x48e   :  { %v1067_v56 = vmul.f32 0.35355338, %v7006_v39 }
 0x48f   :  { %v1055_v44 = vpop.f32.mrf.mxu1 }
 0x490   :  { %v1066_v50 = vmul.f32 0.35355338, %v1055_v44  ;;  %v1077_v58 = vsel %vm674_vm3, %v1067_v56, -inf }
 0x492   :  { %v1074_v57 = vsel %vm674_vm3, %v1066_v50, -inf }
 0x496   :  { %v7978_v37 = vpop.f32.mrf.mxu0 }
 0x498   :  { %v7980_v40 = vpop.f32.mrf.mxu0 }
 0x49e   :  { %v6999_v42 = vpop.f32.mrf.mxu0 }
 0x49f   :  { %v1065_v43 = vmul.f32 0.35355338, %v6999_v42 }
 0x4a0   :  { %v964_v46 = vpop.f32.mrf.mxu0 }
 0x4a1   :  { %v1064_v48 = vmul.f32 0.35355338, %v964_v46  ;;  %v1071_v49 = vsel %vm674_vm3, %v1065_v43, -inf }
 0x4a2   :  { %1072 = vmax.xlane.f32.xlu1 %v1071_v49 }
 0x4a3   :  { %v1068_v55 = vsel %vm674_vm3, %v1064_v48, -inf }
 0x4a4   :  { %1069 = vmax.xlane.f32.xlu0 %v1068_v55 }
 0x4a8   :  { %1075 = vmax.xlane.f32.xlu0 %v1074_v57  ;;  %v881_v57 = vld [vmem:[%s8901_s2 + $0xf8] sm:$0xff] }
 0x4ac   :  { %1078 = vmax.xlane.f32.xlu0 %v1077_v58 }
 0x52b   :  { %v1073_v61 = vpop.xlane.xlu1 %1072 }
 0x52c   :  { %v1081_v2 = vsub.f32 %v1065_v43, %v1073_v61  ;;  %v1290_v43 = vld [vmem:[%s8901_s2 + $0x100] sm:$0xff] }
 0x52d   :  { %v1070_v59 = vpop.xlane.xlu0 %1069 }
 0x52e   :  { %v1086_v11 = vmul.f32 1.442695, %v1081_v2  ;;  %v1080_v27 = vsub.f32 %v1064_v48, %v1070_v59 }
 0x530   :  { %v1084_v29 = vmul.f32 1.442695, %v1080_v27 }
 0x531   :  { %v1076_v62 = vpop.xlane.xlu0 %1075 }
 0x532   :  { %v1082_v63 = vsub.f32 %v1066_v50, %v1076_v62 }
 0x534   :  { %v1088_v3 = vmul.f32 1.442695, %v1082_v63 }
 0x535   :  { %v1079_v5 = vpop.xlane.xlu0 %1078 }
 0x536   :  { %7490 = vpow2.f32 %v1088_v3  ;;  %v1083_v6 = vsub.f32 %v1067_v56, %v1079_v5 }
 0x538   :  { %v1090_v13 = vmul.f32 1.442695, %v1083_v6 }
 0x53a   :  { %7492 = vpow2.f32 %v1090_v13 }
 0x53b   :  { %7494 = vpow2.f32 %v1086_v11 }
 0x53c   :  { %7496 = vpow2.f32 %v1084_v29 }
 0x543   :  { %v7491_v16 = vpop.eup %7490 }
 0x544   :  { %v1098_v18 = vsel %vm674_vm3, %v7491_v16, 0.0 }
 0x545   :  { %1099 = vadd.xlane.f32.xlu1 %v1098_v18 }
 0x547   :  { %v7493_v19 = vpop.eup %7492 }
 0x548   :  { %v1101_v21 = vsel %vm674_vm3, %v7493_v19, 0.0  ;;  %v7988_v22 = vpop.eup %7494 }
 0x549   :  { %1102 = vadd.xlane.f32.xlu0 %v1101_v21  ;;  %v1095_v24 = vsel %vm674_vm3, %v7988_v22, 0.0  ;;  %v7497_v31 = vpop.eup %7496 }
 0x54a   :  { %v1092_v8 = vsel %vm674_vm3, %v7497_v31, 0.0 }
 0x54d   :  { %1096 = vadd.xlane.f32.xlu0 %v1095_v24 }
 0x556   :  { %1116 = vrot.lane.b32.xlu1 %v7902_v12, %s7679_s28 }
 0x55a   :  { %1205 = vrot.lane.b32.xlu1 %v7918_v17, %s7679_s28 }
 0x563   :  { %1114 = vrot.lane.b32.xlu0 %v7909_v14, %s7679_s28 }
 0x567   :  { %1491 = vrot.lane.b32.xlu0 %v7863_v60, %s7680_s29 }
 0x56b   :  { %1582 = vrot.lane.b32.xlu0 %v7876_v4, %s7680_s29 }
 0x56f   :  { %1487 = vrot.lane.b32.xlu0 %v7897_v10, %s7680_s29 }
 0x573   :  { %1576 = vrot.lane.b32.xlu0 %v7891_v9, %s7680_s29 }
 0x57e   :  { %1093 = vadd.xlane.f32.xlu1 %v1092_v8 }
 0x58f   :  { %1203 = vrot.lane.b32.xlu1 %v7956_v23, %s7679_s28 }
 0x593   :  { %1489 = vrot.lane.b32.xlu1 %v7870_v1, %s7680_s29 }
 0x597   :  { %1485 = vrot.lane.b32.xlu1 %v7868_v0, %s7680_s29 }
 0x59b   :  { %1580 = vrot.lane.b32.xlu1 %v7882_v7, %s7680_s29 }
 0x59f   :  { %1578 = vrot.lane.b32.xlu1 %v7914_v15, %s7680_s29 }
 0x5ce   :  { %v1100_v20 = vpop.xlane.xlu1 %1099 }
 0x5cf   :  { %7498 = vrcp.f32 %v1100_v20 }
 0x5d2   :  { %v1117_v32 = vpop.permute.xlu1 %1116  ;;  %v1103_v33 = vpop.xlane.xlu0 %1102 }
 0x5d3   :  { %7007 = vmatprep.subr.mxu0 %v1117_v32  ;;  %7500 = vrcp.f32 %v1103_v33 }
 0x5d4   :  { %7008 = vmatpush3.msra.mxu0 %v1117_v32 }
 0x5d6   :  { %v1206_v34 = vpop.permute.xlu1 %1205  ;;  %v1097_v39 = vpop.xlane.xlu0 %1096 }
 0x5d7   :  { %7014 = vmatprep.subr.mxu1 %v1206_v34  ;;  %7502 = vrcp.f32 %v1097_v39 }
 0x5d8   :  { %7015 = vmatpush3.msra.mxu1 %v1206_v34 }
 0x5da   :  { %v1115_v42 = vpop.permute.xlu0 %1114 }
 0x5db   :  { %7009 = vmatprep.subr.mxu0 %v1115_v42 }
 0x5dc   :  { %v7499_v44 = vpop.eup %7498  ;;  %7010 = vmatpush3.msra.mxu0 %v1115_v42 }
 0x5dd   :  { %v1110_v46 = vmul.f32 %v7499_v44, %v7491_v16  ;;  %7021 = vmatprep.subr.mxu0 %v1290_v43 }
 0x5de   :  { %v1492_v48 = vpop.permute.xlu0 %1491 }
 0x5df   :  { %7018 = vmatprep.mubr.msk.f32.mxu1 %vm674_vm3, %v1110_v46 }
 0x5e0   :  { %v7501_v50 = vpop.eup %7500 }
 0x5e1   :  { %v1111_v58 = vmul.f32 %v7501_v50, %v7493_v19 }
 0x5e2   :  { %v1583_v55 = vpop.permute.xlu0 %1582 }
 0x5e4   :  { %v7503_v63 = vpop.eup %7502 }
 0x5e5   :  { %v1109_v6 = vmul.f32 %v7503_v63, %v7988_v22 }
 0x5e6   :  { %v1488_v61 = vpop.permute.xlu0 %1487 }
 0x5ea   :  { %v1577_v3 = vpop.permute.xlu0 %1576 }
 0x607   :  { %v1094_v49 = vpop.xlane.xlu1 %1093 }
 0x608   :  { %7504 = vrcp.f32 %v1094_v49 }
 0x60b   :  { %v1204_v56 = vpop.permute.xlu1 %1203 }
 0x60c   :  { %7016 = vmatprep.subr.mxu1 %v1204_v56 }
 0x60d   :  { %7017 = vmatpush3.msra.mxu1 %v1204_v56 }
 0x60e   :  { %7019 = vmatmul.mubr.msk.f32.vlgmr.msra.gmra.mxu1 %vm674_vm3, %v1111_v58  ;;  %7029 = vmatprep.subr.mxu1 %v881_v57 }
 0x60f   :  { %v1490_v59 = vpop.permute.xlu1 %1489  ;;  %7030 = vmatpush3.msra.mxu1 %v881_v57  ;;  %7031 = vmatprep.mubr.msk.f32.mxu1 %vm495_vm2, %v7976_v36 }
 0x610   :  { %7044 = vmatprep.subr.msk.mxu1 %vm495_vm2, %v1583_v55 }
 0x612   :  { %7032 = vmatmul.mubr.msk.f32.vlgmr.msra.gmra.mxu1 %vm495_vm2, %v7974_v35 }
 0x613   :  { %7045 = vmatpush3.xpose.msk.msra.mxu1 %vm495_vm2, %v1583_v55  ;;  %v1486_v62 = vpop.permute.xlu1 %1485  ;;  %7034 = vmatprep.mubr.msk.f32.mxu1 %vm495_vm2, %v7980_v40 }
 0x615   :  { %v7505_v2 = vpop.eup %7504 }
 0x616   :  { %7035 = vmatmul.mubr.msk.f32.gmra.mxu1 %vm495_vm2, %v7978_v37  ;;  %v1108_v5 = vmul.f32 %v7505_v2, %v7497_v31 }
 0x617   :  { %v1581_v36 = vpop.permute.xlu1 %1580  ;;  %7048 = vmatprep.mubr.msk.f32.mxu1 %vm495_vm2, %v1577_v3 }
 0x618   :  { %7011 = vmatprep.mubr.msk.f32.mxu0 %vm674_vm3, %v1108_v5  ;;  %7046 = vmatprep.subr.msk.mxu1 %vm495_vm2, %v1581_v36 }
 0x619   :  { %7012 = vmatmul.mubr.msk.f32.vlgmr.msra.gmra.mxu0 %vm674_vm3, %v1109_v6  ;;  %7047 = vmatpush3.xpose.msk.msra.mxu1 %vm495_vm2, %v1581_v36 }
 0x61a   :  { %7022 = vmatpush3.msra.mxu0 %v1290_v43 }
 0x61b   :  { %7037 = vmatprep.subr.msk.mxu0 %vm495_vm2, %v1492_v48  ;;  %v1579_v35 = vpop.permute.xlu1 %1578 }
 0x61c   :  { %7049 = vmatmul.mubr.msk.f32.vlgmr.msra.gmra.mxu1 %vm495_vm2, %v1579_v35 }
 0x6ce   :  { %v7020_v37 = vpop.f32.mrf.mxu1 }
 0x6d0   :  { %v1281_v13 = vpop.f32.mrf.mxu1 }
 0x6d2   :  { %v8052_v16 = vpop.f32.mrf.mxu1 }
 0x6d4   :  { %v8054_v18 = vpop.f32.mrf.mxu1 }
 0x6d6   :  { %v8056_v19 = vpop.f32.mrf.mxu1 }
 0x6d8   :  { %v8062_v24 = vpop.f32.mrf.mxu1 }
 0x6d9   :  { %v7013_v40 = vpop.f32.mrf.mxu0 }
 0x6db   :  { %v1192_v11 = vpop.f32.mrf.mxu0 }
 0x6dc   :  { %7023 = vmatprep.mubr.msk.f32.mxu0 %vm495_vm2, %v1192_v11  ;;  %v7050_v29 = vpop.f32.mrf.mxu1 }
 0x6dd   :  { %7024 = vmatmul.mubr.msk.f32.vlgmr.msra.gmra.mxu0 %vm495_vm2, %v7013_v40  ;;  %v1670_v44 = vmul.f32 0.35355338, %v7050_v29 }
 0x6de   :  { %7038 = vmatpush3.xpose.msk.msra.mxu0 %vm495_vm2, %v1492_v48  ;;  %7026 = vmatprep.mubr.msk.f32.mxu0 %vm495_vm2, %v1281_v13  ;;  %v1658_v32 = vpop.f32.mrf.mxu1 }
 0x6df   :  { %7039 = vmatprep.subr.msk.mxu0 %vm495_vm2, %v1490_v59  ;;  %v1669_v42 = vmul.f32 0.35355338, %v1658_v32  ;;  %v1680_v48 = vsel %vm674_vm3, %v1670_v44, -inf }
 0x6e1   :  { %7027 = vmatmul.mubr.msk.f32.gmra.mxu0 %vm495_vm2, %v7020_v37  ;;  %v1677_v46 = vsel %vm674_vm3, %v1669_v42, -inf }
 0x6e2   :  { %7040 = vmatpush3.xpose.msk.msra.mxu0 %vm495_vm2, %v1490_v59  ;;  %7041 = vmatprep.mubr.msk.f32.mxu0 %vm495_vm2, %v1486_v62 }
 0x6e5   :  { %7042 = vmatmul.mubr.msk.f32.vlgmr.msra.gmra.mxu0 %vm495_vm2, %v1488_v61 }
 0x79d   :  { %v8058_v21 = vpop.f32.mrf.mxu0 }
 0x79f   :  { %v8060_v22 = vpop.f32.mrf.mxu0 }
 0x7a1   :  { %v8064_v27 = vpop.f32.mrf.mxu0 }
 0x7a3   :  { %v8066_v31 = vpop.f32.mrf.mxu0 }
 0x7a5   :  { %v7043_v8 = vpop.f32.mrf.mxu0 }
 0x7a6   :  { %v1668_v20 = vmul.f32 0.35355338, %v7043_v8 }
 0x7a7   :  { %v1567_v33 = vpop.f32.mrf.mxu0 }
 0x7a8   :  { %v1667_v34 = vmul.f32 0.35355338, %v1567_v33  ;;  %v1674_v39 = vsel %vm674_vm3, %v1668_v20, -inf }
 0x7a9   :  { %1675 = vmax.xlane.f32.xlu1 %v1674_v39 }
 0x7aa   :  { %v1671_v43 = vsel %vm674_vm3, %v1667_v34, -inf }
 0x7ab   :  { %1672 = vmax.xlane.f32.xlu0 %v1671_v43 }
 0x7af   :  { %1678 = vmax.xlane.f32.xlu0 %v1677_v46 }
 0x7b3   :  { %1681 = vmax.xlane.f32.xlu0 %v1680_v48 }
 0x832   :  { %v1676_v50 = vpop.xlane.xlu1 %1675 }
 0x833   :  { %v1684_v57 = vsub.f32 %v1668_v20, %v1676_v50 }
 0x834   :  { %v1673_v49 = vpop.xlane.xlu0 %1672 }
 0x835   :  { %v1689_v62 = vmul.f32 1.442695, %v1684_v57  ;;  %v1683_v37 = vsub.f32 %v1667_v34, %v1673_v49 }
 0x837   :  { %v1687_v40 = vmul.f32 1.442695, %v1683_v37 }
 0x838   :  { %v1679_v55 = vpop.xlane.xlu0 %1678 }
 0x839   :  { %v1685_v56 = vsub.f32 %v1669_v42, %v1679_v55 }
 0x83b   :  { %v1691_v58 = vmul.f32 1.442695, %v1685_v56 }
 0x83c   :  { %v1682_v59 = vpop.xlane.xlu0 %1681 }
 0x83d   :  { %7506 = vpow2.f32 %v1691_v58  ;;  %v1686_v61 = vsub.f32 %v1670_v44, %v1682_v59 }
 0x83f   :  { %v1693_v63 = vmul.f32 1.442695, %v1686_v61 }
 0x841   :  { %7508 = vpow2.f32 %v1693_v63 }
 0x842   :  { %7510 = vpow2.f32 %v1689_v62 }
 0x843   :  { %7512 = vpow2.f32 %v1687_v40 }
 0x84a   :  { %v7507_v2 = vpop.eup %7506 }
 0x84b   :  { %v1701_v3 = vsel %vm674_vm3, %v7507_v2, 0.0 }
 0x84c   :  { %1702 = vadd.xlane.f32.xlu1 %v1701_v3 }
 0x84e   :  { %v7509_v5 = vpop.eup %7508 }
 0x84f   :  { %v1704_v36 = vsel %vm674_vm3, %v7509_v5, 0.0  ;;  %v8074_v6 = vpop.eup %7510 }
 0x850   :  { %1705 = vadd.xlane.f32.xlu0 %v1704_v36  ;;  %v1698_v35 = vsel %vm674_vm3, %v8074_v6, 0.0  ;;  %v7513_v11 = vpop.eup %7512 }
 0x851   :  { %v1695_v13 = vsel %vm674_vm3, %v7513_v11, 0.0 }
 0x854   :  { %1699 = vadd.xlane.f32.xlu0 %v1698_v35 }
 0x85d   :  { %1717 = vrot.lane.b32.xlu1 %v7902_v12, %s7680_s29 }
 0x861   :  { %1804 = vrot.lane.b32.xlu1 %v7918_v17, %s7680_s29 }
 0x86a   :  { %1715 = vrot.lane.b32.xlu0 %v7909_v14, %s7680_s29 }
 0x86e   :  { %1997 = vrot.lane.b32.xlu0 %v7863_v60, %s7681_s9 }
 0x872   :  { %2088 = vrot.lane.b32.xlu0 %v7876_v4, %s7681_s9 }
 0x876   :  { %1993 = vrot.lane.b32.xlu0 %v7897_v10, %s7681_s9 }
 0x87a   :  { %2082 = vrot.lane.b32.xlu0 %v7891_v9, %s7681_s9 }
 0x885   :  { %1696 = vadd.xlane.f32.xlu1 %v1695_v13 }
 0x896   :  { %1802 = vrot.lane.b32.xlu1 %v7956_v23, %s7680_s29 }
 0x89a   :  { %1995 = vrot.lane.b32.xlu1 %v7870_v1, %s7681_s9 }
 0x89e   :  { %1991 = vrot.lane.b32.xlu1 %v7868_v0, %s7681_s9  ;;  %v1889_v0 = vld [vmem:[%s8901_s2 + $0x108] sm:$0xff] }
 0x8a2   :  { %2086 = vrot.lane.b32.xlu1 %v7882_v7, %s7681_s9 }
 0x8a6   :  { %2084 = vrot.lane.b32.xlu1 %v7914_v15, %s7681_s9 }
 0x8d5   :  { %v1703_v60 = vpop.xlane.xlu1 %1702 }
 0x8d6   :  { %7514 = vrcp.f32 %v1703_v60 }
 0x8d9   :  { %v1718_v4 = vpop.permute.xlu1 %1717  ;;  %v1706_v9 = vpop.xlane.xlu0 %1705 }
 0x8da   :  { %7051 = vmatprep.subr.mxu0 %v1718_v4  ;;  %7516 = vrcp.f32 %v1706_v9  ;;  %v1472_v9 = vadd.f32 %v8052_v16, %v8058_v21 }
 0x8db   :  { %7052 = vmatpush3.msra.mxu0 %v1718_v4 }
 0x8dd   :  { %v1805_v10 = vpop.permute.xlu1 %1804  ;;  %v1700_v29 = vpop.xlane.xlu0 %1699 }
 0x8de   :  { %7058 = vmatprep.subr.mxu1 %v1805_v10  ;;  %7518 = vrcp.f32 %v1700_v29  ;;  %v1467_v29 = vadd.f32 %v8054_v18, %v8060_v22 }
 0x8df   :  { %7059 = vmatpush3.msra.mxu1 %v1805_v10 }
 0x8e1   :  { %v1716_v1 = vpop.permute.xlu0 %1715 }
 0x8e2   :  { %7053 = vmatprep.subr.mxu0 %v1716_v1 }
 0x8e3   :  { %v7515_v7 = vpop.eup %7514  ;;  %7054 = vmatpush3.msra.mxu0 %v1716_v1 }
 0x8e4   :  { %v1713_v8 = vmul.f32 %v7515_v7, %v7507_v2  ;;  %7065 = vmatprep.subr.mxu0 %v1889_v0 }
 0x8e5   :  { %v1998_v32 = vpop.permute.xlu0 %1997 }
 0x8e6   :  { %7062 = vmatprep.mubr.msk.f32.mxu1 %vm674_vm3, %v1713_v8  ;;  %v1482_v8 = vadd.f32 %v8056_v19, %v8064_v27 }
 0x8e7   :  { %v7517_v20 = vpop.eup %7516 }
 0x8e8   :  { %v1714_v34 = vmul.f32 %v7517_v20, %v7509_v5 }
 0x8e9   :  { %v2089_v39 = vpop.permute.xlu0 %2088 }
 0x8eb   :  { %v7519_v44 = vpop.eup %7518 }
 0x8ec   :  { %v1712_v50 = vmul.f32 %v7519_v44, %v8074_v6 }
 0x8ed   :  { %v1994_v48 = vpop.permute.xlu0 %1993 }
 0x8f1   :  { %v2083_v36 = vpop.permute.xlu0 %2082 }
 0x90e   :  { %v1697_v15 = vpop.xlane.xlu1 %1696 }
 0x90f   :  { %7520 = vrcp.f32 %v1697_v15 }
 0x912   :  { %v1803_v33 = vpop.permute.xlu1 %1802 }
 0x913   :  { %7060 = vmatprep.subr.mxu1 %v1803_v33 }
 0x914   :  { %7061 = vmatpush3.msra.mxu1 %v1803_v33 }
 0x915   :  { %7063 = vmatmul.mubr.msk.f32.vlgmr.msra.gmra.mxu1 %vm674_vm3, %v1714_v34  ;;  %7073 = vmatprep.subr.msk.mxu1 %vm495_vm2, %v1998_v32 }
 0x916   :  { %v1996_v42 = vpop.permute.xlu1 %1995  ;;  %7074 = vmatpush3.xpose.msk.msra.mxu1 %vm495_vm2, %v1998_v32 }
 0x917   :  { %7075 = vmatprep.subr.msk.mxu1 %vm495_vm2, %v1996_v42 }
 0x91a   :  { %v1992_v43 = vpop.permute.xlu1 %1991  ;;  %7076 = vmatpush3.xpose.msk.msra.mxu1 %vm495_vm2, %v1996_v42 }
 0x91b   :  { %7077 = vmatprep.mubr.msk.f32.mxu1 %vm495_vm2, %v1992_v43 }
 0x91c   :  { %v7521_v46 = vpop.eup %7520 }
 0x91d   :  { %7078 = vmatmul.mubr.msk.f32.vlgmr.msra.gmra.mxu1 %vm495_vm2, %v1994_v48  ;;  %v1711_v49 = vmul.f32 %v7521_v46, %v7513_v11 }
 0x91e   :  { %v2087_v5 = vpop.permute.xlu1 %2086 }
 0x91f   :  { %7055 = vmatprep.mubr.msk.f32.mxu0 %vm674_vm3, %v1711_v49 }
 0x920   :  { %7056 = vmatmul.mubr.msk.f32.vlgmr.msra.gmra.mxu0 %vm674_vm3, %v1712_v50 }
 0x921   :  { %7066 = vmatpush3.msra.mxu0 %v1889_v0 }
 0x922   :  { %7080 = vmatprep.subr.msk.mxu0 %vm495_vm2, %v2089_v39  ;;  %v2085_v6 = vpop.permute.xlu1 %2084 }
 0x9d5   :  { %v7064_v55 = vpop.f32.mrf.mxu1 }
 0x9d7   :  { %v1880_v56 = vpop.f32.mrf.mxu1 }
 0x9dd   :  { %v7079_v57 = vpop.f32.mrf.mxu1 }
 0x9de   :  { %v2174_v58 = vmul.f32 0.35355338, %v7079_v57 }
 0x9df   :  { %v2073_v59 = vpop.f32.mrf.mxu1 }
 0x9e0   :  { %v2173_v61 = vmul.f32 0.35355338, %v2073_v59  ;;  %v7057_v62 = vpop.f32.mrf.mxu0  ;;  %v2180_v63 = vsel %vm674_vm3, %v2174_v58, -inf }
 0x9e1   :  { %2181 = vmax.xlane.f32.xlu1 %v2180_v63  ;;  %v2579_v63 = vld [vmem:[%s8900_s1] sm:$0xff] }
 0x9e2   :  { %v1793_v2 = vpop.f32.mrf.mxu0  ;;  %v2177_v3 = vsel %vm674_vm3, %v2173_v61, -inf }
 0x9e3   :  { %7067 = vmatprep.mubr.msk.f32.mxu0 %vm495_vm2, %v1793_v2  ;;  %2178 = vmax.xlane.f32.xlu0 %v2177_v3 }
 0x9e4   :  { %7068 = vmatmul.mubr.msk.f32.vlgmr.msra.gmra.mxu0 %vm495_vm2, %v7057_v62  ;;  %v2580_v62 = vld [vmem:[%s8900_s1 + $0x8] sm:$0xff] }
 0x9e5   :  { %7081 = vmatpush3.xpose.msk.msra.mxu0 %vm495_vm2, %v2089_v39  ;;  %7070 = vmatprep.mubr.msk.f32.mxu0 %vm495_vm2, %v1880_v56 }
 0x9e6   :  { %7082 = vmatprep.subr.msk.mxu0 %vm495_vm2, %v2087_v5 }
 0x9e8   :  { %7071 = vmatmul.mubr.msk.f32.gmra.mxu0 %vm495_vm2, %v7064_v55 }
 0x9e9   :  { %7083 = vmatpush3.xpose.msk.msra.mxu0 %vm495_vm2, %v2087_v5  ;;  %7084 = vmatprep.mubr.msk.f32.mxu0 %vm495_vm2, %v2083_v36 }
 0x9ec   :  { %7085 = vmatmul.mubr.msk.f32.vlgmr.msra.gmra.mxu0 %vm495_vm2, %v2085_v6 }
 0xa6a   :  { %v2182_v60 = vpop.xlane.xlu1 %2181 }
 0xa6b   :  { %v2190_v4 = vsub.f32 %v2174_v58, %v2182_v60 }
 0xa6c   :  { %v2179_v35 = vpop.xlane.xlu0 %2178 }
 0xa6d   :  { %v2189_v37 = vsub.f32 %v2173_v61, %v2179_v35  ;;  %v2195_v1 = vmul.f32 1.442695, %v2190_v4 }
 0xa6f   :  { %v2193_v40 = vmul.f32 1.442695, %v2189_v37 }
 0xa71   :  { %7522 = vpow2.f32 %v2193_v40  ;;  %v2581_v40 = vlaneseq }
 0xa72   :  { %7524 = vpow2.f32 %v2195_v1  ;;  %v2606_v1 = vld [vmem:[%s8901_s2 + $0x80] sm:$0xff] }
 0xa73   :  { %v2582_v4 = vand.u32 127, %v2581_v40 }
 0xa7e   :  { %v7523_v11 = vpop.eup %7522 }
 0xa7f   :  { %v2201_v13 = vsel %vm674_vm3, %v7523_v11, 0.0  ;;  %v7525_v27 = vpop.eup %7524 }
 0xa80   :  { %2202 = vadd.xlane.f32.xlu1 %v2201_v13  ;;  %v2204_v39 = vsel %vm674_vm3, %v7525_v27, 0.0 }
 0xa91   :  { %2223 = vrot.lane.b32.xlu1 %v7902_v12, %s7681_s9 }
 0xa95   :  { %2310 = vrot.lane.b32.xlu1 %v7918_v17, %s7681_s9  ;;  %v1477_v17 = vadd.f32 %v8062_v24, %v8066_v31 }
 0xaa4   :  { %v7069_v10 = vpop.f32.mrf.mxu0 }
 0xaa5   :  { %v8138_v0 = vadd.f32 %v7069_v10, %v1472_v9  ;;  %v2607_v10 = vld [vmem:[%s8901_s2 + $0x88] sm:$0xff] }
 0xaa6   :  { %v1968_v7 = vpop.f32.mrf.mxu0 }
 0xaa7   :  { %v8142_v12 = vadd.f32 %v1968_v7, %v1467_v29  ;;  %v7682_v29 = vmov 1.0   ;;  %v2605_v7 = vld [vmem:[%s8901_s2 + $0x78] sm:$0xff] }
 0xaa8   :  { %v7072_v15 = vpop.f32.mrf.mxu0 }
 0xaa9   :  { %v8146_v20 = vadd.f32 %v7072_v15, %v1482_v8  ;;  %v2604_v8 = vld [vmem:[%s8901_s2 + $0x70] sm:$0xff]  ;;  %v2603_v15 = vld [vmem:[%s8901_s2 + $0x68] sm:$0xff] }
 0xaaa   :  { %v1978_v16 = vpop.f32.mrf.mxu0 }
 0xaab   :  { %v8148_v21 = vadd.f32 %v1978_v16, %v1477_v17  ;;  %v2602_v17 = vld [vmem:[%s8901_s2 + $0x60] sm:$0xff]  ;;  %v2601_v16 = vld [vmem:[%s8901_s2 + $0x58] sm:$0xff] }
 0xaac   :  { %v7086_v18 = vpop.f32.mrf.mxu0 }
 0xaad   :  { %v2176_v33 = vmul.f32 0.35355338, %v7086_v18  ;;  %v2600_v18 = vld [vmem:[%s8901_s2 + $0x50] sm:$0xff] }
 0xaae   :  { %v2164_v22 = vpop.f32.mrf.mxu0 }
 0xaaf   :  { %v2175_v32 = vmul.f32 0.35355338, %v2164_v22  ;;  %v2186_v19 = vsel %vm674_vm3, %v2176_v33, -inf  ;;  %v2599_v22 = vld [vmem:[%s8901_s2 + $0x48] sm:$0xff] }
 0xab1   :  { %v2183_v34 = vsel %vm674_vm3, %v2175_v32, -inf }
 0xab2   :  { %2184 = vmax.xlane.f32.xlu0 %v2183_v34  ;;  %v2596_v34 = vld [vmem:[%s8901_s2 + $0x30] sm:$0xff] }
 0xab6   :  { %2187 = vmax.xlane.f32.xlu0 %v2186_v19  ;;  %v2595_v19 = vld [vmem:[%s8901_s2 + $0x28] sm:$0xff] }
 0xaba   :  { %2205 = vadd.xlane.f32.xlu0 %v2204_v39  ;;  %v2593_v39 = vld [vmem:[%s8901_s2 + $0x18] sm:$0xff] }
 0xb09   :  { %v2203_v24 = vpop.xlane.xlu1 %2202 }
 0xb0a   :  { %7526 = vrcp.f32 %v2203_v24 }
 0xb0d   :  { %v2224_v31 = vpop.permute.xlu1 %2223 }
 0xb0e   :  { %7087 = vmatprep.subr.mxu1 %v2224_v31 }
 0xb0f   :  { %7088 = vmatpush3.msra.mxu1 %v2224_v31  ;;  %v2395_v31 = vld [vmem:[%s8901_s2 + $0x110] sm:$0xff] }
 0xb11   :  { %v2311_v42 = vpop.permute.xlu1 %2310 }
 0xb12   :  { %7094 = vmatprep.subr.mxu0 %v2311_v42 }
 0xb13   :  { %7095 = vmatpush3.msra.mxu0 %v2311_v42 }
 0xb17   :  { %v7527_v43 = vpop.eup %7526 }
 0xb18   :  { %v2217_v44 = vmul.f32 %v7527_v43, %v7523_v11 }
 0xb1a   :  { %7091 = vmatprep.mubr.msk.f32.mxu1 %vm674_vm3, %v2217_v44 }
 0xb3b   :  { %v2185_v46 = vpop.xlane.xlu0 %2184 }
 0xb3c   :  { %v2191_v48 = vsub.f32 %v2175_v32, %v2185_v46  ;;  %v2598_v32 = vld [vmem:[%s8901_s2 + $0x40] sm:$0xff] }
 0xb3e   :  { %v2197_v49 = vmul.f32 1.442695, %v2191_v48 }
 0xb3f   :  { %v2188_v50 = vpop.xlane.xlu0 %2187 }
 0xb40   :  { %7528 = vpow2.f32 %v2197_v49  ;;  %v2192_v55 = vsub.f32 %v2176_v33, %v2188_v50  ;;  %v2597_v33 = vld [vmem:[%s8901_s2 + $0x38] sm:$0xff] }
 0xb41   :  { %v6469_v49 = vld [vmem:[%s8901_s2 + $0x23c] ss:$0 sm:$0xff] }
 0xb42   :  { %v2199_v56 = vmul.f32 1.442695, %v2192_v55 }
 0xb43   :  { %v2206_v2 = vpop.xlane.xlu0 %2205 }
 0xb44   :  { %7530 = vpow2.f32 %v2199_v56 }
 0xb45   :  { %7532 = vrcp.f32 %v2206_v2 }
 0xb4d   :  { %v7529_v57 = vpop.eup %7528 }
 0xb4e   :  { %v2207_v58 = vsel %vm674_vm3, %v7529_v57, 0.0 }
 0xb4f   :  { %2208 = vadd.xlane.f32.xlu1 %v2207_v58 }
 0xb51   :  { %v7531_v59 = vpop.eup %7530 }
 0xb52   :  { %v2210_v61 = vsel %vm674_vm3, %v7531_v59, 0.0  ;;  %v7533_v6 = vpop.eup %7532 }
 0xb53   :  { %2211 = vadd.xlane.f32.xlu0 %v2210_v61  ;;  %v2218_v35 = vmul.f32 %v7533_v6, %v7525_v27  ;;  %v2594_v27 = vld [vmem:[%s8901_s2 + $0x20] sm:$0xff] }
 0xb60   :  { %2308 = vrot.lane.b32.xlu1 %v7956_v23, %s7681_s9  ;;  %v2608_v23 = vld [vmem:[%s8901_s2 + $0x90] sm:$0xff] }
 0xb64   :  { %2587 = vperm.xlu1 %7473, %v2580_v62  }
 0xb69   :  { %2221 = vrot.lane.b32.xlu0 %v7909_v14, %s7681_s9 }
 0xb6d   :  { %2584 = vperm.xlu0 %7472, %v2579_v63  }
 0xbd8   :  { %v2209_v3 = vpop.xlane.xlu1 %2208 }
 0xbd9   :  { %7534 = vrcp.f32 %v2209_v3 }
 0xbdc   :  { %v2309_v5 = vpop.permute.xlu1 %2308  ;;  %v2212_v36 = vpop.xlane.xlu0 %2211 }
 0xbdd   :  { %7536 = vrcp.f32 %v2212_v36  ;;  %7096 = vmatprep.subr.mxu0 %v2309_v5 }
 0xbde   :  { %7097 = vmatpush3.msra.mxu0 %v2309_v5 }
 0xbdf   :  { %7109 = vmatprep.subr.mxu0 %v2608_v23 }
 0xbe0   :  { %v2222_v14 = vpop.permute.xlu0 %2221  ;;  %v2588_v24 = vpop.permute.xlu1 %2587 }
 0xbe1   :  { %7089 = vmatprep.subr.mxu1 %v2222_v14  ;;  %vm2590_vm5 = vcmp.eq.s32.totalorder %v2588_v24, %v2582_v4 }
 0xbe2   :  { %7090 = vmatpush3.msra.mxu1 %v2222_v14 }
 0xbe3   :  { %7092 = vmatmul.mubr.msk.f32.vlgmr.msra.gmra.mxu1 %vm674_vm3, %v2218_v35  ;;  %7101 = vmatprep.subr.mxu1 %v2395_v31 }
 0xbe4   :  { %7102 = vmatpush3.msra.mxu1 %v2395_v31 }
 0xbe6   :  { %v7535_v37 = vpop.eup %7534 }
 0xbe7   :  { %v2219_v11 = vmul.f32 %v7535_v37, %v7529_v57 }
 0xbe8   :  { %v2585_v60 = vpop.permute.xlu0 %2584 }
 0xbe9   :  { %7098 = vmatprep.mubr.msk.f32.mxu0 %vm674_vm3, %v2219_v11  ;;  %vm2589_vm4 = vcmp.eq.s32.totalorder %v2585_v60, %v2582_v4 }
 0xbea   :  { %v7537_v13 = vpop.eup %7536 }
 0xbeb   :  { %v2220_v9 = vmul.f32 %v7537_v13, %v7531_v59 }
 0xbed   :  { %7099 = vmatmul.mubr.msk.f32.vlgmr.msra.gmra.mxu0 %vm674_vm3, %v2220_v9 }
 0xbee   :  { %7110 = vmatpush3.msra.mxu0 %v2608_v23  ;;  %7141 = vmatprep.mubr.msk.f32.mxu0 %vm2589_vm4, %v7682_v29 }
 0xbef   :  { %7111 = vmatprep.subr.mxu0 %v2607_v10 }
 0xbf0   :  { %7112 = vmatpush3.msra.mxu0 %v2607_v10 }
 0xbf1   :  { %7113 = vmatprep.subr.mxu0 %v2606_v1 }
 0xbf2   :  { %7114 = vmatpush3.msra.mxu0 %v2606_v1 }
 0xbf3   :  { %7115 = vmatprep.subr.mxu0 %v2605_v7 }
 0xbf4   :  { %7116 = vmatpush3.msra.mxu0 %v2605_v7  ;;  %v6381_v7 = vld [vmem:[%s8903_s4 + $0x40] sm:$0xff] }
 0xbf5   :  { %7117 = vmatprep.subr.mxu0 %v2604_v8 }
 0xbf6   :  { %7118 = vmatpush3.msra.mxu0 %v2604_v8  ;;  %v6382_v8 = vld [vmem:[%s8903_s4 + $0x48] sm:$0xff] }
 0xbf7   :  { %7119 = vmatprep.subr.mxu0 %v2603_v15 }
 0xbf8   :  { %7120 = vmatpush3.msra.mxu0 %v2603_v15  ;;  %v6383_v15 = vld [vmem:[%s8903_s4 + $0x60] sm:$0xff] }
 0xbf9   :  { %7121 = vmatprep.subr.mxu0 %v2602_v17 }
 0xbfa   :  { %7122 = vmatpush3.msra.mxu0 %v2602_v17 }
 0xbfb   :  { %7123 = vmatprep.subr.mxu0 %v2601_v16 }
 0xbfc   :  { %7124 = vmatpush3.msra.mxu0 %v2601_v16 }
 0xbfd   :  { %7125 = vmatprep.subr.mxu0 %v2600_v18 }
 0xbfe   :  { %7126 = vmatpush3.msra.mxu0 %v2600_v18 }
 0xbff   :  { %7127 = vmatprep.subr.mxu0 %v2599_v22 }
 0xc00   :  { %7128 = vmatpush3.msra.mxu0 %v2599_v22 }
 0xc01   :  { %7129 = vmatprep.subr.mxu0 %v2598_v32 }
 0xc02   :  { %7130 = vmatpush3.msra.mxu0 %v2598_v32  ;;  %v6384_v32 = vld [vmem:[%s8903_s4 + $0x68] sm:$0xff] }
 0xc03   :  { %7131 = vmatprep.subr.mxu0 %v2597_v33 }
 0xc04   :  { %7132 = vmatpush3.msra.mxu0 %v2597_v33 }
 0xc05   :  { %7133 = vmatprep.subr.mxu0 %v2596_v34 }
 0xc06   :  { %7134 = vmatpush3.msra.mxu0 %v2596_v34 }
 0xc07   :  { %7135 = vmatprep.subr.mxu0 %v2595_v19 }
 0xc08   :  { %7136 = vmatpush3.msra.mxu0 %v2595_v19 }
 0xc09   :  { %7137 = vmatprep.subr.mxu0 %v2594_v27 }
 0xc0a   :  { %7138 = vmatpush3.msra.mxu0 %v2594_v27 }
 0xc0b   :  { %7139 = vmatprep.subr.mxu0 %v2593_v39 }
 0xc0c   :  { %7140 = vmatpush3.msra.mxu0 %v2593_v39 }
 0xc0d   :  { %7142 = vmatmul.mubr.msk.f32.vlgmr.msra.gmra.mxu0 %vm2590_vm5, %v7682_v29 }
 0xca3   :  { %v7093_v42 = vpop.f32.mrf.mxu1 }
 0xca5   :  { %v2299_v43 = vpop.f32.mrf.mxu1 }
 0xca6   :  { %7103 = vmatprep.mubr.msk.f32.mxu1 %vm495_vm2, %v2299_v43 }
 0xca7   :  { %7104 = vmatmul.mubr.msk.f32.vlgmr.msra.gmra.mxu1 %vm495_vm2, %v7093_v42 }
 0xcad   :  { %v7100_v44 = vpop.f32.mrf.mxu0 }
 0xcaf   :  { %v2386_v46 = vpop.f32.mrf.mxu0 }
 0xcb0   :  { %7106 = vmatprep.mubr.msk.f32.mxu1 %vm495_vm2, %v2386_v46 }
 0xcb1   :  { %7107 = vmatmul.mubr.msk.f32.gmra.mxu1 %vm495_vm2, %v7100_v44 }
 0xccd   :  { %v7143_v31 = vpop.f32.mrf.mxu0 }
 0xd67   :  { %v7105_v48 = vpop.f32.mrf.mxu1 }
 0xd68   :  { %v2494_v50 = vadd.f32 %v7105_v48, %v8138_v0 }
 0xd69   :  { %v2474_v55 = vpop.f32.mrf.mxu1 }
 0xd6a   :  { %v2503_v56 = vadd.f32 %v6469_v49, %v2494_v50  ;;  %v2493_v57 = vadd.f32 %v2474_v55, %v8142_v12  ;;  %v6470_v50 = vld [vmem:[%s8901_s2 + $0x241] ss:$0 sm:$0xff] }
 0xd6c   :  { %v2502_v58 = vadd.f32 %v6469_v49, %v2493_v57  ;;  %v2507_v59 = vadd.f32 %v2503_v56, %v7813_v47 }
 0xd6e   :  { %v2513_v61 = vsel %vm209_vm1, %v2507_v59, 0.0  ;;  %v2506_v62 = vadd.f32 %v2502_v58, %v7810_v45 }
 0xd6f   :  { %2514 = vadd.xlane.f32.xlu1 %v2513_v61 }
 0xd70   :  { %v2510_v63 = vsel %vm209_vm1, %v2506_v62, 0.0 }
 0xd71   :  { %2511 = vadd.xlane.f32.xlu0 %v2510_v63  ;;  %v7108_v2 = vpop.f32.mrf.mxu1 }
 0xd72   :  { %v2496_v3 = vadd.f32 %v7108_v2, %v8146_v20 }
 0xd73   :  { %v2484_v5 = vpop.f32.mrf.mxu1 }
 0xd74   :  { %v2495_v0 = vadd.f32 %v2484_v5, %v8148_v21  ;;  %v2505_v36 = vadd.f32 %v6469_v49, %v2496_v3 }
 0xd76   :  { %v2504_v23 = vadd.f32 %v6469_v49, %v2495_v0  ;;  %v2509_v6 = vadd.f32 %v2505_v36, %v7836_v54  ;;  %v2675_v49 = vpop.f32.mrf.mxu0 }
 0xd78   :  { %v2508_v12 = vadd.f32 %v2504_v23, %v7833_v53  ;;  %v2519_v45 = vsel %vm209_vm1, %v2509_v6, 0.0 }
 0xd7a   :  { %v2516_v47 = vsel %vm209_vm1, %v2508_v12, 0.0 }
 0xd7b   :  { %2517 = vadd.xlane.f32.xlu0 %v2516_v47 }
 0xd7f   :  { %2520 = vadd.xlane.f32.xlu0 %v2519_v45 }
 0xdf8   :  { %v2515_v14 = vpop.xlane.xlu1 %2514 }
 0xdf9   :  { %v2524_v35 = vmul.f32 0.03125, %v2515_v14 }
 0xdfa   :  { %v2512_v37 = vpop.xlane.xlu0 %2511 }
 0xdfb   :  { %v2528_v40 = vsub.f32 %v2507_v59, %v2524_v35  ;;  %v2523_v20 = vmul.f32 0.03125, %v2512_v37  ;;  %v6471_v59 = vld [vmem:[%s8901_s2 + $0x242] ss:$0 sm:$0xff] }
 0xdfd   :  { %v2527_v11 = vsub.f32 %v2506_v62, %v2523_v20  ;;  %v2532_v13 = vmul.f32 %v2528_v40, %v2528_v40 }
 0xdff   :  { %v2538_v21 = vsel %vm209_vm1, %v2532_v13, 0.0  ;;  %v2531_v60 = vmul.f32 %v2527_v11, %v2527_v11 }
 0xe00   :  { %2539 = vadd.xlane.f32.xlu0 %v2538_v21 }
 0xe01   :  { %v2535_v53 = vsel %vm209_vm1, %v2531_v60, 0.0 }
 0xe02   :  { %2536 = vadd.xlane.f32.xlu1 %v2535_v53 }
 0xe04   :  { %v2518_v4 = vpop.xlane.xlu0 %2517 }
 0xe05   :  { %v2525_v17 = vmul.f32 0.03125, %v2518_v4 }
 0xe07   :  { %v2529_v16 = vsub.f32 %v2508_v12, %v2525_v17 }
 0xe08   :  { %v2521_v54 = vpop.xlane.xlu0 %2520 }
 0xe09   :  { %v2526_v9 = vmul.f32 0.03125, %v2521_v54  ;;  %v2533_v18 = vmul.f32 %v2529_v16, %v2529_v16 }
 0xe0b   :  { %v8241_v10 = vsub.f32 %v2509_v6, %v2526_v9  ;;  %v2541_v22 = vsel %vm209_vm1, %v2533_v18, 0.0 }
 0xe0d   :  { %v2534_v29 = vmul.f32 %v8241_v10, %v8241_v10 }
 0xe0f   :  { %v2544_v1 = vsel %vm209_vm1, %v2534_v29, 0.0 }
 0xe10   :  { %2545 = vadd.xlane.f32.xlu0 %v2544_v1 }
 0xe13   :  { %2686 = vperm.xlu1 %7473, %v6381_v7  }
 0xe17   :  { %2691 = vperm.xlu1 %7473, %v6382_v8  }
 0xe26   :  { %2698 = vperm.xlu0 %7472, %v6383_v15  }
 0xe3b   :  { %2542 = vadd.xlane.f32.xlu1 %v2541_v22 }
 0xe4c   :  { %2703 = vperm.xlu1 %7473, %v6384_v32  }
 0xe89   :  { %v2540_v33 = vpop.xlane.xlu0 %2539 }
 0xe8a   :  { %v2548_v34 = vmul.f32 0.03125, %v2540_v33 }
 0xe8b   :  { %v2537_v19 = vpop.xlane.xlu1 %2536 }
 0xe8c   :  { %v2552_v27 = vadd.f32 1e-05, %v2548_v34  ;;  %v2547_v39 = vmul.f32 0.03125, %v2537_v19 }
 0xe8e   :  { %v2551_v24 = vadd.f32 1e-05, %v2547_v39  ;;  %7538 = vrsqrt.f32 %v2552_v27 }
 0xe8f   :  { %v2687_v44 = vpop.permute.xlu1 %2686 }
 0xe90   :  { %7540 = vrsqrt.f32 %v2551_v24  ;;  %v2694_v56 = vmul.f32 %v2687_v44, %v2675_v49 }
 0xe93   :  { %v2692_v0 = vpop.permute.xlu1 %2691 }
 0xe94   :  { %v2695_v47 = vmul.f32 %v7143_v31, %v2692_v0 }
 0xe99   :  { %v2546_v46 = vpop.xlane.xlu0 %2545 }
 0xe9a   :  { %v2550_v5 = vmul.f32 0.03125, %v2546_v46 }
 0xe9b   :  { %v7539_v42 = vpop.eup %7538 }
 0xe9c   :  { %v2560_v55 = vmul.f32 %v7539_v42, %v2528_v40  ;;  %v2554_v36 = vadd.f32 1e-05, %v2550_v5 }
 0xe9d   :  { %v7541_v43 = vpop.eup %7540 }
 0xe9e   :  { %v2559_v48 = vmul.f32 %v7541_v43, %v2527_v11  ;;  %v2568_v63 = vmul.f32 %v6470_v50, %v2560_v55  ;;  %7542 = vrsqrt.f32 %v2554_v36  ;;  %v3281_v55 = vld [vmem:[%s8902_s3 + $0x58] sm:$0xff] }
 0xe9f   :  { %7192 = vmatprep.subr.mxu0 %v3281_v55 }
 0xea0   :  { %v2567_v57 = vmul.f32 %v6470_v50, %v2559_v48  ;;  %v8271_v3 = vadd.f32 %v6471_v59, %v2568_v63  ;;  %7193 = vmatpush3.msra.mxu0 %v3281_v55 }
 0xea1   :  { %v2699_v58 = vpop.permute.xlu0 %2698 }
 0xea2   :  { %v2706_v61 = vadd.f32 %v2699_v58, %v2694_v56  ;;  %v8265_v62 = vadd.f32 %v6471_v59, %v2567_v57 }
 0xea4   :  { %v2708_v2 = vadd.f32 %v2706_v61, %v2675_v49  ;;  %7146 = vmatprep.mubr.msk.f32.mxu1 %vm209_vm1, %v8265_v62 }
 0xea6   :  { %7144 = vmatprep.subr.msk.mxu1 %vm209_vm1, %v2708_v2 }
 0xea7   :  { %7145 = vmatpush3.xpose.msk.msra.mxu1 %vm209_vm1, %v2708_v2 }
 0xeaa   :  { %7147 = vmatmul.mubr.msk.f32.vlgmr.msra.gmra.mxu1 %vm209_vm1, %v8271_v3 }
 0xeab   :  { %v7543_v37 = vpop.eup %7542 }
 0xeac   :  { %v2562_v40 = vmul.f32 %v7543_v37, %v8241_v10  ;;  %v3279_v37 = vld [vmem:[%s8902_s3 + $0x48] sm:$0xff] }
 0xeae   :  { %v2570_v13 = vmul.f32 %v6470_v50, %v2562_v40  ;;  %v3278_v40 = vld [vmem:[%s8902_s3 + $0x40] sm:$0xff] }
 0xeb0   :  { %v8284_v53 = vadd.f32 %v6471_v59, %v2570_v13 }
 0xec4   :  { %v2543_v23 = vpop.xlane.xlu1 %2542 }
 0xec5   :  { %v2549_v12 = vmul.f32 0.03125, %v2543_v23 }
 0xec7   :  { %v2553_v6 = vadd.f32 1e-05, %v2549_v12 }
 0xec8   :  { %v2704_v45 = vpop.permute.xlu1 %2703 }
 0xec9   :  { %7544 = vrsqrt.f32 %v2553_v6  ;;  %v2707_v14 = vadd.f32 %v2704_v45, %v2695_v47  ;;  %v3090_v6 = vld [vmem:[%s8902_s3 + $0x30] sm:$0xff]  ;;  %v3089_v45 = vld [vmem:[%s8902_s3 + $0x28] sm:$0xff] }
 0xecb   :  { %v8275_v35 = vadd.f32 %v7143_v31, %v2707_v14  ;;  %v3280_v14 = vld [vmem:[%s8902_s3 + $0x50] sm:$0xff] }
 0xecc   :  { %7194 = vmatprep.subr.mxu0 %v3280_v14 }
 0xecd   :  { %7149 = vmatprep.subr.msk.mxu1 %vm209_vm1, %v8275_v35  ;;  %7195 = vmatpush3.msra.mxu0 %v3280_v14 }
 0xece   :  { %7150 = vmatpush3.xpose.msk.msra.mxu1 %vm209_vm1, %v8275_v35  ;;  %7196 = vmatprep.subr.mxu0 %v3279_v37 }
 0xecf   :  { %7154 = vmatprep.subr.mxu1 %v2708_v2  ;;  %7197 = vmatpush3.msra.mxu0 %v3279_v37 }
 0xed0   :  { %7198 = vmatprep.subr.mxu0 %v3278_v40 }
 0xed1   :  { %7199 = vmatpush3.msra.mxu0 %v3278_v40 }
 0xed6   :  { %v7545_v20 = vpop.eup %7544 }
 0xed7   :  { %v2561_v11 = vmul.f32 %v7545_v20, %v2529_v16  ;;  %v3087_v20 = vld [vmem:[%s8902_s3 + $0x18] sm:$0xff] }
 0xed9   :  { %v2569_v21 = vmul.f32 %v6470_v50, %v2561_v11 }
 0xedb   :  { %v8282_v60 = vadd.f32 %v6471_v59, %v2569_v21 }
 0xedd   :  { %7151 = vmatprep.mubr.msk.f32.mxu1 %vm209_vm1, %v8282_v60 }
 0xede   :  { %7152 = vmatmul.mubr.msk.f32.vlgmr.msra.gmra.mxu1 %vm209_vm1, %v8284_v53 }
 0xedf   :  { %7155 = vmatpush3.msra.mxu1 %v2708_v2  ;;  %v3091_v2 = vld [vmem:[%s8902_s3 + $0x38] sm:$0xff] }
 0xee0   :  { %7159 = vmatprep.subr.mxu1 %v8275_v35 }
 0xf6a   :  { %v7148_v4 = vpop.f32.mrf.mxu1 }
 0xf6b   :  { %v2881_v54 = vsel %vm495_vm2, %v7148_v4, -inf }
 0xf6c   :  { %2882 = vmax.xlane.f32.xlu1 %v2881_v54  ;;  %v2785_v9 = vpop.f32.mrf.mxu1 }
 0xf6d   :  { %v2878_v10 = vsel %vm495_vm2, %v2785_v9, -inf }
 0xf6e   :  { %2879 = vmax.xlane.f32.xlu0 %v2878_v10  ;;  %v3084_v10 = vld [vmem:[%s8902_s3] sm:$0xff] }
 0xf9e   :  { %v7153_v29 = vpop.f32.mrf.mxu1 }
 0xf9f   :  { %v2887_v8 = vsel %vm495_vm2, %v7153_v29, -inf }
 0xfa0   :  { %v2869_v1 = vpop.f32.mrf.mxu1 }
 0xfa1   :  { %v2884_v7 = vsel %vm495_vm2, %v2869_v1, -inf }
 0xfa2   :  { %2885 = vmax.xlane.f32.xlu0 %v2884_v7 }
 0xfa6   :  { %2888 = vmax.xlane.f32.xlu0 %v2887_v8 }
 0xff5   :  { %v2883_v15 = vpop.xlane.xlu1 %2882 }
 0xff6   :  { %v2891_v17 = vsub.f32 %v7148_v4, %v2883_v15  ;;  %v3086_v4 = vld [vmem:[%s8902_s3 + $0x10] sm:$0xff] }
 0xff7   :  { %v2880_v16 = vpop.xlane.xlu0 %2879 }
 0xff8   :  { %v2896_v18 = vmul.f32 1.442695, %v2891_v17  ;;  %v2890_v22 = vsub.f32 %v2785_v9, %v2880_v16  ;;  %v3085_v9 = vld [vmem:[%s8902_s3 + $0x8] sm:$0xff]  ;;  %v3389_v17 = vld [vmem:[%s8902_s3 + $0x70] sm:$0xff] }
 0xff9   :  { %v3388_v16 = vld [vmem:[%s8902_s3 + $0x68] sm:$0xff] }
 0xffa   :  { %7546 = vpow2.f32 %v2896_v18  ;;  %v2894_v32 = vmul.f32 1.442695, %v2890_v22  ;;  %v3387_v22 = vld [vmem:[%s8902_s3 + $0x60] sm:$0xff] }
 0xffc   :  { %7548 = vpow2.f32 %v2894_v32 }
0x1007   :  { %v7547_v33 = vpop.eup %7546 }
0x1008   :  { %v2905_v34 = vsel %vm495_vm2, %v7547_v33, 0.0 }
0x1009   :  { %v7549_v19 = vpop.eup %7548  ;;  %2906 = vadd.xlane.f32.xlu0 %v2905_v34  ;;  %v3512_v34 = vld [vmem:[%s8901_s2 + $0x1d0] sm:$0xff] }
0x100a   :  { %v2902_v27 = vsel %vm495_vm2, %v7549_v19, 0.0  ;;  %7220 = vmatprep.subr.mxu0 %v3512_v34 }
0x100b   :  { %2903 = vadd.xlane.f32.xlu1 %v2902_v27  ;;  %v3507_v27 = vld [vmem:[%s8901_s2 + $0x1a8] sm:$0xff] }
0x102b   :  { %v2886_v39 = vpop.xlane.xlu0 %2885 }
0x102c   :  { %v2892_v24 = vsub.f32 %v2869_v1, %v2886_v39  ;;  %v3506_v39 = vld [vmem:[%s8901_s2 + $0x1a0] sm:$0xff] }
0x102e   :  { %v2898_v31 = vmul.f32 1.442695, %v2892_v24  ;;  %v3505_v24 = vld [vmem:[%s8901_s2 + $0x198] sm:$0xff] }
0x102f   :  { %v2889_v42 = vpop.xlane.xlu0 %2888 }
0x1030   :  { %7550 = vpow2.f32 %v2898_v31  ;;  %v2893_v43 = vsub.f32 %v7153_v29, %v2889_v42  ;;  %v3390_v29 = vld [vmem:[%s8902_s3 + $0x78] sm:$0xff] }
0x1032   :  { %v2900_v44 = vmul.f32 1.442695, %v2893_v43 }
0x1034   :  { %7552 = vpow2.f32 %v2900_v44 }
0x103d   :  { %v7551_v46 = vpop.eup %7550 }
0x103e   :  { %v2908_v48 = vsel %vm495_vm2, %v7551_v46, 0.0 }
0x103f   :  { %2909 = vadd.xlane.f32.xlu1 %v2908_v48 }
0x1041   :  { %v7553_v49 = vpop.eup %7552 }
0x1042   :  { %v2911_v50 = vsel %vm495_vm2, %v7553_v49, 0.0 }
0x1043   :  { %2912 = vadd.xlane.f32.xlu0 %v2911_v50 }
0x1092   :  { %v2907_v56 = vpop.xlane.xlu0 %2906 }
0x1093   :  { %7554 = vrcp.f32 %v2907_v56 }
0x1094   :  { %v2904_v57 = vpop.xlane.xlu1 %2903 }
0x1095   :  { %7556 = vrcp.f32 %v2904_v57 }
0x10a0   :  { %v7555_v58 = vpop.eup %7554 }
0x10a1   :  { %v2919_v63 = vmul.f32 %v7555_v58, %v7547_v33 }
0x10a2   :  { %v7557_v59 = vpop.eup %7556 }
0x10a3   :  { %v2918_v61 = vmul.f32 %v7557_v59, %v7549_v19  ;;  %v3508_v19 = vld [vmem:[%s8901_s2 + $0x1b0] sm:$0xff] }
0x10a5   :  { %7156 = vmatprep.mubr.msk.f32.mxu1 %vm495_vm2, %v2918_v61 }
0x10a6   :  { %7157 = vmatmul.mubr.msk.f32.vlgmr.msra.gmra.mxu1 %vm495_vm2, %v2919_v63 }
0x10a7   :  { %7160 = vmatpush3.msra.mxu1 %v8275_v35  ;;  %v3088_v35 = vld [vmem:[%s8902_s3 + $0x20] sm:$0xff] }
0x10a8   :  { %7164 = vmatprep.subr.mxu1 %v3091_v2 }
0x10c8   :  { %v2910_v5 = vpop.xlane.xlu1 %2909 }
0x10c9   :  { %7558 = vrcp.f32 %v2910_v5 }
0x10cc   :  { %v2913_v0 = vpop.xlane.xlu0 %2912 }
0x10cd   :  { %7560 = vrcp.f32 %v2913_v0 }
0x10d6   :  { %v7559_v36 = vpop.eup %7558 }
0x10d7   :  { %v2920_v23 = vmul.f32 %v7559_v36, %v7551_v46  ;;  %v6500_v36 = vld [vmem:[%s8902_s3 + $0x80] ss:$0 sm:$0xff] }
0x10d9   :  { %7161 = vmatprep.mubr.msk.f32.mxu1 %vm495_vm2, %v2920_v23 }
0x10da   :  { %v7561_v12 = vpop.eup %7560 }
0x10db   :  { %v2921_v47 = vmul.f32 %v7561_v12, %v7553_v49 }
0x10dd   :  { %7162 = vmatmul.mubr.msk.f32.vlgmr.msra.gmra.mxu1 %vm495_vm2, %v2921_v47 }
0x10de   :  { %7165 = vmatpush3.msra.mxu1 %v3091_v2 }
0x10df   :  { %7166 = vmatprep.subr.mxu1 %v3090_v6 }
0x10e0   :  { %7167 = vmatpush3.msra.mxu1 %v3090_v6 }
0x10e1   :  { %7168 = vmatprep.subr.mxu1 %v3089_v45 }
0x10e2   :  { %7169 = vmatpush3.msra.mxu1 %v3089_v45 }
0x10e3   :  { %7170 = vmatprep.subr.mxu1 %v3088_v35 }
0x10e4   :  { %7171 = vmatpush3.msra.mxu1 %v3088_v35 }
0x10e5   :  { %7178 = vmatprep.subr.mxu1 %v3087_v20 }
0x1166   :  { %v7158_v11 = vpop.f32.mrf.mxu1 }
0x1167   :  { %v3275_v54 = vsub.f32 %v8271_v3, %v7158_v11  ;;  %v3384_v32 = vmul.f32 %v7158_v11, %v8271_v3 }
0x1168   :  { %v2994_v13 = vpop.f32.mrf.mxu1 }
0x1169   :  { %v3274_v21 = vsub.f32 %v8265_v62, %v2994_v13  ;;  %7172 = vmatprep.mubr.msk.f32.mxu1 %vm209_vm1, %v2994_v13  ;;  %v3383_v18 = vmul.f32 %v2994_v13, %v8265_v62 }
0x116a   :  { %7173 = vmatmul.mubr.msk.f32.vlgmr.msra.gmra.mxu1 %vm209_vm1, %v7158_v11 }
0x116b   :  { %7200 = vmatprep.mubr.msk.f32.mxu0 %vm209_vm1, %v3274_v21  ;;  %7179 = vmatpush3.msra.mxu1 %v3087_v20 }
0x116c   :  { %7201 = vmatmul.mubr.msk.f32.vlgmr.msra.gmra.mxu0 %vm209_vm1, %v3275_v54  ;;  %7180 = vmatprep.subr.mxu1 %v3086_v4 }
0x116d   :  { %7181 = vmatpush3.msra.mxu1 %v3086_v4  ;;  %7221 = vmatpush3.msra.mxu0 %v3512_v34 }
0x116e   :  { %7182 = vmatprep.subr.mxu1 %v3085_v9 }
0x116f   :  { %7183 = vmatpush3.msra.mxu1 %v3085_v9 }
0x1170   :  { %7184 = vmatprep.subr.mxu1 %v3084_v10 }
0x1171   :  { %7185 = vmatpush3.msra.mxu1 %v3084_v10 }
0x1172   :  { %7206 = vmatprep.subr.mxu1 %v3390_v29 }
0x119d   :  { %v7163_v1 = vpop.f32.mrf.mxu1 }
0x119e   :  { %v3277_v15 = vsub.f32 %v8284_v53, %v7163_v1 }
0x119f   :  { %v3075_v7 = vpop.f32.mrf.mxu1 }
0x11a0   :  { %v3276_v8 = vsub.f32 %v8282_v60, %v3075_v7  ;;  %7175 = vmatprep.mubr.msk.f32.mxu1 %vm209_vm1, %v3075_v7  ;;  %v3385_v33 = vmul.f32 %v3075_v7, %v8282_v60  ;;  %v3831_v7 = vld [vmem:[%s8901_s2 + $0x170] sm:$0xff] }
0x11a1   :  { %7176 = vmatmul.mubr.msk.f32.gmra.mxu1 %vm209_vm1, %v7163_v1 }
0x11a2   :  { %7186 = vmatprep.mubr.msk.f32.mxu1 %vm209_vm1, %v8265_v62  ;;  %7203 = vmatprep.mubr.msk.f32.mxu0 %vm209_vm1, %v3276_v8  ;;  %v3386_v62 = vmul.f32 %v7163_v1, %v8284_v53  ;;  %v3631_v1 = vld [vmem:[%s8901_s2 + $0x130] sm:$0xff]  ;;  %v3630_v8 = vld [vmem:[%s8901_s2 + $0x128] sm:$0xff] }
0x11a3   :  { %7204 = vmatmul.mubr.msk.f32.gmra.mxu0 %vm209_vm1, %v3277_v15  ;;  %v3830_v15 = vld [vmem:[%s8901_s2 + $0x168] sm:$0xff] }
0x11a5   :  { %7187 = vmatmul.mubr.msk.f32.vlgmr.msra.gmra.mxu1 %vm209_vm1, %v8271_v3  ;;  %v3511_v3 = vld [vmem:[%s8901_s2 + $0x1c8] sm:$0xff] }
0x11a6   :  { %7189 = vmatprep.mubr.msk.f32.mxu1 %vm209_vm1, %v8282_v60  ;;  %7207 = vmatpush3.msra.mxu1 %v3390_v29  ;;  %v3510_v60 = vld [vmem:[%s8901_s2 + $0x1c0] sm:$0xff] }
0x11a7   :  { %7208 = vmatprep.subr.mxu1 %v3389_v17  ;;  %7222 = vmatprep.subr.mxu0 %v3511_v3 }
0x11a8   :  { %7209 = vmatpush3.msra.mxu1 %v3389_v17  ;;  %7223 = vmatpush3.msra.mxu0 %v3511_v3  ;;  %v3629_v17 = vld [vmem:[%s8901_s2 + $0x120] sm:$0xff] }
0x11a9   :  { %7190 = vmatmul.mubr.msk.f32.gmra.mxu1 %vm209_vm1, %v8284_v53  ;;  %7210 = vmatprep.subr.mxu1 %v3388_v16  ;;  %v3509_v53 = vld [vmem:[%s8901_s2 + $0x1b8] sm:$0xff] }
0x11aa   :  { %7211 = vmatpush3.msra.mxu1 %v3388_v16  ;;  %7214 = vmatprep.mubr.msk.f32.mxu1 %vm209_vm1, %v3383_v18  ;;  %v3829_v16 = vld [vmem:[%s8901_s2 + $0x160] sm:$0xff]  ;;  %v3628_v18 = vld [vmem:[%s8901_s2 + $0x118] sm:$0xff] }
0x11ab   :  { %7212 = vmatprep.subr.mxu1 %v3387_v22  ;;  %7224 = vmatprep.subr.mxu0 %v3510_v60 }
0x11ac   :  { %7213 = vmatpush3.msra.mxu1 %v3387_v22  ;;  %7225 = vmatpush3.msra.mxu0 %v3510_v60  ;;  %v3828_v22 = vld [vmem:[%s8901_s2 + $0x158] sm:$0xff] }
0x11ad   :  { %7215 = vmatmul.mubr.msk.f32.vlgmr.msra.gmra.mxu1 %vm209_vm1, %v3384_v32  ;;  %7226 = vmatprep.subr.mxu0 %v3509_v53  ;;  %v3737_v32 = vld [vmem:[%s8901_s2 + $0x150] sm:$0xff] }
0x11ae   :  { %7217 = vmatprep.mubr.msk.f32.mxu1 %vm209_vm1, %v3385_v33  ;;  %7227 = vmatpush3.msra.mxu0 %v3509_v53  ;;  %v6501_v33 = vld [vmem:[%s8901_s2 + $0x243] ss:$0 sm:$0xff] }
0x11af   :  { %7228 = vmatprep.subr.mxu0 %v3508_v19  ;;  %7242 = vmatprep.subr.mxu1 %v3631_v1 }
0x11b0   :  { %7229 = vmatpush3.msra.mxu0 %v3508_v19  ;;  %7243 = vmatpush3.msra.mxu1 %v3631_v1 }
0x11b1   :  { %7218 = vmatmul.mubr.msk.f32.gmra.mxu1 %vm209_vm1, %v3386_v62  ;;  %7230 = vmatprep.subr.mxu0 %v3507_v27 }
0x11b2   :  { %7231 = vmatpush3.msra.mxu0 %v3507_v27  ;;  %7244 = vmatprep.subr.mxu1 %v3630_v8 }
0x11b3   :  { %7232 = vmatprep.subr.mxu0 %v3506_v39  ;;  %7245 = vmatpush3.msra.mxu1 %v3630_v8 }
0x11b4   :  { %7233 = vmatpush3.msra.mxu0 %v3506_v39  ;;  %7246 = vmatprep.subr.mxu1 %v3629_v17 }
0x11b5   :  { %7234 = vmatprep.subr.mxu0 %v3505_v24  ;;  %7247 = vmatpush3.msra.mxu1 %v3629_v17 }
0x11b6   :  { %7235 = vmatpush3.msra.mxu0 %v3505_v24  ;;  %7248 = vmatprep.subr.mxu1 %v3628_v18 }
0x11b7   :  { %7270 = vmatprep.subr.mxu0 %v3831_v7  ;;  %7249 = vmatpush3.msra.mxu1 %v3628_v18 }
0x11b8   :  { %7256 = vmatprep.subr.mxu1 %v3737_v32 }
0x122a   :  { %v7174_v31 = vpop.f32.mrf.mxu1 }
0x122c   :  { %v3170_v42 = vpop.f32.mrf.mxu1  ;;  %v7202_v48 = vpop.f32.mrf.mxu0 }
0x122e   :  { %v3360_v57 = vpop.f32.mrf.mxu0 }
0x1261   :  { %v7177_v43 = vpop.f32.mrf.mxu1 }
0x1263   :  { %v3180_v44 = vpop.f32.mrf.mxu1  ;;  %v7205_v63 = vpop.f32.mrf.mxu0 }
0x1265   :  { %v7188_v46 = vpop.f32.mrf.mxu1  ;;  %v3370_v45 = vpop.f32.mrf.mxu0 }
0x1266   :  { %v3261_v50 = vadd.f32 %v7188_v46, %v7174_v31 }
0x1267   :  { %v3255_v49 = vpop.f32.mrf.mxu1 }
0x1268   :  { %v3256_v56 = vadd.f32 %v3255_v49, %v3170_v42  ;;  %v3380_v61 = vadd.f32 %v7202_v48, %v3261_v50 }
0x1269   :  { %v7191_v55 = vpop.f32.mrf.mxu1 }
0x126a   :  { %v3271_v59 = vadd.f32 %v7191_v55, %v7177_v43  ;;  %v3379_v23 = vadd.f32 %v3360_v57, %v3256_v56 }
0x126b   :  { %v3265_v58 = vpop.f32.mrf.mxu1 }
0x126c   :  { %v3266_v5 = vadd.f32 %v3265_v58, %v3180_v44  ;;  %v3382_v6 = vadd.f32 %v7205_v63, %v3271_v59 }
0x126d   :  { %v7216_v2 = vpop.f32.mrf.mxu1 }
0x126e   :  { %v3489_v0 = vadd.f32 %v7216_v2, %v3380_v61  ;;  %v3381_v20 = vadd.f32 %v3370_v45, %v3266_v5  ;;  %v6511_v61 = vld [vmem:[%s8901_s2 + $0x23e] ss:$0 sm:$0xff] }
0x126f   :  { %v3469_v12 = vpop.f32.mrf.mxu1 }
0x1270   :  { %v3488_v47 = vadd.f32 %v3469_v12, %v3379_v23  ;;  %v3498_v14 = vadd.f32 %v6500_v36, %v3489_v0  ;;  %v6516_v23 = vld [vmem:[%s8901_s2 + $0x23f] ss:$0 sm:$0xff] }
0x1271   :  { %v7219_v35 = vpop.f32.mrf.mxu1 }
0x1272   :  { %v3497_v37 = vadd.f32 %v6500_v36, %v3488_v47  ;;  %v3491_v40 = vadd.f32 %v7219_v35, %v3382_v6  ;;  %v3502_v4 = vmax.f32 %v3498_v14, 0.0 }
0x1273   :  { %v3479_v11 = vpop.f32.mrf.mxu1 }
0x1274   :  { %v3501_v13 = vmax.f32 %v3497_v37, 0.0  ;;  %v3490_v21 = vadd.f32 %v3479_v11, %v3381_v20  ;;  %v3500_v54 = vadd.f32 %v6500_v36, %v3491_v40 }
0x1276   :  { %v3499_v9 = vadd.f32 %v6500_v36, %v3490_v21  ;;  %7236 = vmatprep.mubr.msk.f32.mxu0 %vm3518_vm6, %v3501_v13  ;;  %v3504_v29 = vmax.f32 %v3500_v54, 0.0 }
0x1277   :  { %7237 = vmatmul.mubr.msk.f32.vlgmr.msra.gmra.mxu0 %vm3518_vm6, %v3502_v4 }
0x1278   :  { %v3503_v10 = vmax.f32 %v3499_v9, 0.0  ;;  %7271 = vmatpush3.msra.mxu0 %v3831_v7 }
0x1279   :  { %7272 = vmatprep.subr.mxu0 %v3830_v15 }
0x127a   :  { %7239 = vmatprep.mubr.msk.f32.mxu0 %vm3518_vm6, %v3503_v10  ;;  %7273 = vmatpush3.msra.mxu0 %v3830_v15 }
0x127b   :  { %7240 = vmatmul.mubr.msk.f32.gmra.mxu0 %vm3518_vm6, %v3504_v29  ;;  %7274 = vmatprep.subr.mxu0 %v3829_v16 }
0x127c   :  { %7275 = vmatpush3.msra.mxu0 %v3829_v16 }
0x127d   :  { %7276 = vmatprep.subr.mxu0 %v3828_v22 }
0x127e   :  { %7277 = vmatpush3.msra.mxu0 %v3828_v22 }
0x1337   :  { %v7238_v62 = vpop.f32.mrf.mxu0 }
0x1338   :  { %v3603_v34 = vadd.f32 %v7238_v62, %v6501_v33 }
0x1339   :  { %v3597_v3 = vpop.f32.mrf.mxu0 }
0x133a   :  { %v3617_v60 = vmax.f32 %v3603_v34, 0.0  ;;  %v3598_v53 = vadd.f32 %v6501_v33, %v3597_v3 }
0x133b   :  { %v7241_v19 = vpop.f32.mrf.mxu0 }
0x133c   :  { %v3616_v27 = vmax.f32 %v3598_v53, 0.0  ;;  %v3613_v39 = vadd.f32 %v7241_v19, %v6501_v33  ;;  %v3621_v24 = vmul.f32 %v3617_v60, %v7799_v28 }
0x133d   :  { %v3607_v31 = vpop.f32.mrf.mxu0 }
0x133e   :  { %v3620_v42 = vmul.f32 %v3616_v27, %v7792_v25  ;;  %v3619_v43 = vmax.f32 %v3613_v39, 0.0  ;;  %v3608_v44 = vadd.f32 %v6501_v33, %v3607_v31  ;;  %v8443_v49 = vadd.f32 %v3621_v24, %v7801_v30  ;;  %v3736_v25 = vld [vmem:[%s8901_s2 + $0x148] sm:$0xff]  ;;  %v3735_v30 = vld [vmem:[%s8901_s2 + $0x140] sm:$0xff] }
0x1340   :  { %v8440_v46 = vadd.f32 %v3620_v42, %v7794_v26  ;;  %v3618_v48 = vmax.f32 %v3608_v44, 0.0  ;;  %v3623_v50 = vmul.f32 %v3619_v43, %v7806_v41 }
0x1342   :  { %v3622_v55 = vmul.f32 %v3618_v48, %v7803_v38  ;;  %7250 = vmatprep.mubr.msk.f32.mxu1 %vm209_vm1, %v8440_v46  ;;  %7278 = vmatprep.mubr.msk.f32.mxu0 %vm209_vm1, %v8440_v46  ;;  %v8462_v28 = vadd.f32 %v3623_v50, %v7830_v52  ;;  %v3734_v38 = vld [vmem:[%s8901_s2 + $0x138] sm:$0xff] }
0x1343   :  { %7251 = vmatmul.mubr.msk.f32.vlgmr.msra.gmra.mxu1 %vm209_vm1, %v8443_v49  ;;  %7279 = vmatmul.mubr.msk.f32.vlgmr.msra.gmra.mxu0 %vm209_vm1, %v8443_v49 }
0x1344   :  { %v8459_v26 = vadd.f32 %v3622_v55, %v7824_v51  ;;  %7257 = vmatpush3.msra.mxu1 %v3737_v32  ;;  %v6506_v51 = vld [vmem:[%s8901_s2 + $0x23d] ss:$0 sm:$0xff] }
0x1345   :  { %7258 = vmatprep.subr.mxu1 %v3736_v25 }
0x1346   :  { %7253 = vmatprep.mubr.msk.f32.mxu1 %vm209_vm1, %v8459_v26  ;;  %7259 = vmatpush3.msra.mxu1 %v3736_v25 }
0x1347   :  { %7281 = vmatprep.mubr.msk.f32.mxu0 %vm209_vm1, %v8459_v26  ;;  %7254 = vmatmul.mubr.msk.f32.gmra.mxu1 %vm209_vm1, %v8462_v28 }
0x1348   :  { %7260 = vmatprep.subr.mxu1 %v3735_v30  ;;  %7282 = vmatmul.mubr.msk.f32.gmra.mxu0 %vm209_vm1, %v8462_v28 }
0x1349   :  { %7261 = vmatpush3.msra.mxu1 %v3735_v30  ;;  %7264 = vmatprep.mubr.msk.f32.mxu1 %vm209_vm1, %v8440_v46 }
0x134a   :  { %7262 = vmatprep.subr.mxu1 %v3734_v38 }
0x134b   :  { %7263 = vmatpush3.msra.mxu1 %v3734_v38 }
0x134c   :  { %7265 = vmatmul.mubr.msk.f32.vlgmr.msra.gmra.mxu1 %vm209_vm1, %v8443_v49 }
0x134d   :  { %7267 = vmatprep.mubr.msk.f32.mxu1 %vm209_vm1, %v8459_v26 }
0x1350   :  { %7268 = vmatmul.mubr.msk.f32.gmra.mxu1 %vm209_vm1, %v8462_v28 }
0x1403   :  { %v7252_v41 = vpop.f32.mrf.mxu1  ;;  %v7280_v63 = vpop.f32.mrf.mxu0 }
0x1404   :  { %v8515_v14 = vadd.f32 %v7280_v63, %v6516_v23  ;;  %v8525_v40 = vadd.f32 %v7252_v41, %v6506_v51 }
0x1405   :  { %v3715_v52 = vpop.f32.mrf.mxu1  ;;  %v3903_v12 = vpop.f32.mrf.mxu0 }
0x1406   :  { %v8489_v56 = vadd.f32 %v6506_v51, %v3715_v52  ;;  %v8530_v20 = vadd.f32 %v6516_v23, %v3903_v12 }
0x1407   :  { %v7255_v57 = vpop.f32.mrf.mxu1 }
0x1408   :  { %7288 = vmatprep.mubr.msk.f32.mxu1 %vm495_vm2, %v8489_v56  ;;  %v7283_v37 = vpop.f32.mrf.mxu0  ;;  %v8539_v21 = vadd.f32 %v7255_v57, %v6506_v51 }
0x1409   :  { %v3725_v58 = vpop.f32.mrf.mxu1  ;;  %v8532_v11 = vadd.f32 %v7283_v37, %v6516_v23 }
0x140a   :  { %v8493_v59 = vadd.f32 %v6506_v51, %v3725_v58  ;;  %v3913_v13 = vpop.f32.mrf.mxu0 }
0x140b   :  { %v8544_v4 = vadd.f32 %v6516_v23, %v3913_v13 }
0x140c   :  { %v7266_v2 = vpop.f32.mrf.mxu1  ;;  %7295 = vmatprep.mubr.msk.f32.mxu0 %vm495_vm2, %v8493_v59 }
0x140d   :  { %v8500_v5 = vadd.f32 %v7266_v2, %v6511_v61 }
0x140e   :  { %v3809_v0 = vpop.f32.mrf.mxu1 }
0x140f   :  { %v8502_v36 = vadd.f32 %v6511_v61, %v3809_v0  ;;  %7284 = vmatprep.subr.msk.mxu1 %vm495_vm2, %v8500_v5 }
0x1410   :  { %v7269_v47 = vpop.f32.mrf.mxu1  ;;  %7285 = vmatpush3.xpose.msk.msra.mxu1 %vm495_vm2, %v8500_v5 }
0x1411   :  { %v8511_v6 = vadd.f32 %v7269_v47, %v6511_v61  ;;  %7286 = vmatprep.subr.msk.mxu1 %vm495_vm2, %v8502_v36 }
0x1412   :  { %v3819_v45 = vpop.f32.mrf.mxu1 }
0x1413   :  { %v8517_v35 = vadd.f32 %v6511_v61, %v3819_v45  ;;  %7291 = vmatprep.subr.msk.mxu0 %vm495_vm2, %v8511_v6 }
0x1414   :  { %7287 = vmatpush3.xpose.msk.msra.mxu1 %vm495_vm2, %v8502_v36  ;;  %7292 = vmatpush3.xpose.msk.msra.mxu0 %vm495_vm2, %v8511_v6 }
0x1415   :  { %7293 = vmatprep.subr.msk.mxu0 %vm495_vm2, %v8517_v35  ;;  %7298 = vmatprep.subr.mxu1 %v8515_v14 }
0x1417   :  { %7289 = vmatmul.mubr.msk.f32.vlgmr.msra.gmra.mxu1 %vm495_vm2, %v8525_v40 }
0x1418   :  { %7294 = vmatpush3.xpose.msk.msra.mxu0 %vm495_vm2, %v8517_v35  ;;  %7299 = vmatpush3.msra.mxu1 %v8515_v14 }
0x1419   :  { %7300 = vmatprep.subr.mxu1 %v8530_v20  ;;  %7305 = vmatprep.subr.mxu0 %v8532_v11 }
0x141a   :  { %7301 = vmatpush3.msra.mxu1 %v8530_v20 }
0x141b   :  { %7296 = vmatmul.mubr.msk.f32.vlgmr.msra.gmra.mxu0 %vm495_vm2, %v8539_v21 }
0x141c   :  { %7306 = vmatpush3.msra.mxu0 %v8532_v11 }
0x141d   :  { %7307 = vmatprep.subr.mxu0 %v8544_v4 }
0x141e   :  { %7308 = vmatpush3.msra.mxu0 %v8544_v4 }
0x14d7   :  { %v7290_v54 = vpop.f32.mrf.mxu1 }
0x14d8   :  { %v4097_v9 = vmul.f32 0.35355338, %v7290_v54 }
0x14d9   :  { %v4000_v10 = vpop.f32.mrf.mxu1 }
0x14da   :  { %v4096_v29 = vmul.f32 0.35355338, %v4000_v10  ;;  %v4103_v1 = vsel %vm674_vm3, %v4097_v9, -inf }
0x14db   :  { %v7297_v7 = vpop.f32.mrf.mxu0  ;;  %4104 = vmax.xlane.f32.xlu0 %v4103_v1 }
0x14dc   :  { %v4099_v8 = vmul.f32 0.35355338, %v7297_v7  ;;  %v4100_v15 = vsel %vm674_vm3, %v4096_v29, -inf }
0x14dd   :  { %4101 = vmax.xlane.f32.xlu1 %v4100_v15  ;;  %v4087_v16 = vpop.f32.mrf.mxu0 }
0x14de   :  { %v4109_v17 = vsel %vm674_vm3, %v4099_v8, -inf  ;;  %v4098_v18 = vmul.f32 0.35355338, %v4087_v16 }
0x14df   :  { %4110 = vmax.xlane.f32.xlu0 %v4109_v17 }
0x14e0   :  { %v4106_v22 = vsel %vm674_vm3, %v4098_v18, -inf }
0x14ee   :  { %4313 = vrot.lane.b32.xlu1 %v8500_v5, %s7679_s28 }
0x14f2   :  { %4404 = vrot.lane.b32.xlu1 %v8511_v6, %s7679_s28 }
0x14f5   :  { %4311 = vrot.lane.b32.xlu0 %v8502_v36, %s7679_s28 }
0x1516   :  { %4107 = vmax.xlane.f32.xlu1 %v4106_v22 }
0x1527   :  { %4307 = vrot.lane.b32.xlu1 %v8489_v56, %s7679_s28 }
0x1564   :  { %v4105_v32 = vpop.xlane.xlu0 %4104 }
0x1565   :  { %v4113_v33 = vsub.f32 %v4097_v9, %v4105_v32 }
0x1566   :  { %v4102_v62 = vpop.xlane.xlu1 %4101 }
0x1567   :  { %v4118_v34 = vmul.f32 1.442695, %v4113_v33  ;;  %v4112_v3 = vsub.f32 %v4096_v29, %v4102_v62 }
0x1568   :  { %v4111_v60 = vpop.xlane.xlu0 %4110 }
0x1569   :  { %7562 = vpow2.f32 %v4118_v34  ;;  %v4116_v53 = vmul.f32 1.442695, %v4112_v3  ;;  %v4115_v19 = vsub.f32 %v4099_v8, %v4111_v60 }
0x156a   :  { %v4314_v27 = vpop.permute.xlu1 %4313 }
0x156b   :  { %7564 = vpow2.f32 %v4116_v53  ;;  %v4122_v39 = vmul.f32 1.442695, %v4115_v19  ;;  %7312 = vmatprep.subr.msk.mxu1 %vm495_vm2, %v4314_v27 }
0x156c   :  { %v4312_v51 = vpop.permute.xlu0 %4311 }
0x156d   :  { %7566 = vpow2.f32 %v4122_v39 }
0x156e   :  { %v4405_v24 = vpop.permute.xlu1 %4404 }
0x156f   :  { %7319 = vmatprep.subr.msk.mxu0 %vm495_vm2, %v4405_v24 }
0x1576   :  { %v7563_v31 = vpop.eup %7562 }
0x1577   :  { %v4127_v42 = vsel %vm674_vm3, %v7563_v31, 0.0 }
0x1578   :  { %v7565_v43 = vpop.eup %7564  ;;  %4128 = vadd.xlane.f32.xlu0 %v4127_v42 }
0x1579   :  { %v4124_v44 = vsel %vm674_vm3, %v7565_v43, 0.0 }
0x157a   :  { %v7567_v48 = vpop.eup %7566  ;;  %4125 = vadd.xlane.f32.xlu1 %v4124_v44 }
0x157b   :  { %v4133_v50 = vsel %vm674_vm3, %v7567_v48, 0.0 }
0x157c   :  { %4134 = vadd.xlane.f32.xlu0 %v4133_v50 }
0x158b   :  { %4402 = vrot.lane.b32.xlu1 %v8517_v35, %s7679_s28 }
0x1592   :  { %4309 = vrot.lane.b32.xlu0 %v8525_v40, %s7679_s28 }
0x1596   :  { %4398 = vrot.lane.b32.xlu0 %v8493_v59, %s7679_s28 }
0x159f   :  { %v4108_v55 = vpop.xlane.xlu1 %4107 }
0x15a0   :  { %v4114_v25 = vsub.f32 %v4098_v18, %v4108_v55 }
0x15a2   :  { %v4120_v30 = vmul.f32 1.442695, %v4114_v25 }
0x15a3   :  { %v4308_v52 = vpop.permute.xlu1 %4307 }
0x15a4   :  { %7568 = vpow2.f32 %v4120_v30 }
0x15b1   :  { %v7569_v38 = vpop.eup %7568 }
0x15b2   :  { %v4130_v41 = vsel %vm674_vm3, %v7569_v38, 0.0 }
0x15b3   :  { %4131 = vadd.xlane.f32.xlu1 %v4130_v41 }
0x15c4   :  { %4400 = vrot.lane.b32.xlu1 %v8539_v21, %s7679_s28 }
0x1601   :  { %v4129_v57 = vpop.xlane.xlu0 %4128 }
0x1602   :  { %7570 = vrcp.f32 %v4129_v57 }
0x1603   :  { %v4126_v58 = vpop.xlane.xlu1 %4125 }
0x1604   :  { %7572 = vrcp.f32 %v4126_v58 }
0x1605   :  { %v4135_v23 = vpop.xlane.xlu0 %4134 }
0x1606   :  { %7574 = vrcp.f32 %v4135_v23 }
0x1607   :  { %v4403_v47 = vpop.permute.xlu1 %4402 }
0x1609   :  { %v4310_v12 = vpop.permute.xlu0 %4309 }
0x160d   :  { %v4399_v10 = vpop.permute.xlu0 %4398 }
0x160f   :  { %v7571_v61 = vpop.eup %7570 }
0x1610   :  { %v4141_v0 = vmul.f32 %v7571_v61, %v7563_v31 }
0x1611   :  { %v7573_v63 = vpop.eup %7572 }
0x1612   :  { %v4140_v2 = vmul.f32 %v7573_v63, %v7565_v43 }
0x1613   :  { %v7575_v37 = vpop.eup %7574 }
0x1614   :  { %7302 = vmatprep.mubr.msk.f32.mxu1 %vm674_vm3, %v4140_v2  ;;  %v4143_v9 = vmul.f32 %v7575_v37, %v7567_v48 }
0x1615   :  { %7303 = vmatmul.mubr.msk.f32.vlgmr.msra.gmra.mxu1 %vm674_vm3, %v4141_v0 }
0x1616   :  { %7313 = vmatpush3.xpose.msk.msra.mxu1 %vm495_vm2, %v4314_v27  ;;  %7316 = vmatprep.mubr.msk.f32.mxu1 %vm495_vm2, %v4308_v52 }
0x1617   :  { %7314 = vmatprep.subr.msk.mxu1 %vm495_vm2, %v4312_v51 }
0x161a   :  { %7315 = vmatpush3.xpose.msk.msra.mxu1 %vm495_vm2, %v4312_v51 }
0x161d   :  { %7317 = vmatmul.mubr.msk.f32.vlgmr.msra.gmra.mxu1 %vm495_vm2, %v4310_v12 }
0x163c   :  { %v4132_v45 = vpop.xlane.xlu1 %4131 }
0x163d   :  { %7576 = vrcp.f32 %v4132_v45 }
0x1640   :  { %v4401_v29 = vpop.permute.xlu1 %4400 }
0x164a   :  { %v7577_v13 = vpop.eup %7576 }
0x164b   :  { %v4142_v54 = vmul.f32 %v7577_v13, %v7569_v38 }
0x164d   :  { %7309 = vmatprep.mubr.msk.f32.mxu0 %vm674_vm3, %v4142_v54 }
0x164e   :  { %7310 = vmatmul.mubr.msk.f32.vlgmr.msra.gmra.mxu0 %vm674_vm3, %v4143_v9  ;;  %v4306_v9 = vld [vmem:[%s8901_s2 + $0x178] sm:$0xff] }
0x164f   :  { %7320 = vmatpush3.xpose.msk.msra.mxu0 %vm495_vm2, %v4405_v24  ;;  %7323 = vmatprep.mubr.msk.f32.mxu0 %vm495_vm2, %v4399_v10 }
0x1650   :  { %7321 = vmatprep.subr.msk.mxu0 %vm495_vm2, %v4403_v47 }
0x1653   :  { %7322 = vmatpush3.xpose.msk.msra.mxu0 %vm495_vm2, %v4403_v47 }
0x1656   :  { %7324 = vmatmul.mubr.msk.f32.vlgmr.msra.gmra.mxu0 %vm495_vm2, %v4401_v29 }
0x16d5   :  { %v8591_v1 = vpop.f32.mrf.mxu1 }
0x16d7   :  { %v8593_v7 = vpop.f32.mrf.mxu1 }
0x16dd   :  { %v7318_v8 = vpop.f32.mrf.mxu1 }
0x16de   :  { %v4490_v15 = vmul.f32 0.35355338, %v7318_v8  ;;  %v4715_v8 = vld [vmem:[%s8901_s2 + $0x180] sm:$0xff] }
0x16df   :  { %v4389_v17 = vpop.f32.mrf.mxu1 }
0x16e0   :  { %v4489_v16 = vmul.f32 0.35355338, %v4389_v17  ;;  %v4496_v18 = vsel %vm674_vm3, %v4490_v15, -inf }
0x16e1   :  { %4497 = vmax.xlane.f32.xlu1 %v4496_v18 }
0x16e2   :  { %v4493_v22 = vsel %vm674_vm3, %v4489_v16, -inf }
0x16e3   :  { %4494 = vmax.xlane.f32.xlu0 %v4493_v22 }
0x16f2   :  { %4541 = vrot.lane.b32.xlu1 %v8515_v14, %s7679_s28 }
0x170e   :  { %v8599_v32 = vpop.f32.mrf.mxu0 }
0x1710   :  { %v8601_v33 = vpop.f32.mrf.mxu0 }
0x1716   :  { %v7325_v62 = vpop.f32.mrf.mxu0 }
0x1717   :  { %v4492_v60 = vmul.f32 0.35355338, %v7325_v62 }
0x1718   :  { %v4480_v34 = vpop.f32.mrf.mxu0 }
0x1719   :  { %v4491_v3 = vmul.f32 0.35355338, %v4480_v34  ;;  %v4502_v19 = vsel %vm674_vm3, %v4492_v60, -inf }
0x171b   :  { %v4499_v53 = vsel %vm674_vm3, %v4491_v3, -inf }
0x171c   :  { %4500 = vmax.xlane.f32.xlu0 %v4499_v53 }
0x1720   :  { %4503 = vmax.xlane.f32.xlu0 %v4502_v19 }
0x176a   :  { %v4498_v27 = vpop.xlane.xlu1 %4497 }
0x176b   :  { %v4506_v39 = vsub.f32 %v4490_v15, %v4498_v27 }
0x176c   :  { %v4495_v24 = vpop.xlane.xlu0 %4494 }
0x176d   :  { %v4511_v31 = vmul.f32 1.442695, %v4506_v39  ;;  %v4505_v42 = vsub.f32 %v4489_v16, %v4495_v24 }
0x176e   :  { %v4542_v43 = vpop.permute.xlu1 %4541 }
0x176f   :  { %7578 = vpow2.f32 %v4511_v31  ;;  %v4509_v44 = vmul.f32 1.442695, %v4505_v42  ;;  %7326 = vmatprep.subr.mxu1 %v4542_v43 }
0x1770   :  { %7327 = vmatpush3.msra.mxu1 %v4542_v43 }
0x1771   :  { %7580 = vpow2.f32 %v4509_v44 }
0x177c   :  { %v7579_v48 = vpop.eup %7578 }
0x177d   :  { %v4520_v50 = vsel %vm674_vm3, %v7579_v48, 0.0 }
0x177e   :  { %v7581_v55 = vpop.eup %7580  ;;  %4521 = vadd.xlane.f32.xlu0 %v4520_v50 }
0x177f   :  { %v4517_v25 = vsel %vm674_vm3, %v7581_v55, 0.0 }
0x1780   :  { %4518 = vadd.xlane.f32.xlu1 %v4517_v25 }
0x1791   :  { %4630 = vrot.lane.b32.xlu1 %v8532_v11, %s7679_s28 }
0x17a5   :  { %v4501_v30 = vpop.xlane.xlu0 %4500 }
0x17a6   :  { %v4507_v38 = vsub.f32 %v4491_v3, %v4501_v30 }
0x17a8   :  { %v4513_v41 = vmul.f32 1.442695, %v4507_v38 }
0x17a9   :  { %v4504_v51 = vpop.xlane.xlu0 %4503 }
0x17aa   :  { %7582 = vpow2.f32 %v4513_v41  ;;  %v4508_v52 = vsub.f32 %v4492_v60, %v4504_v51 }
0x17ac   :  { %v4515_v57 = vmul.f32 1.442695, %v4508_v52 }
0x17ae   :  { %7584 = vpow2.f32 %v4515_v57 }
0x17b7   :  { %v7583_v58 = vpop.eup %7582 }
0x17b8   :  { %v4523_v61 = vsel %vm674_vm3, %v7583_v58, 0.0 }
0x17b9   :  { %4524 = vadd.xlane.f32.xlu1 %v4523_v61 }
0x17bb   :  { %v7585_v63 = vpop.eup %7584 }
0x17bc   :  { %v4526_v2 = vsel %vm674_vm3, %v7585_v63, 0.0 }
0x17bd   :  { %4527 = vadd.xlane.f32.xlu0 %v4526_v2 }
0x17ca   :  { %4628 = vrot.lane.b32.xlu1 %v8544_v4, %s7679_s28 }
0x17ce   :  { %4914 = vrot.lane.b32.xlu1 %v8502_v36, %s7680_s29 }
0x17d2   :  { %4910 = vrot.lane.b32.xlu1 %v8489_v56, %s7680_s29 }
0x17d3   :  { %4539 = vrot.lane.b32.xlu0 %v8530_v20, %s7679_s28 }
0x17d6   :  { %5005 = vrot.lane.b32.xlu1 %v8517_v35, %s7680_s29 }
0x17d7   :  { %4916 = vrot.lane.b32.xlu0 %v8500_v5, %s7680_s29 }
0x17da   :  { %5003 = vrot.lane.b32.xlu1 %v8539_v21, %s7680_s29 }
0x17db   :  { %5007 = vrot.lane.b32.xlu0 %v8511_v6, %s7680_s29 }
0x17df   :  { %4912 = vrot.lane.b32.xlu0 %v8525_v40, %s7680_s29 }
0x17e3   :  { %5001 = vrot.lane.b32.xlu0 %v8493_v59, %s7680_s29 }
0x1807   :  { %v4522_v45 = vpop.xlane.xlu0 %4521 }
0x1809   :  { %v4519_v0 = vpop.xlane.xlu1 %4518 }
0x180a   :  { %7586 = vrcp.f32 %v4519_v0 }
0x180b   :  { %7588 = vrcp.f32 %v4522_v45 }
0x180d   :  { %v4631_v23 = vpop.permute.xlu1 %4630 }
0x180e   :  { %7333 = vmatprep.subr.mxu0 %v4631_v23 }
0x180f   :  { %7334 = vmatpush3.msra.mxu0 %v4631_v23 }
0x1817   :  { %v7587_v12 = vpop.eup %7586 }
0x1818   :  { %v4533_v47 = vmul.f32 %v7587_v12, %v7581_v55  ;;  %v7589_v10 = vpop.eup %7588 }
0x1819   :  { %v4534_v15 = vmul.f32 %v7589_v10, %v7579_v48 }
0x181a   :  { %7330 = vmatprep.mubr.msk.f32.mxu1 %vm674_vm3, %v4533_v47 }
0x1842   :  { %v4525_v37 = vpop.xlane.xlu1 %4524 }
0x1843   :  { %7590 = vrcp.f32 %v4525_v37 }
0x1846   :  { %v4528_v13 = vpop.xlane.xlu0 %4527  ;;  %v4629_v54 = vpop.permute.xlu1 %4628 }
0x1847   :  { %7592 = vrcp.f32 %v4528_v13  ;;  %7335 = vmatprep.subr.mxu0 %v4629_v54 }
0x1848   :  { %7336 = vmatpush3.msra.mxu0 %v4629_v54 }
0x1849   :  { %7348 = vmatprep.subr.mxu0 %v4306_v9 }
0x184a   :  { %v4540_v29 = vpop.permute.xlu0 %4539  ;;  %v4915_v18 = vpop.permute.xlu1 %4914 }
0x184b   :  { %7328 = vmatprep.subr.mxu1 %v4540_v29 }
0x184c   :  { %7329 = vmatpush3.msra.mxu1 %v4540_v29 }
0x184d   :  { %7331 = vmatmul.mubr.msk.f32.vlgmr.msra.gmra.mxu1 %vm674_vm3, %v4534_v15  ;;  %7340 = vmatprep.subr.mxu1 %v4715_v8 }
0x184e   :  { %v4917_v17 = vpop.permute.xlu0 %4916  ;;  %7341 = vmatpush3.msra.mxu1 %v4715_v8  ;;  %v4911_v60 = vpop.permute.xlu1 %4910 }
0x184f   :  { %7356 = vmatprep.subr.msk.mxu1 %vm495_vm2, %v4917_v17 }
0x1850   :  { %v7591_v16 = vpop.eup %7590 }
0x1851   :  { %v4535_v22 = vmul.f32 %v7591_v16, %v7583_v58 }
0x1852   :  { %v5008_v62 = vpop.permute.xlu0 %5007  ;;  %v5006_v19 = vpop.permute.xlu1 %5005 }
0x1853   :  { %7337 = vmatprep.mubr.msk.f32.mxu0 %vm674_vm3, %v4535_v22 }
0x1854   :  { %v7593_v34 = vpop.eup %7592 }
0x1855   :  { %v4536_v3 = vmul.f32 %v7593_v34, %v7585_v63 }
0x1856   :  { %v4913_v53 = vpop.permute.xlu0 %4912 }
0x1857   :  { %7338 = vmatmul.mubr.msk.f32.vlgmr.msra.gmra.mxu0 %vm674_vm3, %v4536_v3 }
0x1858   :  { %7349 = vmatpush3.msra.mxu0 %v4306_v9  ;;  %7350 = vmatprep.mubr.msk.f32.mxu0 %vm495_vm2, %v8593_v7  ;;  %v5004_v7 = vpop.permute.xlu1 %5003 }
0x1859   :  { %7363 = vmatprep.subr.msk.mxu0 %vm495_vm2, %v5008_v62 }
0x185a   :  { %v5002_v27 = vpop.permute.xlu0 %5001 }
0x185b   :  { %7351 = vmatmul.mubr.msk.f32.vlgmr.msra.gmra.mxu0 %vm495_vm2, %v8591_v1 }
0x185c   :  { %7364 = vmatpush3.xpose.msk.msra.mxu0 %vm495_vm2, %v5008_v62  ;;  %7353 = vmatprep.mubr.msk.f32.mxu0 %vm495_vm2, %v8601_v33 }
0x185d   :  { %7365 = vmatprep.subr.msk.mxu0 %vm495_vm2, %v5006_v19 }
0x185f   :  { %7354 = vmatmul.mubr.msk.f32.gmra.mxu0 %vm495_vm2, %v8599_v32 }
0x1860   :  { %7366 = vmatpush3.xpose.msk.msra.mxu0 %vm495_vm2, %v5006_v19  ;;  %7367 = vmatprep.mubr.msk.f32.mxu0 %vm495_vm2, %v5002_v27 }
0x1863   :  { %7368 = vmatmul.mubr.msk.f32.vlgmr.msra.gmra.mxu0 %vm495_vm2, %v5004_v7 }
0x190d   :  { %v7332_v1 = vpop.f32.mrf.mxu1 }
0x190f   :  { %v4617_v39 = vpop.f32.mrf.mxu1 }
0x1910   :  { %7342 = vmatprep.mubr.msk.f32.mxu1 %vm495_vm2, %v4617_v39 }
0x1911   :  { %7343 = vmatmul.mubr.msk.f32.vlgmr.msra.gmra.mxu1 %vm495_vm2, %v7332_v1 }
0x1912   :  { %7357 = vmatpush3.xpose.msk.msra.mxu1 %vm495_vm2, %v4917_v17 }
0x1913   :  { %7358 = vmatprep.subr.msk.mxu1 %vm495_vm2, %v4915_v18 }
0x1916   :  { %7359 = vmatpush3.xpose.msk.msra.mxu1 %vm495_vm2, %v4915_v18 }
0x1917   :  { %v7339_v32 = vpop.f32.mrf.mxu0 }
0x1919   :  { %v4706_v33 = vpop.f32.mrf.mxu0 }
0x191a   :  { %7345 = vmatprep.mubr.msk.f32.mxu1 %vm495_vm2, %v4706_v33 }
0x191b   :  { %7346 = vmatmul.mubr.msk.f32.gmra.mxu1 %vm495_vm2, %v7339_v32  ;;  %v8665_v24 = vpop.f32.mrf.mxu0 }
0x191c   :  { %7360 = vmatprep.mubr.msk.f32.mxu1 %vm495_vm2, %v4911_v60 }
0x191d   :  { %v8667_v31 = vpop.f32.mrf.mxu0 }
0x191f   :  { %7361 = vmatmul.mubr.msk.f32.vlgmr.msra.gmra.mxu1 %vm495_vm2, %v4913_v53  ;;  %v8669_v42 = vpop.f32.mrf.mxu0 }
0x1921   :  { %v8673_v44 = vpop.f32.mrf.mxu0 }
0x1923   :  { %v7369_v55 = vpop.f32.mrf.mxu0 }
0x1924   :  { %v5095_v63 = vmul.f32 0.35355338, %v7369_v55 }
0x1925   :  { %v5083_v41 = vpop.f32.mrf.mxu0 }
0x1926   :  { %v5094_v58 = vmul.f32 0.35355338, %v5083_v41  ;;  %v5105_v0 = vsel %vm674_vm3, %v5095_v63, -inf }
0x1928   :  { %v5102_v2 = vsel %vm674_vm3, %v5094_v58, -inf }
0x19d1   :  { %v8671_v43 = vpop.f32.mrf.mxu1 }
0x19d3   :  { %v8675_v48 = vpop.f32.mrf.mxu1 }
0x19db   :  { %v8677_v50 = vpop.f32.mrf.mxu1 }
0x19dd   :  { %v8679_v25 = vpop.f32.mrf.mxu1 }
0x19df   :  { %v7362_v30 = vpop.f32.mrf.mxu1 }
0x19e0   :  { %v5093_v38 = vmul.f32 0.35355338, %v7362_v30 }
0x19e1   :  { %v4992_v51 = vpop.f32.mrf.mxu1 }
0x19e2   :  { %v5092_v52 = vmul.f32 0.35355338, %v4992_v51  ;;  %v5099_v57 = vsel %vm674_vm3, %v5093_v38, -inf }
0x19e3   :  { %5100 = vmax.xlane.f32.xlu1 %v5099_v57 }
0x19e4   :  { %v5096_v61 = vsel %vm674_vm3, %v5092_v52, -inf }
0x19e5   :  { %5097 = vmax.xlane.f32.xlu0 %v5096_v61 }
0x19e9   :  { %5103 = vmax.xlane.f32.xlu0 %v5102_v2 }
0x19ed   :  { %5106 = vmax.xlane.f32.xlu0 %v5105_v0 }
0x1a6c   :  { %v5101_v12 = vpop.xlane.xlu1 %5100 }
0x1a6d   :  { %v5109_v37 = vsub.f32 %v5093_v38, %v5101_v12 }
0x1a6e   :  { %v5098_v23 = vpop.xlane.xlu0 %5097 }
0x1a6f   :  { %v5114_v10 = vmul.f32 1.442695, %v5109_v37  ;;  %v5108_v62 = vsub.f32 %v5092_v52, %v5098_v23 }
0x1a71   :  { %v5112_v34 = vmul.f32 1.442695, %v5108_v62  ;;  %v4892_v62 = vadd.f32 %v8667_v31, %v8675_v48 }
0x1a72   :  { %v5104_v47 = vpop.xlane.xlu0 %5103 }
0x1a73   :  { %v5110_v45 = vsub.f32 %v5094_v58, %v5104_v47 }
0x1a75   :  { %v5116_v13 = vmul.f32 1.442695, %v5110_v45 }
0x1a76   :  { %v5107_v54 = vpop.xlane.xlu0 %5106 }
0x1a77   :  { %7594 = vpow2.f32 %v5116_v13  ;;  %v5111_v9 = vsub.f32 %v5095_v63, %v5107_v54 }
0x1a79   :  { %v5118_v29 = vmul.f32 1.442695, %v5111_v9 }
0x1a7b   :  { %7596 = vpow2.f32 %v5118_v29 }
0x1a7c   :  { %7598 = vpow2.f32 %v5114_v10 }
0x1a7d   :  { %7600 = vpow2.f32 %v5112_v34 }
0x1a84   :  { %v7595_v8 = vpop.eup %7594 }
0x1a85   :  { %v5126_v15 = vsel %vm674_vm3, %v7595_v8, 0.0 }
0x1a86   :  { %5127 = vadd.xlane.f32.xlu1 %v5126_v15 }
0x1a88   :  { %v7597_v17 = vpop.eup %7596 }
0x1a89   :  { %v5129_v16 = vsel %vm674_vm3, %v7597_v17, 0.0  ;;  %v8687_v18 = vpop.eup %7598 }
0x1a8a   :  { %5130 = vadd.xlane.f32.xlu0 %v5129_v16  ;;  %v5123_v22 = vsel %vm674_vm3, %v8687_v18, 0.0  ;;  %v7601_v3 = vpop.eup %7600 }
0x1a8b   :  { %v5120_v60 = vsel %vm674_vm3, %v7601_v3, 0.0 }
0x1a8e   :  { %5124 = vadd.xlane.f32.xlu0 %v5123_v22 }
0x1a97   :  { %5142 = vrot.lane.b32.xlu1 %v8515_v14, %s7680_s29 }
0x1a9b   :  { %5229 = vrot.lane.b32.xlu1 %v8532_v11, %s7680_s29 }
0x1aa4   :  { %5140 = vrot.lane.b32.xlu0 %v8530_v20, %s7680_s29 }
0x1aa8   :  { %5422 = vrot.lane.b32.xlu0 %v8500_v5, %s7681_s9 }
0x1aac   :  { %5513 = vrot.lane.b32.xlu0 %v8511_v6, %s7681_s9 }
0x1ab0   :  { %5418 = vrot.lane.b32.xlu0 %v8525_v40, %s7681_s9 }
0x1ab4   :  { %5507 = vrot.lane.b32.xlu0 %v8493_v59, %s7681_s9 }
0x1abf   :  { %5121 = vadd.xlane.f32.xlu1 %v5120_v60 }
0x1ad0   :  { %5227 = vrot.lane.b32.xlu1 %v8544_v4, %s7680_s29 }
0x1ad4   :  { %5420 = vrot.lane.b32.xlu1 %v8502_v36, %s7681_s9 }
0x1ad8   :  { %5416 = vrot.lane.b32.xlu1 %v8489_v56, %s7681_s9  ;;  %v5314_v56 = vld [vmem:[%s8901_s2 + $0x188] sm:$0xff] }
0x1adc   :  { %5511 = vrot.lane.b32.xlu1 %v8517_v35, %s7681_s9 }
0x1ae0   :  { %5509 = vrot.lane.b32.xlu1 %v8539_v21, %s7681_s9 }
0x1b0f   :  { %v5128_v59 = vpop.xlane.xlu1 %5127 }
0x1b10   :  { %7602 = vrcp.f32 %v5128_v59  ;;  %v4907_v59 = vadd.f32 %v8669_v42, %v8677_v50 }
0x1b13   :  { %v5131_v5 = vpop.xlane.xlu0 %5130  ;;  %v5143_v6 = vpop.permute.xlu1 %5142 }
0x1b14   :  { %7370 = vmatprep.subr.mxu1 %v5143_v6  ;;  %7604 = vrcp.f32 %v5131_v5 }
0x1b15   :  { %7371 = vmatpush3.msra.mxu1 %v5143_v6 }
0x1b17   :  { %v5125_v40 = vpop.xlane.xlu0 %5124  ;;  %v5230_v53 = vpop.permute.xlu1 %5229 }
0x1b18   :  { %7377 = vmatprep.subr.mxu0 %v5230_v53  ;;  %7606 = vrcp.f32 %v5125_v40 }
0x1b19   :  { %7378 = vmatpush3.msra.mxu0 %v5230_v53 }
0x1b1b   :  { %v5141_v36 = vpop.permute.xlu0 %5140 }
0x1b1c   :  { %7372 = vmatprep.subr.mxu1 %v5141_v36 }
0x1b1d   :  { %v7603_v35 = vpop.eup %7602  ;;  %7373 = vmatpush3.msra.mxu1 %v5141_v36 }
0x1b1e   :  { %v5138_v19 = vmul.f32 %v7603_v35, %v7595_v8  ;;  %7384 = vmatprep.subr.mxu1 %v5314_v56 }
0x1b1f   :  { %v5423_v7 = vpop.permute.xlu0 %5422 }
0x1b20   :  { %7381 = vmatprep.mubr.msk.f32.mxu0 %vm674_vm3, %v5138_v19 }
0x1b21   :  { %v7605_v27 = vpop.eup %7604 }
0x1b22   :  { %v5139_v39 = vmul.f32 %v7605_v27, %v7597_v17 }
0x1b23   :  { %v5514_v32 = vpop.permute.xlu0 %5513 }
0x1b25   :  { %v7607_v30 = vpop.eup %7606 }
0x1b26   :  { %v5137_v52 = vmul.f32 %v7607_v30, %v8687_v18  ;;  %v4897_v18 = vadd.f32 %v8665_v24, %v8671_v43 }
0x1b27   :  { %v5419_v41 = vpop.permute.xlu0 %5418 }
0x1b2b   :  { %v5508_v13 = vpop.permute.xlu0 %5507 }
0x1b48   :  { %v5122_v21 = vpop.xlane.xlu1 %5121 }
0x1b49   :  { %7608 = vrcp.f32 %v5122_v21 }
0x1b4c   :  { %v5228_v1 = vpop.permute.xlu1 %5227 }
0x1b4d   :  { %7379 = vmatprep.subr.mxu0 %v5228_v1 }
0x1b4e   :  { %7380 = vmatpush3.msra.mxu0 %v5228_v1 }
0x1b4f   :  { %7382 = vmatmul.mubr.msk.f32.vlgmr.msra.gmra.mxu0 %vm674_vm3, %v5139_v39  ;;  %7392 = vmatprep.subr.msk.mxu0 %vm495_vm2, %v5423_v7 }
0x1b50   :  { %7393 = vmatpush3.xpose.msk.msra.mxu0 %vm495_vm2, %v5423_v7  ;;  %v5421_v33 = vpop.permute.xlu1 %5420 }
0x1b51   :  { %7394 = vmatprep.subr.msk.mxu0 %vm495_vm2, %v5421_v33 }
0x1b54   :  { %7395 = vmatpush3.xpose.msk.msra.mxu0 %vm495_vm2, %v5421_v33  ;;  %v5417_v55 = vpop.permute.xlu1 %5416 }
0x1b55   :  { %7396 = vmatprep.mubr.msk.f32.mxu0 %vm495_vm2, %v5417_v55 }
0x1b56   :  { %v7609_v38 = vpop.eup %7608 }
0x1b57   :  { %7397 = vmatmul.mubr.msk.f32.vlgmr.msra.gmra.mxu0 %vm495_vm2, %v5419_v41  ;;  %v5136_v51 = vmul.f32 %v7609_v38, %v7601_v3 }
0x1b58   :  { %v5512_v37 = vpop.permute.xlu1 %5511 }
0x1b59   :  { %7374 = vmatprep.mubr.msk.f32.mxu1 %vm674_vm3, %v5136_v51 }
0x1b5a   :  { %7375 = vmatmul.mubr.msk.f32.vlgmr.msra.gmra.mxu1 %vm674_vm3, %v5137_v52 }
0x1b5b   :  { %7385 = vmatpush3.msra.mxu1 %v5314_v56 }
0x1b5c   :  { %7399 = vmatprep.subr.msk.mxu1 %vm495_vm2, %v5514_v32  ;;  %v5510_v54 = vpop.permute.xlu1 %5509 }
0x1c0f   :  { %v7383_v57 = vpop.f32.mrf.mxu0 }
0x1c11   :  { %v5305_v58 = vpop.f32.mrf.mxu0 }
0x1c17   :  { %v7398_v61 = vpop.f32.mrf.mxu0 }
0x1c18   :  { %v5599_v63 = vmul.f32 0.35355338, %v7398_v61 }
0x1c19   :  { %v5498_v2 = vpop.f32.mrf.mxu0 }
0x1c1a   :  { %v5598_v0 = vmul.f32 0.35355338, %v5498_v2  ;;  %v7376_v23 = vpop.f32.mrf.mxu1  ;;  %v5605_v12 = vsel %vm674_vm3, %v5599_v63, -inf }
0x1c1b   :  { %5606 = vmax.xlane.f32.xlu1 %v5605_v12  ;;  %v5820_v12 = vld [vmem:[%s8901_s2 + $0x190] sm:$0xff] }
0x1c1c   :  { %v5218_v47 = vpop.f32.mrf.mxu1  ;;  %v5602_v45 = vsel %vm674_vm3, %v5598_v0, -inf }
0x1c1d   :  { %7386 = vmatprep.mubr.msk.f32.mxu1 %vm495_vm2, %v5218_v47  ;;  %5603 = vmax.xlane.f32.xlu0 %v5602_v45 }
0x1c1e   :  { %7387 = vmatmul.mubr.msk.f32.vlgmr.msra.gmra.mxu1 %vm495_vm2, %v7376_v23 }
0x1c1f   :  { %7400 = vmatpush3.xpose.msk.msra.mxu1 %vm495_vm2, %v5514_v32  ;;  %7389 = vmatprep.mubr.msk.f32.mxu1 %vm495_vm2, %v5305_v58 }
0x1c20   :  { %7401 = vmatprep.subr.msk.mxu1 %vm495_vm2, %v5512_v37 }
0x1c22   :  { %7390 = vmatmul.mubr.msk.f32.gmra.mxu1 %vm495_vm2, %v7383_v57 }
0x1c23   :  { %7402 = vmatpush3.xpose.msk.msra.mxu1 %vm495_vm2, %v5512_v37  ;;  %7403 = vmatprep.mubr.msk.f32.mxu1 %vm495_vm2, %v5508_v13 }
0x1c26   :  { %7404 = vmatmul.mubr.msk.f32.vlgmr.msra.gmra.mxu1 %vm495_vm2, %v5510_v54 }
0x1ca4   :  { %v5607_v17 = vpop.xlane.xlu1 %5606 }
0x1ca5   :  { %v5615_v16 = vsub.f32 %v5599_v63, %v5607_v17 }
0x1ca6   :  { %v5604_v9 = vpop.xlane.xlu0 %5603 }
0x1ca7   :  { %v5614_v10 = vsub.f32 %v5598_v0, %v5604_v9  ;;  %v5620_v34 = vmul.f32 1.442695, %v5615_v16  ;;  %v6585_v9 = vld [vmem:[%s8901_s2 + $0x240] ss:$0 sm:$0xff] }
0x1ca9   :  { %v5618_v29 = vmul.f32 1.442695, %v5614_v10 }
0x1cab   :  { %7610 = vpow2.f32 %v5618_v29 }
0x1cac   :  { %7612 = vpow2.f32 %v5620_v34 }
0x1cb8   :  { %v7611_v8 = vpop.eup %7610 }
0x1cb9   :  { %v5626_v15 = vsel %vm674_vm3, %v7611_v8, 0.0  ;;  %v7613_v50 = vpop.eup %7612 }
0x1cba   :  { %5627 = vadd.xlane.f32.xlu1 %v5626_v15  ;;  %v5629_v56 = vsel %vm674_vm3, %v7613_v50, 0.0 }
0x1ccb   :  { %5648 = vrot.lane.b32.xlu1 %v8515_v14, %s7681_s9 }
0x1ccf   :  { %5735 = vrot.lane.b32.xlu1 %v8532_v11, %s7681_s9  ;;  %v4902_v11 = vadd.f32 %v8673_v44, %v8679_v25 }
0x1cde   :  { %v7388_v22 = vpop.f32.mrf.mxu1 }
0x1cdf   :  { %v8751_v3 = vadd.f32 %v7388_v22, %v4897_v18 }
0x1ce0   :  { %v5393_v60 = vpop.f32.mrf.mxu1 }
0x1ce1   :  { %v8755_v14 = vadd.f32 %v5393_v60, %v4892_v62 }
0x1ce2   :  { %v7391_v5 = vpop.f32.mrf.mxu1 }
0x1ce3   :  { %v8759_v6 = vadd.f32 %v7391_v5, %v4907_v59 }
0x1ce4   :  { %v5403_v24 = vpop.f32.mrf.mxu1 }
0x1ce5   :  { %v8761_v43 = vadd.f32 %v5403_v24, %v4902_v11 }
0x1ce6   :  { %v7405_v31 = vpop.f32.mrf.mxu1 }
0x1ce7   :  { %v5601_v53 = vmul.f32 0.35355338, %v7405_v31 }
0x1ce8   :  { %v5589_v48 = vpop.f32.mrf.mxu1 }
0x1ce9   :  { %v5600_v40 = vmul.f32 0.35355338, %v5589_v48  ;;  %v5611_v42 = vsel %vm674_vm3, %v5601_v53, -inf }
0x1ceb   :  { %v5608_v36 = vsel %vm674_vm3, %v5600_v40, -inf }
0x1cec   :  { %5609 = vmax.xlane.f32.xlu0 %v5608_v36 }
0x1cf0   :  { %5612 = vmax.xlane.f32.xlu0 %v5611_v42 }
0x1cf4   :  { %5630 = vadd.xlane.f32.xlu0 %v5629_v56 }
0x1d43   :  { %v5628_v44 = vpop.xlane.xlu1 %5627 }
0x1d44   :  { %7614 = vrcp.f32 %v5628_v44 }
0x1d47   :  { %v5649_v25 = vpop.permute.xlu1 %5648 }
0x1d48   :  { %7406 = vmatprep.subr.mxu0 %v5649_v25 }
0x1d49   :  { %7407 = vmatpush3.msra.mxu0 %v5649_v25 }
0x1d4b   :  { %v5736_v35 = vpop.permute.xlu1 %5735 }
0x1d4c   :  { %7413 = vmatprep.subr.mxu1 %v5736_v35 }
0x1d4d   :  { %7414 = vmatpush3.msra.mxu1 %v5736_v35 }
0x1d51   :  { %v7615_v19 = vpop.eup %7614 }
0x1d52   :  { %v5642_v21 = vmul.f32 %v7615_v19, %v7611_v8 }
0x1d54   :  { %7410 = vmatprep.mubr.msk.f32.mxu0 %vm674_vm3, %v5642_v21 }
0x1d75   :  { %v5610_v27 = vpop.xlane.xlu0 %5609 }
0x1d76   :  { %v5616_v7 = vsub.f32 %v5600_v40, %v5610_v27 }
0x1d78   :  { %v5622_v1 = vmul.f32 1.442695, %v5616_v7 }
0x1d79   :  { %v5613_v39 = vpop.xlane.xlu0 %5612 }
0x1d7a   :  { %7616 = vpow2.f32 %v5622_v1  ;;  %v5617_v32 = vsub.f32 %v5601_v53, %v5613_v39  ;;  %v5998_v39 = vld [vmem:[%s8901_s2 + $0x1f0] sm:$0xff] }
0x1d7c   :  { %v5624_v33 = vmul.f32 1.442695, %v5617_v32  ;;  %v5997_v32 = vld [vmem:[%s8901_s2 + $0x1e8] sm:$0xff] }
0x1d7d   :  { %v5631_v51 = vpop.xlane.xlu0 %5630 }
0x1d7e   :  { %7618 = vpow2.f32 %v5624_v33  ;;  %v5996_v33 = vld [vmem:[%s8901_s2 + $0x1e0] sm:$0xff] }
0x1d7f   :  { %7620 = vrcp.f32 %v5631_v51 }
0x1d87   :  { %v7617_v55 = vpop.eup %7616 }
0x1d88   :  { %v5632_v30 = vsel %vm674_vm3, %v7617_v55, 0.0 }
0x1d89   :  { %5633 = vadd.xlane.f32.xlu1 %v5632_v30 }
0x1d8b   :  { %v7619_v38 = vpop.eup %7618 }
0x1d8c   :  { %v5635_v41 = vsel %vm674_vm3, %v7619_v38, 0.0  ;;  %v7621_v61 = vpop.eup %7620 }
0x1d8d   :  { %5636 = vadd.xlane.f32.xlu0 %v5635_v41  ;;  %v5643_v2 = vmul.f32 %v7621_v61, %v7613_v50 }
0x1d9a   :  { %5733 = vrot.lane.b32.xlu1 %v8544_v4, %s7681_s9 }
0x1da3   :  { %5646 = vrot.lane.b32.xlu0 %v8530_v20, %s7681_s9 }
0x1e12   :  { %v5634_v52 = vpop.xlane.xlu1 %5633 }
0x1e13   :  { %7622 = vrcp.f32 %v5634_v52 }
0x1e16   :  { %v5637_v57 = vpop.xlane.xlu0 %5636  ;;  %v5734_v58 = vpop.permute.xlu1 %5733 }
0x1e17   :  { %7624 = vrcp.f32 %v5637_v57  ;;  %7415 = vmatprep.subr.mxu1 %v5734_v58 }
0x1e18   :  { %7416 = vmatpush3.msra.mxu1 %v5734_v58 }
0x1e19   :  { %7428 = vmatprep.subr.mxu1 %v5998_v39 }
0x1e1a   :  { %v5647_v63 = vpop.permute.xlu0 %5646 }
0x1e1b   :  { %7408 = vmatprep.subr.mxu0 %v5647_v63 }
0x1e1c   :  { %7409 = vmatpush3.msra.mxu0 %v5647_v63 }
0x1e1d   :  { %7411 = vmatmul.mubr.msk.f32.vlgmr.msra.gmra.mxu0 %vm674_vm3, %v5643_v2  ;;  %7420 = vmatprep.subr.mxu0 %v5820_v12 }
0x1e1e   :  { %7421 = vmatpush3.msra.mxu0 %v5820_v12 }
0x1e20   :  { %v7623_v4 = vpop.eup %7622 }
0x1e21   :  { %v5644_v0 = vmul.f32 %v7623_v4, %v7617_v55  ;;  %v5995_v55 = vld [vmem:[%s8901_s2 + $0x1d8] sm:$0xff] }
0x1e23   :  { %7417 = vmatprep.mubr.msk.f32.mxu1 %vm674_vm3, %v5644_v0 }
0x1e24   :  { %v7625_v20 = vpop.eup %7624 }
0x1e25   :  { %v5645_v23 = vmul.f32 %v7625_v20, %v7619_v38 }
0x1e27   :  { %7418 = vmatmul.mubr.msk.f32.vlgmr.msra.gmra.mxu1 %vm674_vm3, %v5645_v23 }
0x1e28   :  { %7429 = vmatpush3.msra.mxu1 %v5998_v39 }
0x1e29   :  { %7430 = vmatprep.subr.mxu1 %v5997_v32 }
0x1e2a   :  { %7431 = vmatpush3.msra.mxu1 %v5997_v32 }
0x1e2b   :  { %7432 = vmatprep.subr.mxu1 %v5996_v33 }
0x1e2c   :  { %7433 = vmatpush3.msra.mxu1 %v5996_v33 }
0x1e2d   :  { %7434 = vmatprep.subr.mxu1 %v5995_v55 }
0x1e2e   :  { %7435 = vmatpush3.msra.mxu1 %v5995_v55 }
0x1edd   :  { %v7412_v47 = vpop.f32.mrf.mxu0 }
0x1edf   :  { %v5724_v45 = vpop.f32.mrf.mxu0 }
0x1ee0   :  { %7422 = vmatprep.mubr.msk.f32.mxu0 %vm495_vm2, %v5724_v45  ;;  %v7654_v45 = vld [vmem:[%s8901_s2 + $0x241] ss:$0 sm:$0xff] }
0x1ee1   :  { %7423 = vmatmul.mubr.msk.f32.vlgmr.msra.gmra.mxu0 %vm495_vm2, %v7412_v47 }
0x1ee7   :  { %v7419_v37 = vpop.f32.mrf.mxu1 }
0x1ee9   :  { %v5811_v13 = vpop.f32.mrf.mxu1 }
0x1eea   :  { %7425 = vmatprep.mubr.msk.f32.mxu0 %vm495_vm2, %v5811_v13 }
0x1eeb   :  { %7426 = vmatmul.mubr.msk.f32.gmra.mxu0 %vm495_vm2, %v7419_v37 }
0x1fa1   :  { %v7424_v54 = vpop.f32.mrf.mxu0 }
0x1fa2   :  { %v5919_v10 = vadd.f32 %v7424_v54, %v8751_v3  ;;  %v7655_v54 = vld [vmem:[%s8901_s2 + $0x242] ss:$0 sm:$0xff] }
0x1fa3   :  { %v5899_v29 = vpop.f32.mrf.mxu0 }
0x1fa4   :  { %v5928_v8 = vadd.f32 %v6585_v9, %v5919_v10  ;;  %v5918_v15 = vadd.f32 %v5899_v29, %v8755_v14 }
0x1fa6   :  { %v5927_v17 = vadd.f32 %v6585_v9, %v5918_v15  ;;  %v5932_v16 = vadd.f32 %v5928_v8, %v8443_v49 }
0x1fa8   :  { %v5938_v18 = vsel %vm209_vm1, %v5932_v16, 0.0  ;;  %v5931_v22 = vadd.f32 %v5927_v17, %v8440_v46 }
0x1fa9   :  { %5939 = vadd.xlane.f32.xlu1 %v5938_v18 }
0x1faa   :  { %v5935_v62 = vsel %vm209_vm1, %v5931_v22, 0.0 }
0x1fab   :  { %5936 = vadd.xlane.f32.xlu0 %v5935_v62  ;;  %v7427_v34 = vpop.f32.mrf.mxu0 }
0x1fac   :  { %v5921_v60 = vadd.f32 %v7427_v34, %v8759_v6  ;;  %v6586_v34 = vld [vmem:[%s8901_s2 + $0x244] ss:$0 sm:$0xff] }
0x1fad   :  { %v5909_v59 = vpop.f32.mrf.mxu0 }
0x1fae   :  { %v5920_v3 = vadd.f32 %v5909_v59, %v8761_v43  ;;  %v5930_v5 = vadd.f32 %v6585_v9, %v5921_v60 }
0x1fb0   :  { %v5929_v11 = vadd.f32 %v6585_v9, %v5920_v3  ;;  %v5934_v24 = vadd.f32 %v5930_v5, %v8462_v28 }
0x1fb2   :  { %v5933_v14 = vadd.f32 %v5929_v11, %v8459_v26  ;;  %v5944_v46 = vsel %vm209_vm1, %v5934_v24, 0.0 }
0x1fb4   :  { %v5941_v49 = vsel %vm209_vm1, %v5933_v14, 0.0 }
0x1fb5   :  { %5942 = vadd.xlane.f32.xlu0 %v5941_v49  ;;  %v6591_v49 = vld [vmem:[%s8901_s2 + $0x245] ss:$0 sm:$0xff] }
0x1fb9   :  { %5945 = vadd.xlane.f32.xlu0 %v5944_v46 }
0x2032   :  { %v5940_v31 = vpop.xlane.xlu1 %5939 }
0x2033   :  { %v5948_v48 = vmul.f32 0.03125, %v5940_v31 }
0x2034   :  { %v5937_v40 = vpop.xlane.xlu0 %5936 }
0x2035   :  { %v5952_v53 = vsub.f32 %v5932_v16, %v5948_v48  ;;  %v5947_v6 = vmul.f32 0.03125, %v5937_v40 }
0x2037   :  { %v5951_v36 = vsub.f32 %v5931_v22, %v5947_v6  ;;  %v5956_v42 = vmul.f32 %v5952_v53, %v5952_v53 }
0x2039   :  { %v5962_v43 = vsel %vm209_vm1, %v5956_v42, 0.0  ;;  %v5955_v50 = vmul.f32 %v5951_v36, %v5951_v36 }
0x203a   :  { %5963 = vadd.xlane.f32.xlu0 %v5962_v43 }
0x203b   :  { %v5959_v26 = vsel %vm209_vm1, %v5955_v50, 0.0 }
0x203c   :  { %5960 = vadd.xlane.f32.xlu1 %v5959_v26 }
0x203e   :  { %v5943_v56 = vpop.xlane.xlu0 %5942 }
0x203f   :  { %v5949_v28 = vmul.f32 0.03125, %v5943_v56 }
0x2041   :  { %v5953_v44 = vsub.f32 %v5933_v14, %v5949_v28 }
0x2042   :  { %v5946_v25 = vpop.xlane.xlu0 %5945 }
0x2043   :  { %v5950_v35 = vmul.f32 0.03125, %v5946_v25  ;;  %v5957_v19 = vmul.f32 %v5953_v44, %v5953_v44  ;;  %v7683_v25 = vmov 0.0  }
0x2044   :  { %7442 = vmatprep.subr.mxu0 %v7683_v25  ;;  %7450 = vmatprep.mubr.msk.f32.mxu0 %vm7684_vm7, %v7683_v25 }
0x2045   :  { %v5954_v21 = vsub.f32 %v5934_v24, %v5950_v35  ;;  %v5965_v27 = vsel %vm209_vm1, %v5957_v19, 0.0  ;;  %v6198_v35 = vld [vmem:[%s8901_s2 + $0x208] sm:$0xff]  ;;  %7453 = vmatprep.subr.mxu1 %v7683_v25  ;;  %v6197_v19 = vld [vmem:[%s8901_s2 + $0x200] sm:$0xff] }
0x2046   :  { %5966 = vadd.xlane.f32.xlu1 %v5965_v27  ;;  %v6282_v27 = vld [vmem:[%s8901_s2 + $0x230] sm:$0xff] }
0x2047   :  { %v5958_v7 = vmul.f32 %v5954_v21, %v5954_v21 }
0x2049   :  { %v5968_v1 = vsel %vm209_vm1, %v5958_v7, 0.0 }
0x204a   :  { %5969 = vadd.xlane.f32.xlu0 %v5968_v1 }
0x20c3   :  { %v5964_v30 = vpop.xlane.xlu0 %5963 }
0x20c4   :  { %v5972_v38 = vmul.f32 0.03125, %v5964_v30 }
0x20c5   :  { %v5961_v41 = vpop.xlane.xlu1 %5960 }
0x20c6   :  { %v5976_v51 = vadd.f32 1e-05, %v5972_v38  ;;  %v5971_v52 = vmul.f32 0.03125, %v5961_v41 }
0x20c8   :  { %7626 = vrsqrt.f32 %v5976_v51  ;;  %v5975_v57 = vadd.f32 1e-05, %v5971_v52 }
0x20ca   :  { %7628 = vrsqrt.f32 %v5975_v57 }
0x20cf   :  { %v5967_v58 = vpop.xlane.xlu1 %5966 }
0x20d0   :  { %v5973_v61 = vmul.f32 0.03125, %v5967_v58 }
0x20d2   :  { %v5977_v63 = vadd.f32 1e-05, %v5973_v61 }
0x20d3   :  { %v5970_v2 = vpop.xlane.xlu0 %5969 }
0x20d4   :  { %7630 = vrsqrt.f32 %v5977_v63  ;;  %v5974_v4 = vmul.f32 0.03125, %v5970_v2 }
0x20d5   :  { %v7627_v0 = vpop.eup %7626 }
0x20d6   :  { %v5984_v20 = vmul.f32 %v7627_v0, %v5952_v53  ;;  %v5978_v23 = vadd.f32 1e-05, %v5974_v4 }
0x20d7   :  { %v7629_v12 = vpop.eup %7628 }
0x20d8   :  { %7632 = vrsqrt.f32 %v5978_v23  ;;  %v5983_v47 = vmul.f32 %v7629_v12, %v5951_v36  ;;  %v5988_v37 = vmul.f32 %v7654_v45, %v5984_v20 }
0x20da   :  { %v5987_v13 = vmul.f32 %v7654_v45, %v5983_v47  ;;  %v8822_v10 = vadd.f32 %v7655_v54, %v5988_v37 }
0x20dc   :  { %v8820_v9 = vadd.f32 %v7655_v54, %v5987_v13 }
0x20de   :  { %7436 = vmatprep.mubr.msk.f32.mxu1 %vm209_vm1, %v8820_v9 }
0x20df   :  { %7437 = vmatmul.mubr.msk.f32.vlgmr.msra.gmra.mxu1 %vm209_vm1, %v8822_v10 }
0x20e0   :  { %7454 = vmatpush3.msra.mxu1 %v6282_v27 }
0x20e1   :  { %v7631_v29 = vpop.eup %7630  ;;  %7455 = vmatprep.subr.mxu1 %v7683_v25 }
0x20e2   :  { %v5985_v8 = vmul.f32 %v7631_v29, %v5953_v44  ;;  %v6199_v44 = vld [vmem:[%s8901_s2 + $0x210] sm:$0xff] }
0x20e3   :  { %7443 = vmatpush3.msra.mxu0 %v6199_v44 }
0x20e4   :  { %v5989_v15 = vmul.f32 %v7654_v45, %v5985_v8  ;;  %7444 = vmatprep.subr.mxu0 %v7683_v25 }
0x20e5   :  { %v7633_v17 = vpop.eup %7632  ;;  %7445 = vmatpush3.msra.mxu0 %v6198_v35 }
0x20e6   :  { %v8828_v16 = vadd.f32 %v7655_v54, %v5989_v15  ;;  %v5986_v18 = vmul.f32 %v7633_v17, %v5954_v21  ;;  %7446 = vmatprep.subr.mxu0 %v7683_v25  ;;  %v6196_v21 = vld [vmem:[%s8901_s2 + $0x1f8] sm:$0xff] }
0x20e7   :  { %7447 = vmatpush3.msra.mxu0 %v6197_v19 }
0x20e8   :  { %7439 = vmatprep.mubr.msk.f32.mxu1 %vm209_vm1, %v8828_v16  ;;  %v5990_v22 = vmul.f32 %v7654_v45, %v5986_v18  ;;  %7448 = vmatprep.subr.mxu0 %v7683_v25 }
0x20e9   :  { %7449 = vmatpush3.msra.mxu0 %v6196_v21 }
0x20ea   :  { %v8832_v62 = vadd.f32 %v7655_v54, %v5990_v22 }
0x20ec   :  { %7440 = vmatmul.mubr.msk.f32.gmra.mxu1 %vm209_vm1, %v8832_v62 }
0x20ed   :  { %7461 = vmatprep.mubr.msk.f32.mxu1 %vm7684_vm7, %v7683_v25 }
0x219f   :  { %v7438_v60 = vpop.f32.mrf.mxu1 }
0x21a0   :  { %v6088_v59 = vadd.f32 %v7438_v60, %v6586_v34 }
0x21a1   :  { %v6082_v3 = vpop.f32.mrf.mxu1 }
0x21a2   :  { %7634 = vtanh.f32 %v6088_v59  ;;  %v6083_v5 = vadd.f32 %v6586_v34, %v6082_v3 }
0x21a4   :  { %7636 = vtanh.f32 %v6083_v5 }
0x21ac   :  { %v7441_v11 = vpop.f32.mrf.mxu1 }
0x21ad   :  { %v6098_v14 = vadd.f32 %v7441_v11, %v6586_v34 }
0x21ae   :  { %v6092_v24 = vpop.f32.mrf.mxu1 }
0x21af   :  { %v7635_v46 = vpop.eup %7634  ;;  %7638 = vtanh.f32 %v6098_v14  ;;  %v6093_v31 = vadd.f32 %v6586_v34, %v6092_v24 }
0x21b0   :  { %v6111_v48 = vmul.f32 %v7635_v46, %v6591_v49 }
0x21b1   :  { %v7637_v40 = vpop.eup %7636  ;;  %7640 = vtanh.f32 %v6093_v31 }
0x21b2   :  { %v6117_v53 = vsel %vm209_vm1, %v6111_v48, 0.0  ;;  %v6110_v6 = vmul.f32 %v7637_v40, %v6591_v49 }
0x21b3   :  { %6118 = vadd.xlane.f32.xlu0 %v6117_v53 }
0x21b4   :  { %v6114_v36 = vsel %vm209_vm1, %v6110_v6, 0.0 }
0x21b5   :  { %6115 = vadd.xlane.f32.xlu1 %v6114_v36 }
0x21bc   :  { %v7639_v42 = vpop.eup %7638 }
0x21bd   :  { %v6113_v43 = vmul.f32 %v7639_v42, %v6591_v49 }
0x21be   :  { %v7641_v50 = vpop.eup %7640 }
0x21bf   :  { %v6123_v26 = vsel %vm209_vm1, %v6113_v43, 0.0  ;;  %v6112_v56 = vmul.f32 %v7641_v50, %v6591_v49 }
0x21c0   :  { %6124 = vadd.xlane.f32.xlu0 %v6123_v26 }
0x21c1   :  { %v6120_v28 = vsel %vm209_vm1, %v6112_v56, 0.0 }
0x21c2   :  { %6121 = vadd.xlane.f32.xlu1 %v6120_v28 }
0x223c   :  { %v6119_v7 = vpop.xlane.xlu0 %6118 }
0x223e   :  { %v6116_v1 = vpop.xlane.xlu1 %6115 }
0x223f   :  { %v6126_v39 = vmax.f32 %v6116_v1, %v6119_v7 }
0x2241   :  { %v6127_v32 = vrot.slane %v6126_v39, 4 }
0x2243   :  { %v6128_v33 = vmax.f32 %v6126_v39, %v6127_v32 }
0x2245   :  { %v6129_v55 = vrot.slane %v6128_v33, 2 }
0x2247   :  { %v6130_v30 = vmax.f32 %v6128_v33, %v6129_v55 }
0x2249   :  { %v6131_v38 = vrot.slane %v6130_v30, 1  ;;  %v6125_v51 = vpop.xlane.xlu0 %6124 }
0x224b   :  { %v6132_v41 = vmax.f32 %v6130_v30, %v6131_v38  ;;  %v6122_v52 = vpop.xlane.xlu1 %6121 }
0x224c   :  { %v6160_v57 = vmax.f32 %v6122_v52, %v6125_v51 }
0x224d   :  { %v6133_v58 = vsub.f32 %v6116_v1, %v6132_v41  ;;  %v6134_v61 = vsub.f32 %v6119_v7, %v6132_v41 }
0x224e   :  { %v6161_v63 = vrot.slane %v6160_v57, 4 }
0x224f   :  { %v6135_v2 = vmul.f32 1.442695, %v6133_v58  ;;  %v6137_v4 = vmul.f32 1.442695, %v6134_v61  ;;  %v6279_v58 = vld [vmem:[%s8901_s2 + $0x218] sm:$0xff] }
0x2250   :  { %v6162_v0 = vmax.f32 %v6160_v57, %v6161_v63  ;;  %v6592_v61 = vld [vmem:[%s8901_s2 + $0x246] ss:$0 sm:$0xff] }
0x2251   :  { %7642 = vpow2.f32 %v6135_v2 }
0x2252   :  { %7644 = vpow2.f32 %v6137_v4  ;;  %v6163_v20 = vrot.slane %v6162_v0, 2 }
0x2254   :  { %v6164_v23 = vmax.f32 %v6162_v0, %v6163_v20  ;;  %v6594_v20 = vld [vmem:[%s8901_s2 + $0x247] ss:$0 sm:$0xff] }
0x2256   :  { %v6165_v12 = vrot.slane %v6164_v23, 1 }
0x2258   :  { %v6166_v47 = vmax.f32 %v6164_v23, %v6165_v12 }
0x225a   :  { %v6167_v45 = vsub.f32 %v6122_v52, %v6166_v47  ;;  %v6168_v37 = vsub.f32 %v6125_v51, %v6166_v47 }
0x225c   :  { %v6169_v13 = vmul.f32 1.442695, %v6167_v45  ;;  %v6171_v54 = vmul.f32 1.442695, %v6168_v37 }
0x225e   :  { %v7643_v29 = vpop.eup %7642  ;;  %7646 = vpow2.f32 %v6169_v13 }
0x225f   :  { %v7645_v8 = vpop.eup %7644  ;;  %7648 = vpow2.f32 %v6171_v54 }
0x2260   :  { %v6139_v15 = vadd.f32 %v7645_v8, %v7643_v29 }
0x2262   :  { %v6140_v17 = vrot.slane %v6139_v15, 4 }
0x2264   :  { %v6141_v18 = vadd.f32 %v6140_v17, %v6139_v15 }
0x2266   :  { %v6142_v22 = vrot.slane %v6141_v18, 2 }
0x2268   :  { %v6143_v34 = vadd.f32 %v6142_v22, %v6141_v18 }
0x226a   :  { %v6144_v60 = vrot.slane %v6143_v34, 1 }
0x226b   :  { %v7647_v59 = vpop.eup %7646 }
0x226c   :  { %v7649_v3 = vpop.eup %7648  ;;  %v6145_v5 = vadd.f32 %v6144_v60, %v6143_v34 }
0x226d   :  { %v6173_v11 = vadd.f32 %v7649_v3, %v7647_v59 }
0x226e   :  { %7650 = vrcp.f32 %v6145_v5 }
0x226f   :  { %v6174_v14 = vrot.slane %v6173_v11, 4 }
0x2271   :  { %v6175_v49 = vadd.f32 %v6174_v14, %v6173_v11 }
0x2273   :  { %v6176_v24 = vrot.slane %v6175_v49, 2 }
0x2275   :  { %v6177_v46 = vadd.f32 %v6176_v24, %v6175_v49 }
0x2277   :  { %v6178_v31 = vrot.slane %v6177_v46, 1 }
0x2279   :  { %v6179_v48 = vadd.f32 %v6178_v31, %v6177_v46 }
0x227b   :  { %v7651_v40 = vpop.eup %7650  ;;  %7652 = vrcp.f32 %v6179_v48 }
0x227c   :  { %v6147_v53 = vmul.f32 %v7651_v40, %v7643_v29  ;;  %v6148_v6 = vmul.f32 %v7651_v40, %v7645_v8 }
0x227e   :  { %v6149_v36 = vmul.f32 %v6147_v53, %v8820_v9  ;;  %v6150_v42 = vmul.f32 %v6148_v6, %v8822_v10 }
0x2280   :  { %v6151_v43 = vsel %vm209_vm1, %v6149_v36, 0.0  ;;  %v6152_v50 = vsel %vm209_vm1, %v6150_v42, 0.0 }
0x2281   :  { %v6153_v26 = vadd.f32 %v6152_v50, %v6151_v43 }
0x2283   :  { %v6154_v56 = vrot.slane %v6153_v26, 4 }
0x2285   :  { %v6155_v19 = vadd.f32 %v6154_v56, %v6153_v26 }
0x2287   :  { %v6156_v1 = vrot.slane %v6155_v19, 2 }
0x2288   :  { %v7653_v28 = vpop.eup %7652 }
0x2289   :  { %v6181_v44 = vmul.f32 %v7653_v28, %v7647_v59  ;;  %v6182_v35 = vmul.f32 %v7653_v28, %v7649_v3  ;;  %v6157_v32 = vadd.f32 %v6156_v1, %v6155_v19 }
0x228b   :  { %v6183_v21 = vmul.f32 %v6181_v44, %v8828_v16  ;;  %v6184_v27 = vmul.f32 %v6182_v35, %v8832_v62  ;;  %v6158_v30 = vrot.slane %v6157_v32, 1  ;;  %v6281_v16 = vld [vmem:[%s8901_s2 + $0x228] sm:$0xff]  ;;  %v6280_v62 = vld [vmem:[%s8901_s2 + $0x220] sm:$0xff] }
0x228c   :  { %7456 = vmatpush3.msra.mxu1 %v6281_v16 }
0x228d   :  { %v6185_v7 = vsel %vm209_vm1, %v6183_v21, 0.0  ;;  %v6186_v9 = vsel %vm209_vm1, %v6184_v27, 0.0  ;;  %v6159_v51 = vadd.f32 %v6158_v30, %v6157_v32  ;;  %7457 = vmatprep.subr.mxu1 %v7683_v25 }
0x228e   :  { %v6187_v10 = vadd.f32 %v6186_v9, %v6185_v7  ;;  %7458 = vmatpush3.msra.mxu1 %v6280_v62 }
0x228f   :  { %7459 = vmatprep.subr.mxu1 %v7683_v25 }
0x2290   :  { %v6188_v39 = vrot.slane %v6187_v10, 4  ;;  %7460 = vmatpush3.msra.mxu1 %v6279_v58 }
0x2292   :  { %v6189_v33 = vadd.f32 %v6188_v39, %v6187_v10 }
0x2294   :  { %v6190_v55 = vrot.slane %v6189_v33, 2 }
0x2296   :  { %v6191_v38 = vadd.f32 %v6190_v55, %v6189_v33 }
0x2298   :  { %v6192_v41 = vrot.slane %v6191_v38, 1 }
0x229a   :  { %v6193_v52 = vadd.f32 %v6192_v41, %v6191_v38 }
0x229c   :  { %v6195_v57 = vsel %vm6194_vm8, %v6159_v51, %v6193_v52 }
0x229d   :  { %7451 = vmatmul.mubr.msk.f32.vlgmr.msra.gmra.mxu0 %vm209_vm1, %v6195_v57 }
0x235d   :  { %v6274_v63 = vpop.f32.mrf.mxu0 }
0x235e   :  { %v6275_v2 = vadd.f32 %v6592_v61, %v6274_v63 }
0x235f   :  { %v7452_v4 = vpop.f32.mrf.mxu0 }
0x2360   :  { %v6278_v0 = vmax.f32 %v6275_v2, 0.0 }
0x2362   :  { %7462 = vmatmul.mubr.msk.f32.vlgmr.msra.gmra.mxu1 %vm209_vm1, %v6278_v0 }
0x2422   :  { %v6357_v25 = vpop.f32.mrf.mxu1 }
0x2423   :  { %v6358_v23 = vadd.f32 %v6594_v20, %v6357_v25 }
0x2424   :  { %v7463_v12 = vpop.f32.mrf.mxu1 }
0x2425   :  { %6362 = vst.msk [vmem:[#allocation2] sm:$0x3] %vm6361_vm9, %v6358_v23 }
0x2426   :  { %7667 = shalt.err (!%p7664_p4)
}
0x2427   :  { %6372 = dma.vmem_to_hbm [thread:$0]  %s6370_s11, 32, %s8904_s5, [#allocation3]  }
0x2428   :  { %7676 = dma.done.wait [#allocation3], 32  }
0x2429   :  { %7677 = vsyncadd [#allocation3], 4294967264 }
0x242a   :  { %6376 = vsyncpa [#allocation3], 1 }

</bundles_post_ra>
